<compile_context>
chip_gen: v5e
topology: v5e:2x2
jax: 0.10.0
libtpu: 0.0.40
codegen_flags: <defaults>
</compile_context>

<pallas_src>
import functools
import math

import jax
import jax.numpy as jnp
from jax.experimental import pallas as pl
from jax.experimental.pallas import tpu as pltpu

LN_EPS_EMB = 1e-12
LN_EPS = 1e-5


def _layer_norm(v, g, b, eps):
    mu = jnp.mean(v, axis=-1, keepdims=True)
    var = jnp.mean((v - mu) ** 2, axis=-1, keepdims=True)
    return (v - mu) * jax.lax.rsqrt(var + eps) * g + b


def encoder_layer_kernel(x_ref, ge_ref, be_ref, g1_ref, b1_ref,
                         wqkv_ref, bqkv_ref, wo_ref, bo_ref,
                         g2_ref, b2_ref, w1_ref, bf1_ref, w2_ref, bf2_ref,
                         o_ref, *, num_heads, head_dim):
    TB, S, H = x_ref.shape
    M = TB * S

    # Streamed activations arrive in bf16; upcast once, do LN/residuals in f32.
    x = x_ref[...].astype(jnp.float32).reshape(M, H)

    # --- Embedding LayerNorm (dropout == identity in eval) ---
    x = _layer_norm(x, ge_ref[...], be_ref[...], LN_EPS_EMB)

    # --- Multi-head self-attention on LN1(x) ---
    h1 = _layer_norm(x, g1_ref[...], b1_ref[...], LN_EPS)

    # Fused QKV projection: one (M,H)@(H,3H) bf16 matmul, f32 accumulation,
    # single fused bias add.
    qkv = jnp.dot(h1.astype(jnp.bfloat16), wqkv_ref[...],
                  preferred_element_type=jnp.float32) + bqkv_ref[...]   # (M, 3H)

    # Fold heads into the leading (batch) axis so attention runs as ONE
    # batched matmul pair over nh*TB instead of nh unrolled tiny matmuls.
    def split_heads(t):   # (M, H) -> (num_heads*TB, S, head_dim), head-major
        parts = [t[:, h * head_dim:(h + 1) * head_dim].reshape(TB, S, head_dim)
                 for h in range(num_heads)]
        return jnp.concatenate(parts, axis=0).astype(jnp.bfloat16)

    q = split_heads(qkv[:, :H])
    k = split_heads(qkv[:, H:2 * H])
    v = split_heads(qkv[:, 2 * H:])

    scale = 1.0 / math.sqrt(head_dim)
    # scores: contract last dims directly (no explicit transpose), batched
    # over (head, batch-row).
    s = jax.lax.dot_general(
        q, k, dimension_numbers=(((2,), (2,)), ((0,), (0,))),
        preferred_element_type=jnp.float32) * scale          # (nh*TB, S, S)
    s = s - jnp.max(s, axis=-1, keepdims=True)
    e = jnp.exp(s)
    w = e * pl.reciprocal(jnp.sum(e, axis=-1, keepdims=True), approx=True)

    ctx = jax.lax.dot_general(
        w.astype(jnp.bfloat16), v,
        dimension_numbers=(((2,), (1,)), ((0,), (0,))),
        preferred_element_type=jnp.float32)                   # (nh*TB, S, dh)

    # Output projection fused over the head axis: contract each head's ctx
    # against its (dh, H) slice of wo (kept as (nh, dh, H)) and reduce over
    # heads — same FLOPs as concat + (H,H) matmul, but no lane-offset concat.
    ctx = ctx.reshape(num_heads, M, head_dim).astype(jnp.bfloat16)
    per_head = jax.lax.dot_general(
        ctx, wo_ref[...],
        dimension_numbers=(((2,), (1,)), ((0,), (0,))),
        preferred_element_type=jnp.float32)                   # (nh, M, H)
    attn = jnp.sum(per_head, axis=0) + bo_ref[...]
    x = x + attn

    # --- Feed-forward on LN2(x) ---
    h2 = _layer_norm(x, g2_ref[...], b2_ref[...], LN_EPS)
    f = jnp.dot(h2.astype(jnp.bfloat16), w1_ref[...],
                preferred_element_type=jnp.float32) + bf1_ref[...]
    # Exact (erf) GELU: matches PyTorch nn.GELU default.
    f = 0.5 * f * (1.0 + jax.lax.erf(f * (1.0 / math.sqrt(2.0))))
    f = jnp.dot(f.astype(jnp.bfloat16), w2_ref[...],
                preferred_element_type=jnp.float32) + bf2_ref[...]
    x = x + f

    o_ref[...] = x.reshape(TB, S, H).astype(o_ref.dtype)


def _vmem_limit_bytes():
    # Explicit scoped-VMEM limit: default scoped limits (16 MiB v5e / 32 MiB
    # v6e,v7x) are the first thing that breaks with resident weights at scale.
    try:
        cap = pltpu.get_tpu_info().vmem_capacity_bytes
    except Exception:
        cap = 64 << 20          # conservative (v7x per-TC physical)
    return min((cap * 3) // 4, 100 << 20)


def run_encoder_layer(x_emb_bf16, p, *, buffered_weights=True):
    """x_emb_bf16: (B, S, H) bfloat16 — token+position embeddings (pre-LayerNorm)."""
    B, S, H = x_emb_bf16.shape
    nh, _, dh = p["wq"].shape

    # --- pack weights for the kernel (matmul weights in bf16) ---
    def per_head_to_fused(w):            # (nh, H, dh) -> (H, nh*dh)
        return w.transpose(1, 0, 2).reshape(H, nh * dh)

    wqkv = jnp.concatenate([per_head_to_fused(p["wq"]),
                            per_head_to_fused(p["wk"]),
                            per_head_to_fused(p["wv"])],
                           axis=-1).astype(jnp.bfloat16)        # (H, 3H)
    bqkv = jnp.concatenate([p["bq"].reshape(1, nh * dh),
                            p["bk"].reshape(1, nh * dh),
                            p["bv"].reshape(1, nh * dh)],
                           axis=-1).astype(jnp.float32)         # (1, 3H)
    wo = p["wo"].astype(jnp.bfloat16)                           # (nh, dh, H)
    w1 = p["w1"].astype(jnp.bfloat16)                           # (H, I)
    w2 = p["w2"].astype(jnp.bfloat16)                           # (I, H)

    weights = [p["ln_e_g"], p["ln_e_b"], p["ln1_g"], p["ln1_b"],
               wqkv, bqkv, wo, p["bo"], p["ln2_g"], p["ln2_b"],
               w1, p["bf1"], w2, p["bf2"]]

    # Rows per grid step: M = TB*S ~ 256 amortizes grid-step overhead while
    # staying inside v7x's VMEM budget; cap TB at B//2 so the 'parallel' grid
    # axis has >= 2 steps and both v7x TensorCores are used.
    TB = math.gcd(B, max(1, 256 // S))
    if B >= 2:
        TB = math.gcd(TB, B // 2)

    def weight_spec(a):
        nd = a.ndim
        imap = lambda b, _nd=nd: (0,) * _nd
        if buffered_weights and hasattr(pl, "Buffered"):
            # Constant-index resident weights: single-buffer to halve VMEM use.
            return pl.BlockSpec(a.shape, imap, pipeline_mode=pl.Buffered(1))
        return pl.BlockSpec(a.shape, imap)

    in_specs = ([pl.BlockSpec((TB, S, H), lambda b: (b, 0, 0))]
                + [weight_spec(w) for w in weights])
    out_specs = pl.BlockSpec((TB, S, H), lambda b: (b, 0, 0))

    kernel = functools.partial(encoder_layer_kernel, num_heads=nh, head_dim=dh)

    return pl.pallas_call(
        kernel,
        out_shape=jax.ShapeDtypeStruct((B, S, H), jnp.float32),
        grid_spec=pltpu.PrefetchScalarGridSpec(
            num_scalar_prefetch=0,
            grid=(B // TB,),
            in_specs=in_specs,
            out_specs=out_specs,
        ),
        compiler_params=pltpu.CompilerParams(
            dimension_semantics=("parallel",),
            vmem_limit_bytes=int(_vmem_limit_bytes())),
    )(x_emb_bf16, *weights)


def transformer_encoder(input_ids, p):
    # Embedding gather is glue (plain JAX); LayerNorm + encoder layer run in Pallas.
    S = input_ids.shape[1]
    tok = jnp.take(p["tok_emb"], input_ids, axis=0)             # (B, S, H)
    pos = p["pos_emb"][:S][None]                                # (1, S, H)
    x_emb = (tok + pos).astype(jnp.bfloat16)                    # stream activations in bf16
    try:
        return run_encoder_layer(x_emb, p, buffered_weights=True)
    except Exception:
        # Fallback if this JAX build rejects pipeline_mode=pl.Buffered(1).
        return run_encoder_layer(x_emb, p, buffered_weights=False)


def reference(input_ids, p):
    # Pure-JAX f32 reference mirroring the PyTorch math.
    S = input_ids.shape[1]
    x_emb = jnp.take(p["tok_emb"], input_ids, axis=0) + p["pos_emb"][:S][None]
    x = _layer_norm(x_emb, p["ln_e_g"], p["ln_e_b"], LN_EPS_EMB)
    h1 = _layer_norm(x, p["ln1_g"], p["ln1_b"], LN_EPS)
    nh, _, dh = p["wq"].shape
    attn = jnp.zeros_like(x)
    for h in range(nh):
        q = h1 @ p["wq"][h] + p["bq"][h]
        k = h1 @ p["wk"][h] + p["bk"][h]
        v = h1 @ p["wv"][h] + p["bv"][h]
        s = jnp.einsum("bqd,bkd->bqk", q, k) / math.sqrt(dh)
        w = jax.nn.softmax(s, axis=-1)
        ctx = jnp.einsum("bqk,bkd->bqd", w, v)
        attn = attn + ctx @ p["wo"][h]
    x = x + attn + p["bo"]
    h2 = _layer_norm(x, p["ln2_g"], p["ln2_b"], LN_EPS)
    f = h2 @ p["w1"] + p["bf1"]
    f = 0.5 * f * (1.0 + jax.lax.erf(f * (1.0 / math.sqrt(2.0))))
    f = f @ p["w2"] + p["bf2"]
    return x + f


def init_params(key, vocab, max_pos, H, nh, inter):
    dh = H // nh
    ks = jax.random.split(key, 16)

    def nrm(k, shape, s=0.02):
        return (s * jax.random.normal(k, shape)).astype(jnp.float32)

    p = {
        "tok_emb": nrm(ks[0], (vocab, H)),
        "pos_emb": nrm(ks[1], (max_pos, H)),
        "ln_e_g": jnp.ones((1, H), jnp.float32),
        "ln_e_b": jnp.zeros((1, H), jnp.float32),
        "ln1_g": jnp.ones((1, H), jnp.float32),
        "ln1_b": jnp.zeros((1, H), jnp.float32),
        "ln2_g": jnp.ones((1, H), jnp.float32),
        "ln2_b": jnp.zeros((1, H), jnp.float32),
        # per-head projections stored (nh, H, dh) so math is x @ W
        "wq": nrm(ks[2], (nh, H, dh)), "bq": nrm(ks[3], (nh, 1, dh)),
        "wk": nrm(ks[4], (nh, H, dh)), "bk": nrm(ks[5], (nh, 1, dh)),
        "wv": nrm(ks[6], (nh, H, dh)), "bv": nrm(ks[7], (nh, 1, dh)),
        # output projection stored per-head as (nh, dh, H)
        "wo": nrm(ks[8], (nh, dh, H)), "bo": nrm(ks[9], (1, H)),
        "w1": nrm(ks[10], (H, inter)), "bf1": nrm(ks[11], (1, inter)),
        "w2": nrm(ks[12], (inter, H)), "bf2": nrm(ks[13], (1, H)),
    }
    return p


if __name__ == "__main__":
    # Small synthetic, lane-dense config (stand-in for bert-base config).
    VOCAB, MAX_POS, H, NH, INTER = 100, 64, 128, 4, 256
    B, S = 2, 8

    key = jax.random.PRNGKey(0)
    k_par, k_ids = jax.random.split(key)
    params = init_params(k_par, VOCAB, MAX_POS, H, NH, INTER)
    input_ids = jax.random.randint(k_ids, (B, S), 0, VOCAB, dtype=jnp.int32)

    out = transformer_encoder(input_ids, params)
    out = jax.block_until_ready(out)

    ref = reference(input_ids, params)
    assert out.shape == (B, S, H)
    assert jnp.all(jnp.isfinite(out))
    # bf16 streamed input + bf16 matmul operands (f32 accumulation) -> slightly
    # looser tolerance vs the pure-f32 reference.
    assert jnp.allclose(out, ref, rtol=2e-2, atol=2e-2), "mismatch vs JAX reference"

    print("KERNEL_OK")
</pallas_src>

<mosaic_0001>
module attributes {stable_mosaic.version = 11 : i64} {
  func.func @encoder_layer_kernel(%arg0: i32, %arg1: memref<1x8x128xbf16, #tpu.memory_space<vmem>>, %arg2: memref<1x128xf32, #tpu.memory_space<vmem>>, %arg3: memref<1x128xf32, #tpu.memory_space<vmem>>, %arg4: memref<1x128xf32, #tpu.memory_space<vmem>>, %arg5: memref<1x128xf32, #tpu.memory_space<vmem>>, %arg6: memref<128x384xbf16, #tpu.memory_space<vmem>>, %arg7: memref<1x384xf32, #tpu.memory_space<vmem>>, %arg8: memref<4x32x128xbf16, #tpu.memory_space<vmem>>, %arg9: memref<1x128xf32, #tpu.memory_space<vmem>>, %arg10: memref<1x128xf32, #tpu.memory_space<vmem>>, %arg11: memref<1x128xf32, #tpu.memory_space<vmem>>, %arg12: memref<128x256xbf16, #tpu.memory_space<vmem>>, %arg13: memref<1x256xf32, #tpu.memory_space<vmem>>, %arg14: memref<256x128xbf16, #tpu.memory_space<vmem>>, %arg15: memref<1x128xf32, #tpu.memory_space<vmem>>, %arg16: memref<1x8x128xf32, #tpu.memory_space<vmem>>) attributes {dimension_semantics = [#tpu.dimension_semantics<parallel>], iteration_bounds = array<i64: 2>, scalar_prefetch = 0 : i64, scratch_operands = 0 : i64, tpu.core_type = #tpu.core_type<tc>, window_params = [{transform_indices = @transform_0, window_bounds = array<i64: 1, 8, 128>}, {pipeline_mode = #tpu.pipeline_mode<synchronous>, transform_indices = @transform_1, window_bounds = array<i64: 1, 128>}, {pipeline_mode = #tpu.pipeline_mode<synchronous>, transform_indices = @transform_2, window_bounds = array<i64: 1, 128>}, {pipeline_mode = #tpu.pipeline_mode<synchronous>, transform_indices = @transform_3, window_bounds = array<i64: 1, 128>}, {pipeline_mode = #tpu.pipeline_mode<synchronous>, transform_indices = @transform_4, window_bounds = array<i64: 1, 128>}, {pipeline_mode = #tpu.pipeline_mode<synchronous>, transform_indices = @transform_5, window_bounds = array<i64: 128, 384>}, {pipeline_mode = #tpu.pipeline_mode<synchronous>, transform_indices = @transform_6, window_bounds = array<i64: 1, 384>}, {pipeline_mode = #tpu.pipeline_mode<synchronous>, transform_indices = @transform_7, window_bounds = array<i64: 4, 32, 128>}, {pipeline_mode = #tpu.pipeline_mode<synchronous>, transform_indices = @transform_8, window_bounds = array<i64: 1, 128>}, {pipeline_mode = #tpu.pipeline_mode<synchronous>, transform_indices = @transform_9, window_bounds = array<i64: 1, 128>}, {pipeline_mode = #tpu.pipeline_mode<synchronous>, transform_indices = @transform_10, window_bounds = array<i64: 1, 128>}, {pipeline_mode = #tpu.pipeline_mode<synchronous>, transform_indices = @transform_11, window_bounds = array<i64: 128, 256>}, {pipeline_mode = #tpu.pipeline_mode<synchronous>, transform_indices = @transform_12, window_bounds = array<i64: 1, 256>}, {pipeline_mode = #tpu.pipeline_mode<synchronous>, transform_indices = @transform_13, window_bounds = array<i64: 256, 128>}, {pipeline_mode = #tpu.pipeline_mode<synchronous>, transform_indices = @transform_14, window_bounds = array<i64: 1, 128>}, {transform_indices = @transform_15, window_bounds = array<i64: 1, 8, 128>}]} {
    %c0 = arith.constant 0 : index
    %c0_0 = arith.constant 0 : index
    %c0_1 = arith.constant 0 : index
    %0 = vector.load %arg1[%c0, %c0_0, %c0_1] : memref<1x8x128xbf16, #tpu.memory_space<vmem>>, vector<1x8x128xbf16>
    %1 = arith.extf %0 : vector<1x8x128xbf16> to vector<1x8x128xf32>
    %2 = vector.shape_cast %1 : vector<1x8x128xf32> to vector<8x128xf32>
    %c0_2 = arith.constant 0 : index
    %c0_3 = arith.constant 0 : index
    %3 = vector.load %arg2[%c0_2, %c0_3] : memref<1x128xf32, #tpu.memory_space<vmem>>, vector<1x128xf32>
    %c0_4 = arith.constant 0 : index
    %c0_5 = arith.constant 0 : index
    %4 = vector.load %arg3[%c0_4, %c0_5] : memref<1x128xf32, #tpu.memory_space<vmem>>, vector<1x128xf32>
    %cst = arith.constant dense<0.000000e+00> : vector<8xf32>
    %5 = vector.multi_reduction <add>, %2, %cst [1] : vector<8x128xf32> to vector<8xf32>
    %6 = vector.shape_cast %5 : vector<8xf32> to vector<8x1xf32>
    %cst_6 = arith.constant 1.280000e+02 : f32
    %7 = vector.broadcast %cst_6 : f32 to vector<8x1xf32>
    %8 = arith.divf %6, %7 : vector<8x1xf32>
    %9 = vector.broadcast %8 : vector<8x1xf32> to vector<8x128xf32>
    %10 = arith.subf %2, %9 : vector<8x128xf32>
    %11 = arith.mulf %10, %10 : vector<8x128xf32>
    %cst_7 = arith.constant dense<0.000000e+00> : vector<8xf32>
    %12 = vector.multi_reduction <add>, %11, %cst_7 [1] : vector<8x128xf32> to vector<8xf32>
    %13 = vector.shape_cast %12 : vector<8xf32> to vector<8x1xf32>
    %cst_8 = arith.constant 1.280000e+02 : f32
    %14 = vector.broadcast %cst_8 : f32 to vector<8x1xf32>
    %15 = arith.divf %13, %14 : vector<8x1xf32>
    %16 = vector.broadcast %8 : vector<8x1xf32> to vector<8x128xf32>
    %17 = arith.subf %2, %16 : vector<8x128xf32>
    %cst_9 = arith.constant 9.99999996E-13 : f32
    %18 = vector.broadcast %cst_9 : f32 to vector<8x1xf32>
    %19 = arith.addf %15, %18 : vector<8x1xf32>
    %20 = math.rsqrt %19 : vector<8x1xf32>
    %21 = vector.broadcast %20 : vector<8x1xf32> to vector<8x128xf32>
    %22 = arith.mulf %17, %21 : vector<8x128xf32>
    %23 = vector.broadcast %3 : vector<1x128xf32> to vector<8x128xf32>
    %24 = arith.mulf %22, %23 : vector<8x128xf32>
    %25 = vector.broadcast %4 : vector<1x128xf32> to vector<8x128xf32>
    %26 = arith.addf %24, %25 : vector<8x128xf32>
    %c0_10 = arith.constant 0 : index
    %c0_11 = arith.constant 0 : index
    %27 = vector.load %arg4[%c0_10, %c0_11] : memref<1x128xf32, #tpu.memory_space<vmem>>, vector<1x128xf32>
    %c0_12 = arith.constant 0 : index
    %c0_13 = arith.constant 0 : index
    %28 = vector.load %arg5[%c0_12, %c0_13] : memref<1x128xf32, #tpu.memory_space<vmem>>, vector<1x128xf32>
    %cst_14 = arith.constant dense<0.000000e+00> : vector<8xf32>
    %29 = vector.multi_reduction <add>, %26, %cst_14 [1] : vector<8x128xf32> to vector<8xf32>
    %30 = vector.shape_cast %29 : vector<8xf32> to vector<8x1xf32>
    %cst_15 = arith.constant 1.280000e+02 : f32
    %31 = vector.broadcast %cst_15 : f32 to vector<8x1xf32>
    %32 = arith.divf %30, %31 : vector<8x1xf32>
    %33 = vector.broadcast %32 : vector<8x1xf32> to vector<8x128xf32>
    %34 = arith.subf %26, %33 : vector<8x128xf32>
    %35 = arith.mulf %34, %34 : vector<8x128xf32>
    %cst_16 = arith.constant dense<0.000000e+00> : vector<8xf32>
    %36 = vector.multi_reduction <add>, %35, %cst_16 [1] : vector<8x128xf32> to vector<8xf32>
    %37 = vector.shape_cast %36 : vector<8xf32> to vector<8x1xf32>
    %cst_17 = arith.constant 1.280000e+02 : f32
    %38 = vector.broadcast %cst_17 : f32 to vector<8x1xf32>
    %39 = arith.divf %37, %38 : vector<8x1xf32>
    %40 = vector.broadcast %32 : vector<8x1xf32> to vector<8x128xf32>
    %41 = arith.subf %26, %40 : vector<8x128xf32>
    %cst_18 = arith.constant 9.99999974E-6 : f32
    %42 = vector.broadcast %cst_18 : f32 to vector<8x1xf32>
    %43 = arith.addf %39, %42 : vector<8x1xf32>
    %44 = math.rsqrt %43 : vector<8x1xf32>
    %45 = vector.broadcast %44 : vector<8x1xf32> to vector<8x128xf32>
    %46 = arith.mulf %41, %45 : vector<8x128xf32>
    %47 = vector.broadcast %27 : vector<1x128xf32> to vector<8x128xf32>
    %48 = arith.mulf %46, %47 : vector<8x128xf32>
    %49 = vector.broadcast %28 : vector<1x128xf32> to vector<8x128xf32>
    %50 = arith.addf %48, %49 : vector<8x128xf32>
    %51 = arith.truncf %50 : vector<8x128xf32> to vector<8x128xbf16>
    %c0_19 = arith.constant 0 : index
    %c0_20 = arith.constant 0 : index
    %52 = vector.load %arg6[%c0_19, %c0_20] : memref<128x384xbf16, #tpu.memory_space<vmem>>, vector<128x384xbf16>
    %cst_21 = arith.constant dense<0.000000e+00> : vector<8x384xf32>
    %53 = tpu.matmul %51, %52, %cst_21 {dimension_numbers = #tpu.dot_dimension_numbers<[1], [0], [0], [1], [0, 0, 1, 1], [], []>} : vector<8x128xbf16>, vector<128x384xbf16>, vector<8x384xf32> -> vector<8x384xf32>
    %c0_22 = arith.constant 0 : index
    %c0_23 = arith.constant 0 : index
    %54 = vector.load %arg7[%c0_22, %c0_23] : memref<1x384xf32, #tpu.memory_space<vmem>>, vector<1x384xf32>
    %55 = vector.broadcast %54 : vector<1x384xf32> to vector<8x384xf32>
    %56 = arith.addf %53, %55 : vector<8x384xf32>
    %57 = vector.extract_strided_slice %56 {offsets = [0, 0], sizes = [8, 128], strides = [1, 1]} : vector<8x384xf32> to vector<8x128xf32>
    %58 = vector.extract_strided_slice %57 {offsets = [0, 0], sizes = [8, 32], strides = [1, 1]} : vector<8x128xf32> to vector<8x32xf32>
    %59 = vector.shape_cast %58 : vector<8x32xf32> to vector<1x8x32xf32>
    %60 = vector.extract_strided_slice %57 {offsets = [0, 32], sizes = [8, 32], strides = [1, 1]} : vector<8x128xf32> to vector<8x32xf32>
    %61 = vector.shape_cast %60 : vector<8x32xf32> to vector<1x8x32xf32>
    %62 = vector.extract_strided_slice %57 {offsets = [0, 64], sizes = [8, 32], strides = [1, 1]} : vector<8x128xf32> to vector<8x32xf32>
    %63 = vector.shape_cast %62 : vector<8x32xf32> to vector<1x8x32xf32>
    %64 = vector.extract_strided_slice %57 {offsets = [0, 96], sizes = [8, 32], strides = [1, 1]} : vector<8x128xf32> to vector<8x32xf32>
    %65 = vector.shape_cast %64 : vector<8x32xf32> to vector<1x8x32xf32>
    %66 = tpu.concatenate %59, %61, %63, %65 in 0 : vector<1x8x32xf32>, vector<1x8x32xf32>, vector<1x8x32xf32>, vector<1x8x32xf32> -> vector<4x8x32xf32>
    %67 = arith.truncf %66 : vector<4x8x32xf32> to vector<4x8x32xbf16>
    %68 = vector.extract_strided_slice %56 {offsets = [0, 128], sizes = [8, 128], strides = [1, 1]} : vector<8x384xf32> to vector<8x128xf32>
    %69 = vector.extract_strided_slice %68 {offsets = [0, 0], sizes = [8, 32], strides = [1, 1]} : vector<8x128xf32> to vector<8x32xf32>
    %70 = vector.shape_cast %69 : vector<8x32xf32> to vector<1x8x32xf32>
    %71 = vector.extract_strided_slice %68 {offsets = [0, 32], sizes = [8, 32], strides = [1, 1]} : vector<8x128xf32> to vector<8x32xf32>
    %72 = vector.shape_cast %71 : vector<8x32xf32> to vector<1x8x32xf32>
    %73 = vector.extract_strided_slice %68 {offsets = [0, 64], sizes = [8, 32], strides = [1, 1]} : vector<8x128xf32> to vector<8x32xf32>
    %74 = vector.shape_cast %73 : vector<8x32xf32> to vector<1x8x32xf32>
    %75 = vector.extract_strided_slice %68 {offsets = [0, 96], sizes = [8, 32], strides = [1, 1]} : vector<8x128xf32> to vector<8x32xf32>
    %76 = vector.shape_cast %75 : vector<8x32xf32> to vector<1x8x32xf32>
    %77 = tpu.concatenate %70, %72, %74, %76 in 0 : vector<1x8x32xf32>, vector<1x8x32xf32>, vector<1x8x32xf32>, vector<1x8x32xf32> -> vector<4x8x32xf32>
    %78 = arith.truncf %77 : vector<4x8x32xf32> to vector<4x8x32xbf16>
    %79 = vector.extract_strided_slice %56 {offsets = [0, 256], sizes = [8, 128], strides = [1, 1]} : vector<8x384xf32> to vector<8x128xf32>
    %80 = vector.extract_strided_slice %79 {offsets = [0, 0], sizes = [8, 32], strides = [1, 1]} : vector<8x128xf32> to vector<8x32xf32>
    %81 = vector.shape_cast %80 : vector<8x32xf32> to vector<1x8x32xf32>
    %82 = vector.extract_strided_slice %79 {offsets = [0, 32], sizes = [8, 32], strides = [1, 1]} : vector<8x128xf32> to vector<8x32xf32>
    %83 = vector.shape_cast %82 : vector<8x32xf32> to vector<1x8x32xf32>
    %84 = vector.extract_strided_slice %79 {offsets = [0, 64], sizes = [8, 32], strides = [1, 1]} : vector<8x128xf32> to vector<8x32xf32>
    %85 = vector.shape_cast %84 : vector<8x32xf32> to vector<1x8x32xf32>
    %86 = vector.extract_strided_slice %79 {offsets = [0, 96], sizes = [8, 32], strides = [1, 1]} : vector<8x128xf32> to vector<8x32xf32>
    %87 = vector.shape_cast %86 : vector<8x32xf32> to vector<1x8x32xf32>
    %88 = tpu.concatenate %81, %83, %85, %87 in 0 : vector<1x8x32xf32>, vector<1x8x32xf32>, vector<1x8x32xf32>, vector<1x8x32xf32> -> vector<4x8x32xf32>
    %89 = arith.truncf %88 : vector<4x8x32xf32> to vector<4x8x32xbf16>
    %cst_24 = arith.constant dense<0.000000e+00> : vector<4x8x8xf32>
    %90 = tpu.matmul %67, %78, %cst_24 {dimension_numbers = #tpu.dot_dimension_numbers<[2], [2], [1], [1], [0, 0, 0, 1, 1, 1], [0], [0]>} : vector<4x8x32xbf16>, vector<4x8x32xbf16>, vector<4x8x8xf32> -> vector<4x8x8xf32>
    %cst_25 = arith.constant 0.176776692 : f32
    %91 = vector.broadcast %cst_25 : f32 to vector<4x8x8xf32>
    %92 = arith.mulf %90, %91 : vector<4x8x8xf32>
    %cst_26 = arith.constant dense<0xFF800000> : vector<4x8xf32>
    %93 = vector.multi_reduction <maximumf>, %92, %cst_26 [2] : vector<4x8x8xf32> to vector<4x8xf32>
    %94 = vector.shape_cast %93 : vector<4x8xf32> to vector<4x8x1xf32>
    %95 = vector.broadcast %94 : vector<4x8x1xf32> to vector<4x8x8xf32>
    %96 = arith.subf %92, %95 : vector<4x8x8xf32>
    %97 = math.exp %96 : vector<4x8x8xf32>
    %cst_27 = arith.constant dense<0.000000e+00> : vector<4x8xf32>
    %98 = vector.multi_reduction <add>, %97, %cst_27 [2] : vector<4x8x8xf32> to vector<4x8xf32>
    %99 = vector.shape_cast %98 : vector<4x8xf32> to vector<4x8x1xf32>
    %100 = tpu.reciprocal %99 {approx = true} : vector<4x8x1xf32> -> vector<4x8x1xf32>
    %101 = vector.broadcast %100 : vector<4x8x1xf32> to vector<4x8x8xf32>
    %102 = arith.mulf %97, %101 : vector<4x8x8xf32>
    %103 = arith.truncf %102 : vector<4x8x8xf32> to vector<4x8x8xbf16>
    %cst_28 = arith.constant dense<0.000000e+00> : vector<4x8x32xf32>
    %104 = tpu.matmul %103, %89, %cst_28 {dimension_numbers = #tpu.dot_dimension_numbers<[2], [1], [1], [2], [0, 0, 0, 1, 1, 2], [0], [0]>} : vector<4x8x8xbf16>, vector<4x8x32xbf16>, vector<4x8x32xf32> -> vector<4x8x32xf32>
    %105 = arith.truncf %104 : vector<4x8x32xf32> to vector<4x8x32xbf16>
    %c0_29 = arith.constant 0 : index
    %c0_30 = arith.constant 0 : index
    %c0_31 = arith.constant 0 : index
    %106 = vector.load %arg8[%c0_29, %c0_30, %c0_31] : memref<4x32x128xbf16, #tpu.memory_space<vmem>>, vector<4x32x128xbf16>
    %cst_32 = arith.constant dense<0.000000e+00> : vector<4x8x128xf32>
    %107 = tpu.matmul %105, %106, %cst_32 {dimension_numbers = #tpu.dot_dimension_numbers<[2], [1], [1], [2], [0, 0, 0, 1, 1, 2], [0], [0]>} : vector<4x8x32xbf16>, vector<4x32x128xbf16>, vector<4x8x128xf32> -> vector<4x8x128xf32>
    %cst_33 = arith.constant dense<0.000000e+00> : vector<8x128xf32>
    %108 = vector.multi_reduction <add>, %107, %cst_33 [0] : vector<4x8x128xf32> to vector<8x128xf32>
    %c0_34 = arith.constant 0 : index
    %c0_35 = arith.constant 0 : index
    %109 = vector.load %arg9[%c0_34, %c0_35] : memref<1x128xf32, #tpu.memory_space<vmem>>, vector<1x128xf32>
    %110 = vector.broadcast %109 : vector<1x128xf32> to vector<8x128xf32>
    %111 = arith.addf %108, %110 : vector<8x128xf32>
    %112 = arith.addf %26, %111 : vector<8x128xf32>
    %c0_36 = arith.constant 0 : index
    %c0_37 = arith.constant 0 : index
    %113 = vector.load %arg10[%c0_36, %c0_37] : memref<1x128xf32, #tpu.memory_space<vmem>>, vector<1x128xf32>
    %c0_38 = arith.constant 0 : index
    %c0_39 = arith.constant 0 : index
    %114 = vector.load %arg11[%c0_38, %c0_39] : memref<1x128xf32, #tpu.memory_space<vmem>>, vector<1x128xf32>
    %cst_40 = arith.constant dense<0.000000e+00> : vector<8xf32>
    %115 = vector.multi_reduction <add>, %112, %cst_40 [1] : vector<8x128xf32> to vector<8xf32>
    %116 = vector.shape_cast %115 : vector<8xf32> to vector<8x1xf32>
    %cst_41 = arith.constant 1.280000e+02 : f32
    %117 = vector.broadcast %cst_41 : f32 to vector<8x1xf32>
    %118 = arith.divf %116, %117 : vector<8x1xf32>
    %119 = vector.broadcast %118 : vector<8x1xf32> to vector<8x128xf32>
    %120 = arith.subf %112, %119 : vector<8x128xf32>
    %121 = arith.mulf %120, %120 : vector<8x128xf32>
    %cst_42 = arith.constant dense<0.000000e+00> : vector<8xf32>
    %122 = vector.multi_reduction <add>, %121, %cst_42 [1] : vector<8x128xf32> to vector<8xf32>
    %123 = vector.shape_cast %122 : vector<8xf32> to vector<8x1xf32>
    %cst_43 = arith.constant 1.280000e+02 : f32
    %124 = vector.broadcast %cst_43 : f32 to vector<8x1xf32>
    %125 = arith.divf %123, %124 : vector<8x1xf32>
    %126 = vector.broadcast %118 : vector<8x1xf32> to vector<8x128xf32>
    %127 = arith.subf %112, %126 : vector<8x128xf32>
    %cst_44 = arith.constant 9.99999974E-6 : f32
    %128 = vector.broadcast %cst_44 : f32 to vector<8x1xf32>
    %129 = arith.addf %125, %128 : vector<8x1xf32>
    %130 = math.rsqrt %129 : vector<8x1xf32>
    %131 = vector.broadcast %130 : vector<8x1xf32> to vector<8x128xf32>
    %132 = arith.mulf %127, %131 : vector<8x128xf32>
    %133 = vector.broadcast %113 : vector<1x128xf32> to vector<8x128xf32>
    %134 = arith.mulf %132, %133 : vector<8x128xf32>
    %135 = vector.broadcast %114 : vector<1x128xf32> to vector<8x128xf32>
    %136 = arith.addf %134, %135 : vector<8x128xf32>
    %137 = arith.truncf %136 : vector<8x128xf32> to vector<8x128xbf16>
    %c0_45 = arith.constant 0 : index
    %c0_46 = arith.constant 0 : index
    %138 = vector.load %arg12[%c0_45, %c0_46] : memref<128x256xbf16, #tpu.memory_space<vmem>>, vector<128x256xbf16>
    %cst_47 = arith.constant dense<0.000000e+00> : vector<8x256xf32>
    %139 = tpu.matmul %137, %138, %cst_47 {dimension_numbers = #tpu.dot_dimension_numbers<[1], [0], [0], [1], [0, 0, 1, 1], [], []>} : vector<8x128xbf16>, vector<128x256xbf16>, vector<8x256xf32> -> vector<8x256xf32>
    %c0_48 = arith.constant 0 : index
    %c0_49 = arith.constant 0 : index
    %140 = vector.load %arg13[%c0_48, %c0_49] : memref<1x256xf32, #tpu.memory_space<vmem>>, vector<1x256xf32>
    %141 = vector.broadcast %140 : vector<1x256xf32> to vector<8x256xf32>
    %142 = arith.addf %139, %141 : vector<8x256xf32>
    %cst_50 = arith.constant 5.000000e-01 : f32
    %143 = vector.broadcast %cst_50 : f32 to vector<8x256xf32>
    %144 = arith.mulf %143, %142 : vector<8x256xf32>
    %cst_51 = arith.constant 0.707106769 : f32
    %145 = vector.broadcast %cst_51 : f32 to vector<8x256xf32>
    %146 = arith.mulf %142, %145 : vector<8x256xf32>
    %147 = math.erf %146 : vector<8x256xf32>
    %cst_52 = arith.constant 1.000000e+00 : f32
    %148 = vector.broadcast %cst_52 : f32 to vector<8x256xf32>
    %149 = arith.addf %148, %147 : vector<8x256xf32>
    %150 = arith.mulf %144, %149 : vector<8x256xf32>
    %151 = arith.truncf %150 : vector<8x256xf32> to vector<8x256xbf16>
    %c0_53 = arith.constant 0 : index
    %c0_54 = arith.constant 0 : index
    %152 = vector.load %arg14[%c0_53, %c0_54] : memref<256x128xbf16, #tpu.memory_space<vmem>>, vector<256x128xbf16>
    %cst_55 = arith.constant dense<0.000000e+00> : vector<8x128xf32>
    %153 = tpu.matmul %151, %152, %cst_55 {dimension_numbers = #tpu.dot_dimension_numbers<[1], [0], [0], [1], [0, 0, 1, 1], [], []>} : vector<8x256xbf16>, vector<256x128xbf16>, vector<8x128xf32> -> vector<8x128xf32>
    %c0_56 = arith.constant 0 : index
    %c0_57 = arith.constant 0 : index
    %154 = vector.load %arg15[%c0_56, %c0_57] : memref<1x128xf32, #tpu.memory_space<vmem>>, vector<1x128xf32>
    %155 = vector.broadcast %154 : vector<1x128xf32> to vector<8x128xf32>
    %156 = arith.addf %153, %155 : vector<8x128xf32>
    %157 = arith.addf %112, %156 : vector<8x128xf32>
    %158 = vector.shape_cast %157 : vector<8x128xf32> to vector<1x8x128xf32>
    %c0_58 = arith.constant 0 : index
    %c0_59 = arith.constant 0 : index
    %c0_60 = arith.constant 0 : index
    %159 = vector.load %arg16[%c0_58, %c0_59, %c0_60] : memref<1x8x128xf32, #tpu.memory_space<vmem>>, vector<1x8x128xf32>
    tpu.vector_store %arg16[%c0_58, %c0_59, %c0_60], %158 {strides = array<i32>} : memref<1x8x128xf32, #tpu.memory_space<vmem>>, vector<1x8x128xf32>,
    return
  }
  func.func @transform_0(%arg0: i32) -> (i32, i32, i32) {
    %c0_i32 = arith.constant 0 : i32
    %c0_i32_0 = arith.constant 0 : i32
    %c0_i32_1 = arith.constant 0 : i32
    return %arg0, %c0_i32, %c0_i32_0 : i32, i32, i32
  }
  func.func @transform_1(%arg0: i32) -> (i32, i32) {
    %c0_i32 = arith.constant 0 : i32
    %c0_i32_0 = arith.constant 0 : i32
    %c0_i32_1 = arith.constant 0 : i32
    return %c0_i32, %c0_i32_0 : i32, i32
  }
  func.func @transform_2(%arg0: i32) -> (i32, i32) {
    %c0_i32 = arith.constant 0 : i32
    %c0_i32_0 = arith.constant 0 : i32
    %c0_i32_1 = arith.constant 0 : i32
    return %c0_i32, %c0_i32_0 : i32, i32
  }
  func.func @transform_3(%arg0: i32) -> (i32, i32) {
    %c0_i32 = arith.constant 0 : i32
    %c0_i32_0 = arith.constant 0 : i32
    %c0_i32_1 = arith.constant 0 : i32
    return %c0_i32, %c0_i32_0 : i32, i32
  }
  func.func @transform_4(%arg0: i32) -> (i32, i32) {
    %c0_i32 = arith.constant 0 : i32
    %c0_i32_0 = arith.constant 0 : i32
    %c0_i32_1 = arith.constant 0 : i32
    return %c0_i32, %c0_i32_0 : i32, i32
  }
  func.func @transform_5(%arg0: i32) -> (i32, i32) {
    %c0_i32 = arith.constant 0 : i32
    %c0_i32_0 = arith.constant 0 : i32
    %c0_i32_1 = arith.constant 0 : i32
    return %c0_i32, %c0_i32_0 : i32, i32
  }
  func.func @transform_6(%arg0: i32) -> (i32, i32) {
    %c0_i32 = arith.constant 0 : i32
    %c0_i32_0 = arith.constant 0 : i32
    %c0_i32_1 = arith.constant 0 : i32
    return %c0_i32, %c0_i32_0 : i32, i32
  }
  func.func @transform_7(%arg0: i32) -> (i32, i32, i32) {
    %c0_i32 = arith.constant 0 : i32
    %c0_i32_0 = arith.constant 0 : i32
    %c0_i32_1 = arith.constant 0 : i32
    %c0_i32_2 = arith.constant 0 : i32
    return %c0_i32, %c0_i32_0, %c0_i32_1 : i32, i32, i32
  }
  func.func @transform_8(%arg0: i32) -> (i32, i32) {
    %c0_i32 = arith.constant 0 : i32
    %c0_i32_0 = arith.constant 0 : i32
    %c0_i32_1 = arith.constant 0 : i32
    return %c0_i32, %c0_i32_0 : i32, i32
  }
  func.func @transform_9(%arg0: i32) -> (i32, i32) {
    %c0_i32 = arith.constant 0 : i32
    %c0_i32_0 = arith.constant 0 : i32
    %c0_i32_1 = arith.constant 0 : i32
    return %c0_i32, %c0_i32_0 : i32, i32
  }
  func.func @transform_10(%arg0: i32) -> (i32, i32) {
    %c0_i32 = arith.constant 0 : i32
    %c0_i32_0 = arith.constant 0 : i32
    %c0_i32_1 = arith.constant 0 : i32
    return %c0_i32, %c0_i32_0 : i32, i32
  }
  func.func @transform_11(%arg0: i32) -> (i32, i32) {
    %c0_i32 = arith.constant 0 : i32
    %c0_i32_0 = arith.constant 0 : i32
    %c0_i32_1 = arith.constant 0 : i32
    return %c0_i32, %c0_i32_0 : i32, i32
  }
  func.func @transform_12(%arg0: i32) -> (i32, i32) {
    %c0_i32 = arith.constant 0 : i32
    %c0_i32_0 = arith.constant 0 : i32
    %c0_i32_1 = arith.constant 0 : i32
    return %c0_i32, %c0_i32_0 : i32, i32
  }
  func.func @transform_13(%arg0: i32) -> (i32, i32) {
    %c0_i32 = arith.constant 0 : i32
    %c0_i32_0 = arith.constant 0 : i32
    %c0_i32_1 = arith.constant 0 : i32
    return %c0_i32, %c0_i32_0 : i32, i32
  }
  func.func @transform_14(%arg0: i32) -> (i32, i32) {
    %c0_i32 = arith.constant 0 : i32
    %c0_i32_0 = arith.constant 0 : i32
    %c0_i32_1 = arith.constant 0 : i32
    return %c0_i32, %c0_i32_0 : i32, i32
  }
  func.func @transform_15(%arg0: i32) -> (i32, i32, i32) {
    %c0_i32 = arith.constant 0 : i32
    %c0_i32_0 = arith.constant 0 : i32
    %c0_i32_1 = arith.constant 0 : i32
    return %arg0, %c0_i32, %c0_i32_0 : i32, i32, i32
  }
}

module attributes {stable_mosaic.version = 11 : i64} {
  func.func @encoder_layer_kernel(%arg0: i32, %arg1: memref<1x8x128xbf16, #tpu.memory_space<vmem>>, %arg2: memref<1x128xf32, #tpu.memory_space<vmem>>, %arg3: memref<1x128xf32, #tpu.memory_space<vmem>>, %arg4: memref<1x128xf32, #tpu.memory_space<vmem>>, %arg5: memref<1x128xf32, #tpu.memory_space<vmem>>, %arg6: memref<128x384xbf16, #tpu.memory_space<vmem>>, %arg7: memref<1x384xf32, #tpu.memory_space<vmem>>, %arg8: memref<4x32x128xbf16, #tpu.memory_space<vmem>>, %arg9: memref<1x128xf32, #tpu.memory_space<vmem>>, %arg10: memref<1x128xf32, #tpu.memory_space<vmem>>, %arg11: memref<1x128xf32, #tpu.memory_space<vmem>>, %arg12: memref<128x256xbf16, #tpu.memory_space<vmem>>, %arg13: memref<1x256xf32, #tpu.memory_space<vmem>>, %arg14: memref<256x128xbf16, #tpu.memory_space<vmem>>, %arg15: memref<1x128xf32, #tpu.memory_space<vmem>>, %arg16: memref<1x8x128xf32, #tpu.memory_space<vmem>>) attributes {dimension_semantics = [#tpu.dimension_semantics<parallel>], iteration_bounds = array<i64: 2>, scalar_prefetch = 0 : i64, scratch_operands = 0 : i64, tpu.core_type = #tpu.core_type<tc>, window_params = [{transform_indices = @transform_0, window_bounds = array<i64: 1, 8, 128>}, {pipeline_mode = #tpu.pipeline_mode<synchronous>, transform_indices = @transform_1, window_bounds = array<i64: 1, 128>}, {pipeline_mode = #tpu.pipeline_mode<synchronous>, transform_indices = @transform_2, window_bounds = array<i64: 1, 128>}, {pipeline_mode = #tpu.pipeline_mode<synchronous>, transform_indices = @transform_3, window_bounds = array<i64: 1, 128>}, {pipeline_mode = #tpu.pipeline_mode<synchronous>, transform_indices = @transform_4, window_bounds = array<i64: 1, 128>}, {pipeline_mode = #tpu.pipeline_mode<synchronous>, transform_indices = @transform_5, window_bounds = array<i64: 128, 384>}, {pipeline_mode = #tpu.pipeline_mode<synchronous>, transform_indices = @transform_6, window_bounds = array<i64: 1, 384>}, {pipeline_mode = #tpu.pipeline_mode<synchronous>, transform_indices = @transform_7, window_bounds = array<i64: 4, 32, 128>}, {pipeline_mode = #tpu.pipeline_mode<synchronous>, transform_indices = @transform_8, window_bounds = array<i64: 1, 128>}, {pipeline_mode = #tpu.pipeline_mode<synchronous>, transform_indices = @transform_9, window_bounds = array<i64: 1, 128>}, {pipeline_mode = #tpu.pipeline_mode<synchronous>, transform_indices = @transform_10, window_bounds = array<i64: 1, 128>}, {pipeline_mode = #tpu.pipeline_mode<synchronous>, transform_indices = @transform_11, window_bounds = array<i64: 128, 256>}, {pipeline_mode = #tpu.pipeline_mode<synchronous>, transform_indices = @transform_12, window_bounds = array<i64: 1, 256>}, {pipeline_mode = #tpu.pipeline_mode<synchronous>, transform_indices = @transform_13, window_bounds = array<i64: 256, 128>}, {pipeline_mode = #tpu.pipeline_mode<synchronous>, transform_indices = @transform_14, window_bounds = array<i64: 1, 128>}, {transform_indices = @transform_15, window_bounds = array<i64: 1, 8, 128>}]} {
    %c0 = arith.constant 0 : index
    %c0_0 = arith.constant 0 : index
    %c0_1 = arith.constant 0 : index
    %0 = vector.load %arg1[%c0, %c0_0, %c0_1] : memref<1x8x128xbf16, #tpu.memory_space<vmem>>, vector<1x8x128xbf16>
    %1 = arith.extf %0 : vector<1x8x128xbf16> to vector<1x8x128xf32>
    %2 = vector.shape_cast %1 : vector<1x8x128xf32> to vector<8x128xf32>
    %c0_2 = arith.constant 0 : index
    %c0_3 = arith.constant 0 : index
    %3 = vector.load %arg2[%c0_2, %c0_3] : memref<1x128xf32, #tpu.memory_space<vmem>>, vector<1x128xf32>
    %c0_4 = arith.constant 0 : index
    %c0_5 = arith.constant 0 : index
    %4 = vector.load %arg3[%c0_4, %c0_5] : memref<1x128xf32, #tpu.memory_space<vmem>>, vector<1x128xf32>
    %cst = arith.constant dense<0.000000e+00> : vector<8xf32>
    %5 = vector.multi_reduction <add>, %2, %cst [1] : vector<8x128xf32> to vector<8xf32>
    %6 = vector.shape_cast %5 : vector<8xf32> to vector<8x1xf32>
    %cst_6 = arith.constant 1.280000e+02 : f32
    %7 = vector.broadcast %cst_6 : f32 to vector<8x1xf32>
    %8 = arith.divf %6, %7 : vector<8x1xf32>
    %9 = vector.broadcast %8 : vector<8x1xf32> to vector<8x128xf32>
    %10 = arith.subf %2, %9 : vector<8x128xf32>
    %11 = arith.mulf %10, %10 : vector<8x128xf32>
    %cst_7 = arith.constant dense<0.000000e+00> : vector<8xf32>
    %12 = vector.multi_reduction <add>, %11, %cst_7 [1] : vector<8x128xf32> to vector<8xf32>
    %13 = vector.shape_cast %12 : vector<8xf32> to vector<8x1xf32>
    %cst_8 = arith.constant 1.280000e+02 : f32
    %14 = vector.broadcast %cst_8 : f32 to vector<8x1xf32>
    %15 = arith.divf %13, %14 : vector<8x1xf32>
    %16 = vector.broadcast %8 : vector<8x1xf32> to vector<8x128xf32>
    %17 = arith.subf %2, %16 : vector<8x128xf32>
    %cst_9 = arith.constant 9.99999996E-13 : f32
    %18 = vector.broadcast %cst_9 : f32 to vector<8x1xf32>
    %19 = arith.addf %15, %18 : vector<8x1xf32>
    %20 = math.rsqrt %19 : vector<8x1xf32>
    %21 = vector.broadcast %20 : vector<8x1xf32> to vector<8x128xf32>
    %22 = arith.mulf %17, %21 : vector<8x128xf32>
    %23 = vector.broadcast %3 : vector<1x128xf32> to vector<8x128xf32>
    %24 = arith.mulf %22, %23 : vector<8x128xf32>
    %25 = vector.broadcast %4 : vector<1x128xf32> to vector<8x128xf32>
    %26 = arith.addf %24, %25 : vector<8x128xf32>
    %c0_10 = arith.constant 0 : index
    %c0_11 = arith.constant 0 : index
    %27 = vector.load %arg4[%c0_10, %c0_11] : memref<1x128xf32, #tpu.memory_space<vmem>>, vector<1x128xf32>
    %c0_12 = arith.constant 0 : index
    %c0_13 = arith.constant 0 : index
    %28 = vector.load %arg5[%c0_12, %c0_13] : memref<1x128xf32, #tpu.memory_space<vmem>>, vector<1x128xf32>
    %cst_14 = arith.constant dense<0.000000e+00> : vector<8xf32>
    %29 = vector.multi_reduction <add>, %26, %cst_14 [1] : vector<8x128xf32> to vector<8xf32>
    %30 = vector.shape_cast %29 : vector<8xf32> to vector<8x1xf32>
    %cst_15 = arith.constant 1.280000e+02 : f32
    %31 = vector.broadcast %cst_15 : f32 to vector<8x1xf32>
    %32 = arith.divf %30, %31 : vector<8x1xf32>
    %33 = vector.broadcast %32 : vector<8x1xf32> to vector<8x128xf32>
    %34 = arith.subf %26, %33 : vector<8x128xf32>
    %35 = arith.mulf %34, %34 : vector<8x128xf32>
    %cst_16 = arith.constant dense<0.000000e+00> : vector<8xf32>
    %36 = vector.multi_reduction <add>, %35, %cst_16 [1] : vector<8x128xf32> to vector<8xf32>
    %37 = vector.shape_cast %36 : vector<8xf32> to vector<8x1xf32>
    %cst_17 = arith.constant 1.280000e+02 : f32
    %38 = vector.broadcast %cst_17 : f32 to vector<8x1xf32>
    %39 = arith.divf %37, %38 : vector<8x1xf32>
    %40 = vector.broadcast %32 : vector<8x1xf32> to vector<8x128xf32>
    %41 = arith.subf %26, %40 : vector<8x128xf32>
    %cst_18 = arith.constant 9.99999974E-6 : f32
    %42 = vector.broadcast %cst_18 : f32 to vector<8x1xf32>
    %43 = arith.addf %39, %42 : vector<8x1xf32>
    %44 = math.rsqrt %43 : vector<8x1xf32>
    %45 = vector.broadcast %44 : vector<8x1xf32> to vector<8x128xf32>
    %46 = arith.mulf %41, %45 : vector<8x128xf32>
    %47 = vector.broadcast %27 : vector<1x128xf32> to vector<8x128xf32>
    %48 = arith.mulf %46, %47 : vector<8x128xf32>
    %49 = vector.broadcast %28 : vector<1x128xf32> to vector<8x128xf32>
    %50 = arith.addf %48, %49 : vector<8x128xf32>
    %51 = arith.truncf %50 : vector<8x128xf32> to vector<8x128xbf16>
    %c0_19 = arith.constant 0 : index
    %c0_20 = arith.constant 0 : index
    %52 = vector.load %arg6[%c0_19, %c0_20] : memref<128x384xbf16, #tpu.memory_space<vmem>>, vector<128x384xbf16>
    %cst_21 = arith.constant dense<0.000000e+00> : vector<8x384xf32>
    %53 = tpu.matmul %51, %52, %cst_21 {dimension_numbers = #tpu.dot_dimension_numbers<[1], [0], [0], [1], [0, 0, 1, 1], [], []>} : vector<8x128xbf16>, vector<128x384xbf16>, vector<8x384xf32> -> vector<8x384xf32>
    %c0_22 = arith.constant 0 : index
    %c0_23 = arith.constant 0 : index
    %54 = vector.load %arg7[%c0_22, %c0_23] : memref<1x384xf32, #tpu.memory_space<vmem>>, vector<1x384xf32>
    %55 = vector.broadcast %54 : vector<1x384xf32> to vector<8x384xf32>
    %56 = arith.addf %53, %55 : vector<8x384xf32>
    %57 = vector.extract_strided_slice %56 {offsets = [0, 0], sizes = [8, 128], strides = [1, 1]} : vector<8x384xf32> to vector<8x128xf32>
    %58 = vector.extract_strided_slice %57 {offsets = [0, 0], sizes = [8, 32], strides = [1, 1]} : vector<8x128xf32> to vector<8x32xf32>
    %59 = vector.shape_cast %58 : vector<8x32xf32> to vector<1x8x32xf32>
    %60 = vector.extract_strided_slice %57 {offsets = [0, 32], sizes = [8, 32], strides = [1, 1]} : vector<8x128xf32> to vector<8x32xf32>
    %61 = vector.shape_cast %60 : vector<8x32xf32> to vector<1x8x32xf32>
    %62 = vector.extract_strided_slice %57 {offsets = [0, 64], sizes = [8, 32], strides = [1, 1]} : vector<8x128xf32> to vector<8x32xf32>
    %63 = vector.shape_cast %62 : vector<8x32xf32> to vector<1x8x32xf32>
    %64 = vector.extract_strided_slice %57 {offsets = [0, 96], sizes = [8, 32], strides = [1, 1]} : vector<8x128xf32> to vector<8x32xf32>
    %65 = vector.shape_cast %64 : vector<8x32xf32> to vector<1x8x32xf32>
    %66 = tpu.concatenate %59, %61, %63, %65 in 0 : vector<1x8x32xf32>, vector<1x8x32xf32>, vector<1x8x32xf32>, vector<1x8x32xf32> -> vector<4x8x32xf32>
    %67 = arith.truncf %66 : vector<4x8x32xf32> to vector<4x8x32xbf16>
    %68 = vector.extract_strided_slice %56 {offsets = [0, 128], sizes = [8, 128], strides = [1, 1]} : vector<8x384xf32> to vector<8x128xf32>
    %69 = vector.extract_strided_slice %68 {offsets = [0, 0], sizes = [8, 32], strides = [1, 1]} : vector<8x128xf32> to vector<8x32xf32>
    %70 = vector.shape_cast %69 : vector<8x32xf32> to vector<1x8x32xf32>
    %71 = vector.extract_strided_slice %68 {offsets = [0, 32], sizes = [8, 32], strides = [1, 1]} : vector<8x128xf32> to vector<8x32xf32>
    %72 = vector.shape_cast %71 : vector<8x32xf32> to vector<1x8x32xf32>
    %73 = vector.extract_strided_slice %68 {offsets = [0, 64], sizes = [8, 32], strides = [1, 1]} : vector<8x128xf32> to vector<8x32xf32>
    %74 = vector.shape_cast %73 : vector<8x32xf32> to vector<1x8x32xf32>
    %75 = vector.extract_strided_slice %68 {offsets = [0, 96], sizes = [8, 32], strides = [1, 1]} : vector<8x128xf32> to vector<8x32xf32>
    %76 = vector.shape_cast %75 : vector<8x32xf32> to vector<1x8x32xf32>
    %77 = tpu.concatenate %70, %72, %74, %76 in 0 : vector<1x8x32xf32>, vector<1x8x32xf32>, vector<1x8x32xf32>, vector<1x8x32xf32> -> vector<4x8x32xf32>
    %78 = arith.truncf %77 : vector<4x8x32xf32> to vector<4x8x32xbf16>
    %79 = vector.extract_strided_slice %56 {offsets = [0, 256], sizes = [8, 128], strides = [1, 1]} : vector<8x384xf32> to vector<8x128xf32>
    %80 = vector.extract_strided_slice %79 {offsets = [0, 0], sizes = [8, 32], strides = [1, 1]} : vector<8x128xf32> to vector<8x32xf32>
    %81 = vector.shape_cast %80 : vector<8x32xf32> to vector<1x8x32xf32>
    %82 = vector.extract_strided_slice %79 {offsets = [0, 32], sizes = [8, 32], strides = [1, 1]} : vector<8x128xf32> to vector<8x32xf32>
    %83 = vector.shape_cast %82 : vector<8x32xf32> to vector<1x8x32xf32>
    %84 = vector.extract_strided_slice %79 {offsets = [0, 64], sizes = [8, 32], strides = [1, 1]} : vector<8x128xf32> to vector<8x32xf32>
    %85 = vector.shape_cast %84 : vector<8x32xf32> to vector<1x8x32xf32>
    %86 = vector.extract_strided_slice %79 {offsets = [0, 96], sizes = [8, 32], strides = [1, 1]} : vector<8x128xf32> to vector<8x32xf32>
    %87 = vector.shape_cast %86 : vector<8x32xf32> to vector<1x8x32xf32>
    %88 = tpu.concatenate %81, %83, %85, %87 in 0 : vector<1x8x32xf32>, vector<1x8x32xf32>, vector<1x8x32xf32>, vector<1x8x32xf32> -> vector<4x8x32xf32>
    %89 = arith.truncf %88 : vector<4x8x32xf32> to vector<4x8x32xbf16>
    %cst_24 = arith.constant dense<0.000000e+00> : vector<4x8x8xf32>
    %90 = tpu.matmul %67, %78, %cst_24 {dimension_numbers = #tpu.dot_dimension_numbers<[2], [2], [1], [1], [0, 0, 0, 1, 1, 1], [0], [0]>} : vector<4x8x32xbf16>, vector<4x8x32xbf16>, vector<4x8x8xf32> -> vector<4x8x8xf32>
    %cst_25 = arith.constant 0.176776692 : f32
    %91 = vector.broadcast %cst_25 : f32 to vector<4x8x8xf32>
    %92 = arith.mulf %90, %91 : vector<4x8x8xf32>
    %cst_26 = arith.constant dense<0xFF800000> : vector<4x8xf32>
    %93 = vector.multi_reduction <maximumf>, %92, %cst_26 [2] : vector<4x8x8xf32> to vector<4x8xf32>
    %94 = vector.shape_cast %93 : vector<4x8xf32> to vector<4x8x1xf32>
    %95 = vector.broadcast %94 : vector<4x8x1xf32> to vector<4x8x8xf32>
    %96 = arith.subf %92, %95 : vector<4x8x8xf32>
    %97 = math.exp %96 : vector<4x8x8xf32>
    %cst_27 = arith.constant dense<0.000000e+00> : vector<4x8xf32>
    %98 = vector.multi_reduction <add>, %97, %cst_27 [2] : vector<4x8x8xf32> to vector<4x8xf32>
    %99 = vector.shape_cast %98 : vector<4x8xf32> to vector<4x8x1xf32>
    %100 = tpu.reciprocal %99 {approx = true} : vector<4x8x1xf32> -> vector<4x8x1xf32>
    %101 = vector.broadcast %100 : vector<4x8x1xf32> to vector<4x8x8xf32>
    %102 = arith.mulf %97, %101 : vector<4x8x8xf32>
    %103 = arith.truncf %102 : vector<4x8x8xf32> to vector<4x8x8xbf16>
    %cst_28 = arith.constant dense<0.000000e+00> : vector<4x8x32xf32>
    %104 = tpu.matmul %103, %89, %cst_28 {dimension_numbers = #tpu.dot_dimension_numbers<[2], [1], [1], [2], [0, 0, 0, 1, 1, 2], [0], [0]>} : vector<4x8x8xbf16>, vector<4x8x32xbf16>, vector<4x8x32xf32> -> vector<4x8x32xf32>
    %105 = arith.truncf %104 : vector<4x8x32xf32> to vector<4x8x32xbf16>
    %c0_29 = arith.constant 0 : index
    %c0_30 = arith.constant 0 : index
    %c0_31 = arith.constant 0 : index
    %106 = vector.load %arg8[%c0_29, %c0_30, %c0_31] : memref<4x32x128xbf16, #tpu.memory_space<vmem>>, vector<4x32x128xbf16>
    %cst_32 = arith.constant dense<0.000000e+00> : vector<4x8x128xf32>
    %107 = tpu.matmul %105, %106, %cst_32 {dimension_numbers = #tpu.dot_dimension_numbers<[2], [1], [1], [2], [0, 0, 0, 1, 1, 2], [0], [0]>} : vector<4x8x32xbf16>, vector<4x32x128xbf16>, vector<4x8x128xf32> -> vector<4x8x128xf32>
    %cst_33 = arith.constant dense<0.000000e+00> : vector<8x128xf32>
    %108 = vector.multi_reduction <add>, %107, %cst_33 [0] : vector<4x8x128xf32> to vector<8x128xf32>
    %c0_34 = arith.constant 0 : index
    %c0_35 = arith.constant 0 : index
    %109 = vector.load %arg9[%c0_34, %c0_35] : memref<1x128xf32, #tpu.memory_space<vmem>>, vector<1x128xf32>
    %110 = vector.broadcast %109 : vector<1x128xf32> to vector<8x128xf32>
    %111 = arith.addf %108, %110 : vector<8x128xf32>
    %112 = arith.addf %26, %111 : vector<8x128xf32>
    %c0_36 = arith.constant 0 : index
    %c0_37 = arith.constant 0 : index
    %113 = vector.load %arg10[%c0_36, %c0_37] : memref<1x128xf32, #tpu.memory_space<vmem>>, vector<1x128xf32>
    %c0_38 = arith.constant 0 : index
    %c0_39 = arith.constant 0 : index
    %114 = vector.load %arg11[%c0_38, %c0_39] : memref<1x128xf32, #tpu.memory_space<vmem>>, vector<1x128xf32>
    %cst_40 = arith.constant dense<0.000000e+00> : vector<8xf32>
    %115 = vector.multi_reduction <add>, %112, %cst_40 [1] : vector<8x128xf32> to vector<8xf32>
    %116 = vector.shape_cast %115 : vector<8xf32> to vector<8x1xf32>
    %cst_41 = arith.constant 1.280000e+02 : f32
    %117 = vector.broadcast %cst_41 : f32 to vector<8x1xf32>
    %118 = arith.divf %116, %117 : vector<8x1xf32>
    %119 = vector.broadcast %118 : vector<8x1xf32> to vector<8x128xf32>
    %120 = arith.subf %112, %119 : vector<8x128xf32>
    %121 = arith.mulf %120, %120 : vector<8x128xf32>
    %cst_42 = arith.constant dense<0.000000e+00> : vector<8xf32>
    %122 = vector.multi_reduction <add>, %121, %cst_42 [1] : vector<8x128xf32> to vector<8xf32>
    %123 = vector.shape_cast %122 : vector<8xf32> to vector<8x1xf32>
    %cst_43 = arith.constant 1.280000e+02 : f32
    %124 = vector.broadcast %cst_43 : f32 to vector<8x1xf32>
    %125 = arith.divf %123, %124 : vector<8x1xf32>
    %126 = vector.broadcast %118 : vector<8x1xf32> to vector<8x128xf32>
    %127 = arith.subf %112, %126 : vector<8x128xf32>
    %cst_44 = arith.constant 9.99999974E-6 : f32
    %128 = vector.broadcast %cst_44 : f32 to vector<8x1xf32>
    %129 = arith.addf %125, %128 : vector<8x1xf32>
    %130 = math.rsqrt %129 : vector<8x1xf32>
    %131 = vector.broadcast %130 : vector<8x1xf32> to vector<8x128xf32>
    %132 = arith.mulf %127, %131 : vector<8x128xf32>
    %133 = vector.broadcast %113 : vector<1x128xf32> to vector<8x128xf32>
    %134 = arith.mulf %132, %133 : vector<8x128xf32>
    %135 = vector.broadcast %114 : vector<1x128xf32> to vector<8x128xf32>
    %136 = arith.addf %134, %135 : vector<8x128xf32>
    %137 = arith.truncf %136 : vector<8x128xf32> to vector<8x128xbf16>
    %c0_45 = arith.constant 0 : index
    %c0_46 = arith.constant 0 : index
    %138 = vector.load %arg12[%c0_45, %c0_46] : memref<128x256xbf16, #tpu.memory_space<vmem>>, vector<128x256xbf16>
    %cst_47 = arith.constant dense<0.000000e+00> : vector<8x256xf32>
    %139 = tpu.matmul %137, %138, %cst_47 {dimension_numbers = #tpu.dot_dimension_numbers<[1], [0], [0], [1], [0, 0, 1, 1], [], []>} : vector<8x128xbf16>, vector<128x256xbf16>, vector<8x256xf32> -> vector<8x256xf32>
    %c0_48 = arith.constant 0 : index
    %c0_49 = arith.constant 0 : index
    %140 = vector.load %arg13[%c0_48, %c0_49] : memref<1x256xf32, #tpu.memory_space<vmem>>, vector<1x256xf32>
    %141 = vector.broadcast %140 : vector<1x256xf32> to vector<8x256xf32>
    %142 = arith.addf %139, %141 : vector<8x256xf32>
    %cst_50 = arith.constant 5.000000e-01 : f32
    %143 = vector.broadcast %cst_50 : f32 to vector<8x256xf32>
    %144 = arith.mulf %143, %142 : vector<8x256xf32>
    %cst_51 = arith.constant 0.707106769 : f32
    %145 = vector.broadcast %cst_51 : f32 to vector<8x256xf32>
    %146 = arith.mulf %142, %145 : vector<8x256xf32>
    %147 = math.erf %146 : vector<8x256xf32>
    %cst_52 = arith.constant 1.000000e+00 : f32
    %148 = vector.broadcast %cst_52 : f32 to vector<8x256xf32>
    %149 = arith.addf %148, %147 : vector<8x256xf32>
    %150 = arith.mulf %144, %149 : vector<8x256xf32>
    %151 = arith.truncf %150 : vector<8x256xf32> to vector<8x256xbf16>
    %c0_53 = arith.constant 0 : index
    %c0_54 = arith.constant 0 : index
    %152 = vector.load %arg14[%c0_53, %c0_54] : memref<256x128xbf16, #tpu.memory_space<vmem>>, vector<256x128xbf16>
    %cst_55 = arith.constant dense<0.000000e+00> : vector<8x128xf32>
    %153 = tpu.matmul %151, %152, %cst_55 {dimension_numbers = #tpu.dot_dimension_numbers<[1], [0], [0], [1], [0, 0, 1, 1], [], []>} : vector<8x256xbf16>, vector<256x128xbf16>, vector<8x128xf32> -> vector<8x128xf32>
    %c0_56 = arith.constant 0 : index
    %c0_57 = arith.constant 0 : index
    %154 = vector.load %arg15[%c0_56, %c0_57] : memref<1x128xf32, #tpu.memory_space<vmem>>, vector<1x128xf32>
    %155 = vector.broadcast %154 : vector<1x128xf32> to vector<8x128xf32>
    %156 = arith.addf %153, %155 : vector<8x128xf32>
    %157 = arith.addf %112, %156 : vector<8x128xf32>
    %158 = vector.shape_cast %157 : vector<8x128xf32> to vector<1x8x128xf32>
    %c0_58 = arith.constant 0 : index
    %c0_59 = arith.constant 0 : index
    %c0_60 = arith.constant 0 : index
    %159 = vector.load %arg16[%c0_58, %c0_59, %c0_60] : memref<1x8x128xf32, #tpu.memory_space<vmem>>, vector<1x8x128xf32>
    tpu.vector_store %arg16[%c0_58, %c0_59, %c0_60], %158 {strides = array<i32>} : memref<1x8x128xf32, #tpu.memory_space<vmem>>, vector<1x8x128xf32>,
    return
  }
  func.func @transform_0(%arg0: i32) -> (i32, i32, i32) {
    %c0_i32 = arith.constant 0 : i32
    %c0_i32_0 = arith.constant 0 : i32
    %c0_i32_1 = arith.constant 0 : i32
    return %arg0, %c0_i32, %c0_i32_0 : i32, i32, i32
  }
  func.func @transform_1(%arg0: i32) -> (i32, i32) {
    %c0_i32 = arith.constant 0 : i32
    %c0_i32_0 = arith.constant 0 : i32
    %c0_i32_1 = arith.constant 0 : i32
    return %c0_i32, %c0_i32_0 : i32, i32
  }
  func.func @transform_2(%arg0: i32) -> (i32, i32) {
    %c0_i32 = arith.constant 0 : i32
    %c0_i32_0 = arith.constant 0 : i32
    %c0_i32_1 = arith.constant 0 : i32
    return %c0_i32, %c0_i32_0 : i32, i32
  }
  func.func @transform_3(%arg0: i32) -> (i32, i32) {
    %c0_i32 = arith.constant 0 : i32
    %c0_i32_0 = arith.constant 0 : i32
    %c0_i32_1 = arith.constant 0 : i32
    return %c0_i32, %c0_i32_0 : i32, i32
  }
  func.func @transform_4(%arg0: i32) -> (i32, i32) {
    %c0_i32 = arith.constant 0 : i32
    %c0_i32_0 = arith.constant 0 : i32
    %c0_i32_1 = arith.constant 0 : i32
    return %c0_i32, %c0_i32_0 : i32, i32
  }
  func.func @transform_5(%arg0: i32) -> (i32, i32) {
    %c0_i32 = arith.constant 0 : i32
    %c0_i32_0 = arith.constant 0 : i32
    %c0_i32_1 = arith.constant 0 : i32
    return %c0_i32, %c0_i32_0 : i32, i32
  }
  func.func @transform_6(%arg0: i32) -> (i32, i32) {
    %c0_i32 = arith.constant 0 : i32
    %c0_i32_0 = arith.constant 0 : i32
    %c0_i32_1 = arith.constant 0 : i32
    return %c0_i32, %c0_i32_0 : i32, i32
  }
  func.func @transform_7(%arg0: i32) -> (i32, i32, i32) {
    %c0_i32 = arith.constant 0 : i32
    %c0_i32_0 = arith.constant 0 : i32
    %c0_i32_1 = arith.constant 0 : i32
    %c0_i32_2 = arith.constant 0 : i32
    return %c0_i32, %c0_i32_0, %c0_i32_1 : i32, i32, i32
  }
  func.func @transform_8(%arg0: i32) -> (i32, i32) {
    %c0_i32 = arith.constant 0 : i32
    %c0_i32_0 = arith.constant 0 : i32
    %c0_i32_1 = arith.constant 0 : i32
    return %c0_i32, %c0_i32_0 : i32, i32
  }
  func.func @transform_9(%arg0: i32) -> (i32, i32) {
    %c0_i32 = arith.constant 0 : i32
    %c0_i32_0 = arith.constant 0 : i32
    %c0_i32_1 = arith.constant 0 : i32
    return %c0_i32, %c0_i32_0 : i32, i32
  }
  func.func @transform_10(%arg0: i32) -> (i32, i32) {
    %c0_i32 = arith.constant 0 : i32
    %c0_i32_0 = arith.constant 0 : i32
    %c0_i32_1 = arith.constant 0 : i32
    return %c0_i32, %c0_i32_0 : i32, i32
  }
  func.func @transform_11(%arg0: i32) -> (i32, i32) {
    %c0_i32 = arith.constant 0 : i32
    %c0_i32_0 = arith.constant 0 : i32
    %c0_i32_1 = arith.constant 0 : i32
    return %c0_i32, %c0_i32_0 : i32, i32
  }
  func.func @transform_12(%arg0: i32) -> (i32, i32) {
    %c0_i32 = arith.constant 0 : i32
    %c0_i32_0 = arith.constant 0 : i32
    %c0_i32_1 = arith.constant 0 : i32
    return %c0_i32, %c0_i32_0 : i32, i32
  }
  func.func @transform_13(%arg0: i32) -> (i32, i32) {
    %c0_i32 = arith.constant 0 : i32
    %c0_i32_0 = arith.constant 0 : i32
    %c0_i32_1 = arith.constant 0 : i32
    return %c0_i32, %c0_i32_0 : i32, i32
  }
  func.func @transform_14(%arg0: i32) -> (i32, i32) {
    %c0_i32 = arith.constant 0 : i32
    %c0_i32_0 = arith.constant 0 : i32
    %c0_i32_1 = arith.constant 0 : i32
    return %c0_i32, %c0_i32_0 : i32, i32
  }
  func.func @transform_15(%arg0: i32) -> (i32, i32, i32) {
    %c0_i32 = arith.constant 0 : i32
    %c0_i32_0 = arith.constant 0 : i32
    %c0_i32_1 = arith.constant 0 : i32
    return %arg0, %c0_i32, %c0_i32_0 : i32, i32, i32
  }
}

</mosaic_0001>

<bundles_post_ra>
// kernel: tpu_custom_call.1
= control target key start
LH: loop header
LB: loop body
LE: loop exit
PB: predicated region body
PF: predicated region fallthrough
CT: control target
= control target key end

     0   :  { %s3178_s0 = inlined_call_operand.hbm [shape: bf16[2,8,128], index: 0, kind: input, shape index: {}]   ;;  %s3179_s1 = inlined_call_operand.hbm [shape: f32[1,128], index: 1, kind: input, shape index: {}]   ;;  %s3180_s2 = inlined_call_operand.hbm [shape: f32[1,128], index: 2, kind: input, shape index: {}]   ;;  %s3181_s3 = inlined_call_operand.hbm [shape: f32[1,128], index: 3, kind: input, shape index: {}]   ;;  %s3182_s4 = inlined_call_operand.hbm [shape: f32[1,128], index: 4, kind: input, shape index: {}]   ;;  %s3183_s5 = inlined_call_operand.hbm [shape: bf16[128,384], index: 5, kind: input, shape index: {}]   ;;  %s3184_s6 = inlined_call_operand.vmem [shape: f32[1,384], index: 6, kind: input, shape index: {}]   ;;  %s3185_s7 = inlined_call_operand.hbm [shape: bf16[4,32,128], index: 7, kind: input, shape index: {}]   ;;  %s3186_s8 = inlined_call_operand.vmem [shape: f32[1,128], index: 8, kind: input, shape index: {}]   ;;  %s3187_s9 = inlined_call_operand.vmem [shape: f32[1,128], index: 9, kind: input, shape index: {}]   ;;  %s3188_s10 = inlined_call_operand.vmem [shape: f32[1,128], index: 10, kind: input, shape index: {}]   ;;  %s3189_s11 = inlined_call_operand.hbm [shape: bf16[128,256], index: 11, kind: input, shape index: {}]   ;;  %s3190_s12 = inlined_call_operand.vmem [shape: f32[1,256], index: 12, kind: input, shape index: {}]   ;;  %s3191_s13 = inlined_call_operand.hbm [shape: bf16[256,128], index: 13, kind: input, shape index: {}]   ;;  %s3192_s14 = inlined_call_operand.vmem [shape: f32[1,128], index: 14, kind: input, shape index: {}]   ;;  %s3193_s15 = inlined_call_operand.hbm [shape: f32[2,8,128], index: 15, kind: output, shape index: {}]  }
   0x1   :  { %3195 = sst [smem:[#allocation24_spill]] %s3179_s1 }
   0x2   :  { %3196 = sst [smem:[#allocation25_spill]] %s3180_s2 }
   0x3   :  { %3197 = sst [smem:[#allocation26_spill]] %s3181_s3 }
   0x4   :  { %3198 = sst [smem:[#allocation27_spill]] %s3182_s4 }
   0x5   :  { %3199 = sst [smem:[#allocation28_spill]] %s3183_s5 }
   0x6   :  { %3200 = sst [smem:[#allocation29_spill]] %s3188_s10 }
   0x7   :  { %3201 = sst [smem:[#allocation30_spill]] %s3189_s11 }
   0x8   :  { %3202 = sst [smem:[#allocation31_spill]] %s3190_s12 }
   0x9   :  { %3203 = sst [smem:[#allocation32_spill]] %s3192_s14 }
   0xa   :  { %3204 = sst [smem:[#allocation33_spill]] %s3193_s15 }
   0xb   :  { %20 = vsyncpa [#allocation3], 0 }
   0xc   :  { %22 = vsyncpa [#allocation3 + $0x1], 0 }
   0xd   :  { %23 = vsyncpa [#allocation6], 0 }
   0xe   :  { %24 = vsyncpa [#allocation9], 0 }
   0xf   :  { %25 = vsyncpa [#allocation12], 0 }
  0x10   :  { %26 = vsyncpa [#allocation15], 0 }
  0x11   :  { %27 = vsyncpa [#allocation4], 0 }
  0x12   :  { %29 = vsyncpa [#allocation4 + $0x1], 0  ;;  %s2862_s18 = smov 0   ;;  %s2864_s19 = smov 0  }
  0x13   :  { %s2866_s20 = smov 0   ;;  %s2868_s21 = smov 0  }
  0x14 LB: > { %s3205_s1 = sld [smem:[#allocation24_spill]]  ;;  %s2886_s25 = sadd.s32 4294967295, %s2762_s21   ;;  %s2762_s21 = sphi %s2868_s21, %s3226_s21   ;;  %s2758_s20 = sphi %s2866_s20, %s3225_s20   ;;  %s2754_s19 = sphi %s2864_s19, %s3224_s19   ;;  %s2750_s18 = sphi %s2862_s18, %s3223_s18  }
  0x15   : > { %p1876_p0 = scmp.ge.s32.totalorder %s2762_s21, 1  ;;  %p56_p1 = scmp.eq.s32.totalorder %s2886_s25, 0 }
  0x16   : > { %p386_p2 = scmp.lt.s32.totalorder %s2762_s21, 3  ;;  %s2764_s27 = smov [#allocation5]  }
  0x17   : > { %s400_s28 = sshll.u32 %s2764_s27, 4  ;;  %s3207_s3 = sld [smem:[#allocation26_spill]]  ;;  %s401_s28 = int_to_ptr.vmem [resolvable:$true] %s400_s28 }
  0x18   : > { %p2891_p3 = pnand %p1876_p0, %p386_p2  ;;  %s2765_s22 = smov [#allocation8]  }
  0x19   : > { %s424_s23 = sshll.u32 %s2765_s22, 4  ;;  %s3209_s5 = sld [smem:[#allocation28_spill]]  ;;  %s425_s23 = int_to_ptr.vmem [resolvable:$true] %s424_s23 }
  0x1a   : > { %s398_s24 = sshll.u32 %s3205_s1, 4  ;;  %p2273_p5 = pneg %p2891_p3  ;;  %s399_s24 = int_to_ptr.hbm [resolvable:$true] %s398_s24 }
  0x1b   : > { %s2766_s29 = smov [#allocation11]   ;;  %s3210_s11 = sld [smem:[#allocation30_spill]] }
  0x1c   : > { %p2903_p6 = pnand %p2273_p5, %p56_p1  ;;  %s447_s30 = sshll.u32 %s2766_s29, 4  ;;  %s448_s30 = int_to_ptr.vmem [resolvable:$true] %s447_s30 }
  0x1d   : > { %s422_s16 = sshll.u32 %s3207_s3, 4  ;;  %s2767_s10 = smov 192   ;;  %s423_s16 = int_to_ptr.hbm [resolvable:$true] %s422_s16 }
  0x1e   : > { %2276 = dma.hbm_to_vmem [thread:$0]  (!%p2903_p6), %s399_s24, 16, %s401_s28, [#allocation6]  }
  0x1f   : > { %s445_s15 = sshll.u32 %s3209_s5, 4  ;;  %s2768_s22 = smov 12   ;;  %s446_s15 = int_to_ptr.hbm [resolvable:$true] %s445_s15 }
  0x20   : > { %2282 = dma.hbm_to_vmem [thread:$0]  (!%p2903_p6), %s423_s16, 16, %s425_s23, [#allocation9]  }
  0x21   : > { %s485_s12 = sshll.u32 %s3210_s11, 4  ;;  %s2769_s1 = smov [#allocation14]   ;;  %s486_s12 = int_to_ptr.hbm [resolvable:$true] %s485_s12 }
  0x22   : > { %2288 = dma.hbm_to_vmem [thread:$0]  (!%p2903_p6), %s446_s15, 3072, %s448_s30, [#allocation12], %s2767_s10, %s2767_s10, %s2768_s22  }
  0x23   : > { %s487_s27 = sshll.u32 %s2769_s1, 4  ;;  %s2770_s5 = smov 128   ;;  %s488_s27 = int_to_ptr.vmem [resolvable:$true] %s487_s27 }
  0x24   : > { %s2771_s24 = smov 8   ;;  %s3211_s2 = sld [smem:[#allocation25_spill]] }
  0x25   : > { %2294 = dma.hbm_to_vmem [thread:$0]  (!%p2903_p6), %s486_s12, 2048, %s488_s27, [#allocation15], %s2770_s5, %s2770_s5, %s2771_s24  }
  0x26   : > { %s2772_s3 = smov [#allocation7]   ;;  %s3212_s4 = sld [smem:[#allocation27_spill]] }
  0x27   : > { %s412_s14 = sshll.u32 %s2772_s3, 4  ;;  %s2773_s15 = smov [#allocation10]   ;;  %s413_s14 = int_to_ptr.vmem [resolvable:$true] %s412_s14 }
  0x28   : > { %s436_s30 = sshll.u32 %s2773_s15, 4  ;;  %s462_s12 = sshll.u32 %s3185_s7, 4  ;;  %s437_s30 = int_to_ptr.vmem [resolvable:$true] %s436_s30  ;;  %s463_s12 = int_to_ptr.hbm [resolvable:$true] %s462_s12 }
  0x29   : > { %s2774_s11 = smov [#allocation13]   ;;  %s502_s28 = sshll.u32 %s3191_s13, 4  ;;  %s503_s28 = int_to_ptr.hbm [resolvable:$true] %s502_s28 }
  0x2a   : > { %s410_s23 = sshll.u32 %s3211_s2, 4  ;;  %s464_s1 = sshll.u32 %s2774_s11, 4  ;;  %s411_s23 = int_to_ptr.hbm [resolvable:$true] %s410_s23  ;;  %s465_s1 = int_to_ptr.vmem [resolvable:$true] %s464_s1 }
  0x2b   : > { %2279 = dma.hbm_to_vmem [thread:$0]  (!%p2903_p6), %s411_s23, 16, %s413_s14, [#allocation6]  }
  0x2c   : > { %s434_s10 = sshll.u32 %s3212_s4, 4  ;;  %s2775_s16 = smov 64   ;;  %s435_s10 = int_to_ptr.hbm [resolvable:$true] %s434_s10 }
  0x2d   : > { %2285 = dma.hbm_to_vmem [thread:$0]  (!%p2903_p6), %s435_s10, 16, %s437_s30, [#allocation9]  }
  0x2e   : > { %s2776_s23 = smov 4   ;;  %s2777_s3 = smov [#allocation16]  }
  0x2f   : > { %2291 = dma.hbm_to_vmem [thread:$0]  (!%p2903_p6), %s463_s12, 1024, %s465_s1, [#allocation12], %s2775_s16, %s2775_s16, %s2776_s23  }
  0x30   : > { %s504_s14 = sshll.u32 %s2777_s3, 4  ;;  %s1875_s29 = sadd.s32 4294967294, %s2762_s21   ;;  %s505_s14 = int_to_ptr.vmem [resolvable:$true] %s504_s14 }
  0x31   : > { %2297 = dma.hbm_to_vmem [thread:$0]  (!%p2903_p6), %s503_s28, 2048, %s505_s14, [#allocation15], %s2775_s16, %s2775_s16, %s2776_s23  }
  0x32   : > { %s2943_s10 = sadd.s32 1, %s2762_s21   ;;  %s42_s30 = sadd.s32 1, %s2758_s20 }
  0x33   : > { %s39_s15 = ssub.s32 %s2762_s21, %s2943_s10  ;;  %p49_p8 = scmp.ne.s32.totalorder %s2758_s20, %s2754_s19 }
  0x34   : > { %p40_p7 = scmp.eq.s32.totalorder %s39_s15, 0  ;;  %p50_p9 = scmp.eq.s32.totalorder %s2762_s21, 0 }
  0x35   : > { %p55_p10 = scmp.ne.s32.totalorder %s2754_s19, %s2750_s18  ;;  %p373_p13 = scmp.eq.s32.totalorder %s2886_s25, 1 }
  0x36   : > { %s2954_s22 = scalar_select %p40_p7, %s2758_s20, %s42_s30  }
  0x37   : > { %p2956_p11 = por %p50_p9, %p49_p8  ;;  %p2962_p12 = por %p56_p1, %p55_p10 }
  0x38   : > { %p379_p0 = scmp.eq.s32.totalorder %s1875_s29, 1  ;;  %p2314_p2 = scmp.lt.s32.totalorder %s2762_s21, 2 }
  0x39   : > { %s521_s12 = sand.u32 1, %s2758_s20   ;;  %p2969_p5 = por %p373_p13, %p49_p8 }
  0x3a   : > { %p2973_p6 = por %p379_p0, %p55_p10  ;;  %s1886_s27 = sshll.u32 %s521_s12, 2 }
  0x3b   : > { %s1887_s24 = sshll.u32 %s2762_s21, 2  ;;  %s525_s3 = scalar_lea.vmem [#allocation2], %s1886_s27 }
  0x3c   : > { %s529_s23 = scalar_lea.hbm %s3178_s0, %s1887_s24  ;;  %s533_s14 = sshll.u32 %s525_s3, 4  ;;  %s534_s14 = int_to_ptr.vmem [resolvable:$true] %s533_s14 }
  0x3d   : > { %s531_s15 = sshll.u32 %s529_s23, 4  ;;  %p2983_p7 = pnand %p2314_p2, %p2956_p11  ;;  %s532_s15 = int_to_ptr.hbm [resolvable:$true] %s531_s15 }
  0x3e   : > { %s522_s30 = scalar_lea.sflag [#allocation3], %s521_s12  ;;  %s2650_s2 = sshra.s32 %s532_s15, 4  ;;  %s2651_s2 = int_to_ptr.hbm [resolvable:$true] %s2650_s2 }
  0x3f   : > { %s2652_s4 = scalar_lea.hbm %s2651_s2, 4  ;;  %p2654_p9 = pneg %p2983_p7 }
  0x40   : > { %p2653_p8 = scmp.ne.s32.totalorder %s2651_s2, %s2652_s4  ;;  %s2657_s28 = scalar_lea.hbm %s3178_s0, 8 }
  0x41   : > { %p2658_p11 = scmp.lt.s32.totalorder %s2651_s2, %s3178_s0  ;;  %p2659_p0 = scmp.lt.s32.totalorder %s2657_s28, %s2652_s4 }
  0x42   : > { %p2655_p10 = pnand %p2654_p9, %p2653_p8 }
  0x43   : > { %p2660_p2 = por %p2659_p0, %p2658_p11 }
  0x44   : > { %p2656_p13 = pneg %p2655_p10 }
  0x46   : > { %p2661_p4 = pnand %p2660_p2, %p2656_p13 }
  0x48   : > { %2664 = shalt.err (!%p2661_p4)
}
  0x49   : > { %2301 = dma.hbm_to_vmem [thread:$0]  (!%p2983_p7), %s532_s15, 64, %s534_s14, %s522_s30  }
  0x4a   : > { %542 = sbr.rel (%p2891_p3) target bundleno = 2133 (0x855), region = 80  ;;  %s3000_s12 = sand.u32 (!%p2891_p3), 1, %s2754_s19  }
  0x4b   : > { %s1889_s23 = sshll.u32 (!%p2891_p3), %s3000_s12, 2  ;;  %s545_s3 = scalar_lea.sflag (!%p2891_p3), [#allocation3], %s3000_s12 }
  0x4c   : > { %s548_s27 = scalar_lea.vmem (!%p2891_p3), [#allocation2], %s1889_s23 }
  0x4f   : > { %2725 = dma.done.wait (%p2962_p12), %s545_s3, 64  }
  0x50   : > { %2727 = vsyncadd (%p2962_p12), %s545_s3, 4294967232 }
  0x51   : > { %2729 = dma.done.wait (%p56_p1), [#allocation6], 32  }
  0x52   : > { %2731 = vsyncadd (%p56_p1), [#allocation6], 4294967264 }
  0x53   : > { %2733 = dma.done.wait (%p56_p1), [#allocation9], 32  }
  0x54   : > { %2735 = vsyncadd (%p56_p1), [#allocation9], 4294967264 }
  0x55   : > { %2737 = dma.done.wait (%p56_p1), [#allocation12], 4096  }
  0x56   : > { %2739 = vsyncadd (%p56_p1), [#allocation12], 4294963200 }
  0x57   : > { %2741 = dma.done.wait (%p56_p1), [#allocation15], 4096  }
  0x58   : > { %2743 = vsyncadd (%p56_p1), [#allocation15], 4294963200  ;;  %v637_v0 = vld [vmem:[%s548_s27] sm:$0xf]  ;;  %v2778_v2 = vmov 128.0   ;;  %vm956_vm7 = vcmask 261120  }
  0x59   : > { %v638_v1 = vunpack.c.l.bf16 %v637_v0  ;;  %2382 = vrcp.f32 %v2778_v2  ;;  %v2374_v22 = vld [vmem:[#allocation5] ss:$0 sm:$0xff]  ;;  %v2375_v25 = vld [vmem:[#allocation7] ss:$0 sm:$0xff]  ;;  %v1985_v28 = vld [vmem:[#allocation11 + $0xa8] sm:$0xf] }
  0x5a   : > { %v2195_v29 = vld [vmem:[#allocation11 + $0xb0] sm:$0xf0]  ;;  %v2194_v30 = vld [vmem:[#allocation11 + $0xac] sm:$0xf]  ;;  %v1987_v32 = vld [vmem:[#allocation11 + $0xb4] sm:$0xf0] }
  0x5b   : > { %641 = vadd.xlane.f32.xlu0 %v638_v1  ;;  %v1986_v31 = vor.u32 %v2195_v29, %v1985_v28  ;;  %v1993_v33 = vld [vmem:[#allocation11 + $0xb0] sm:$0xf]  ;;  %v2196_v34 = vld [vmem:[#allocation11 + $0xb8] sm:$0xf0]  ;;  %v1990_v35 = vor.u32 %v2194_v30, %v1987_v32  ;;  %v2191_v43 = vld [vmem:[#allocation11 + $0x94] sm:$0xf] }
  0x5c   : > { %v1994_v36 = vor.u32 %v2196_v34, %v1993_v33  ;;  %v1973_v41 = vld [vmem:[#allocation11 + $0x90] sm:$0xf]  ;;  %v2192_v42 = vld [vmem:[#allocation11 + $0x98] sm:$0xf0]  ;;  %v1975_v45 = vld [vmem:[#allocation11 + $0x9c] sm:$0xf0] }
  0x5d   : > { %875 = vmatpush.bf16.msra.mxu0 %v1986_v31  ;;  %888 = vmatpush.bf16.msra.mxu1 %v1990_v35  ;;  %v1974_v44 = vor.u32 %v2192_v42, %v1973_v41  ;;  %v1981_v46 = vld [vmem:[#allocation11 + $0x98] sm:$0xf]  ;;  %v2193_v47 = vld [vmem:[#allocation11 + $0xa0] sm:$0xf0]  ;;  %v1978_v48 = vor.u32 %v2191_v43, %v1975_v45  ;;  %v2188_v52 = vld [vmem:[#allocation11 + $0x7c] sm:$0xf] }
  0x5e   : > { %901 = vmatpush.bf16.msra.mxu2 %v1994_v36  ;;  %v1982_v49 = vor.u32 %v2193_v47, %v1981_v46  ;;  %v1961_v50 = vld [vmem:[#allocation11 + $0x78] sm:$0xf]  ;;  %v2189_v51 = vld [vmem:[#allocation11 + $0x80] sm:$0xf0]  ;;  %v1963_v54 = vld [vmem:[#allocation11 + $0x84] sm:$0xf0] }
  0x5f   : > { %v2383_v3 = vpop.eup %2382  ;;  %v1962_v53 = vor.u32 %v2189_v51, %v1961_v50  ;;  %v1969_v55 = vld [vmem:[#allocation11 + $0x80] sm:$0xf]  ;;  %v2190_v56 = vld [vmem:[#allocation11 + $0x88] sm:$0xf0]  ;;  %v1966_v57 = vor.u32 %v2188_v52, %v1963_v54  ;;  %v2185_v61 = vld [vmem:[#allocation11 + $0x64] sm:$0xf] }
  0x60   : > { %v644_v4 = vmul.f32 128.0, %v2383_v3  ;;  %vm648_vm0 = vweird.f32 %v2383_v3  ;;  %v1970_v58 = vor.u32 %v2190_v56, %v1969_v55  ;;  %v1949_v59 = vld [vmem:[#allocation11 + $0x60] sm:$0xf]  ;;  %v2186_v60 = vld [vmem:[#allocation11 + $0x68] sm:$0xf0]  ;;  %s2779_s26 = smov 64  }
  0x61   : > { %876 = vmatpush.bf16.msra.mxu0 %v1974_v44  ;;  %889 = vmatpush.bf16.msra.mxu1 %v1978_v48  ;;  %v1950_v62 = vor.u32 %v2186_v60, %v1949_v59  ;;  %v1951_v63 = vld [vmem:[#allocation11 + $0x6c] sm:$0xf0]  ;;  %v1957_v0 = vld [vmem:[#allocation11 + $0x68] sm:$0xf]  ;;  %v1921_v29 = vld [vmem:[#allocation11 + $0x20] sm:$0xf] }
  0x62   : > { %v645_v5 = vsub.f32 1.0, %v644_v4  ;;  %902 = vmatpush.bf16.msra.mxu2 %v1982_v49  ;;  %v1954_v2 = vor.u32 %v2185_v61, %v1951_v63  ;;  %v1937_v4 = vld [vmem:[#allocation11 + $0x48] sm:$0xf]  ;;  %v2178_v30 = vld [vmem:[#allocation11 + $0x28] sm:$0xf0]  ;;  %s2780_s17 = smov 96  }
  0x63   : > { %v1915_v28 = vld [vmem:[#allocation11 + $0x24] sm:$0xf0]  ;;  %v1922_v32 = vor.u32 %v2178_v30, %v1921_v29  ;;  %v1901_v33 = vld [vmem:[#allocation11] sm:$0xf]  ;;  %v2174_v34 = vld [vmem:[#allocation11 + $0x8] sm:$0xf0] }
  0x64   : > { %v646_v6 = vmul.f32 %v2383_v3, %v645_v5  ;;  %v2183_v5 = vld [vmem:[#allocation11 + $0x50] sm:$0xf0]  ;;  %v2173_v35 = vld [vmem:[#allocation11 + $0x4] sm:$0xf]  ;;  %v1902_v36 = vor.u32 %v2174_v34, %v1901_v33  ;;  %v2376_v52 = vld [vmem:[#allocation8] ss:$0 sm:$0xff] }
  0x65   : > { %877 = vmatpush.bf16.msra.mxu0 %v1962_v53  ;;  %890 = vmatpush.bf16.msra.mxu1 %v1966_v57  ;;  %v2377_v55 = vld [vmem:[#allocation10] ss:$0 sm:$0xff]  ;;  %v739_v59 = vld [vmem:[%s3184_s6] sm:$0x7]  ;;  %vm1089_vm8 = vcmask 1043456   ;;  %s2781_s14 = smov 32  }
  0x66   : > { %v647_v7 = vadd.f32 %v2383_v3, %v646_v6  ;;  %903 = vmatpush.bf16.msra.mxu2 %v1970_v58  ;;  %v2182_v6 = vld [vmem:[#allocation11 + $0x4c] sm:$0xf]  ;;  %v741_v60 = vperm.slane %v739_v59, 0  ;;  %v742_v61 = vperm.slane %v739_v59, 1  ;;  %vm1037_vm9 = vcmask 64512   ;;  %s3218_s5 = sld [smem:[#allocation29_spill]] }
  0x67   : > { %s3219_s27 = sld [smem:[#allocation31_spill]]  ;;  %s1898_s2 = sshll.u32 %s3000_s12, 3 }
  0x68   : > { %v3024_v8 = vsel %vm648_vm0, %v2383_v3, %v647_v7  ;;  %v1938_v7 = vor.u32 %v2183_v5, %v1937_v4  ;;  %s2170_s4 = sshll.u32 %s2886_s25, 3  ;;  %s3221_s30 = sld [smem:[#allocation33_spill]] }
  0x69   : > { %878 = vmatpush.bf16.msra.mxu0 %v1950_v62  ;;  %891 = vmatpush.bf16.msra.mxu1 %v1954_v2  ;;  %v743_v2 = vperm.slane %v739_v59, 2  ;;  %s635_s28 = scalar_lea.vmem [#allocation17], %s1898_s2  ;;  %s1714_s25 = scalar_lea.sflag [#allocation4], %s3000_s12 }
  0x6a   : > { %s1726_s16 = sshll.u32 %s635_s28, 4  ;;  %s1727_s16 = int_to_ptr.vmem [resolvable:$true] %s1726_s16 }
  0x6d   : > { %879 = vmatpush.bf16.msra.mxu0 %v1938_v7 }
  0x6e   : > { %s1724_s24 = scalar_lea.hbm %s3221_s30, %s2170_s4  ;;  %s2700_s2 = scalar_lea.hbm %s3221_s30, 16 }
  0xce   : > { %v642_v9 = vpop.xlane.xlu0 %641 }
  0xcf   : > { %v650_v10 = vmul.f32 %v3024_v8, %v642_v9  ;;  %v1939_v9 = vld [vmem:[#allocation11 + $0x54] sm:$0xf0] }
  0xd1   : > { %v651_v11 = vsub.f32 %v638_v1, %v650_v10  ;;  %v2187_v1 = vld [vmem:[#allocation11 + $0x70] sm:$0xf0]  ;;  %v1945_v10 = vld [vmem:[#allocation11 + $0x50] sm:$0xf] }
  0xd2   : > { %v1958_v3 = vor.u32 %v2187_v1, %v1957_v0 }
  0xd3   : > { %v652_v12 = vmul.f32 %v651_v11, %v651_v11 }
  0xd4   : > { %904 = vmatpush.bf16.msra.mxu2 %v1958_v3 }
  0xd5   : > { %653 = vadd.xlane.f32.xlu0 %v652_v12  ;;  %v1942_v12 = vor.u32 %v2182_v6, %v1939_v9 }
  0xd7   : > { %892 = vmatpush.bf16.msra.mxu1 %v1942_v12 }
 0x148   : > { %v654_v13 = vpop.xlane.xlu0 %653 }
 0x149   : > { %v655_v14 = vmul.f32 %v654_v13, %v3024_v8 }
 0x14b   : > { %v656_v15 = vadd.f32 1e-12, %v655_v14  ;;  %v1925_v14 = vld [vmem:[#allocation11 + $0x30] sm:$0xf] }
 0x14d   : > { %2384 = vrsqrt.f32 %v656_v15  ;;  %vm663_vm2 = vweird.f32 %v656_v15 }
 0x153   : > { %v2385_v16 = vpop.eup %2384 }
 0x154   : > { %v658_v17 = vmul.f32 %v2385_v16, %v656_v15  ;;  %vm664_vm1 = vweird.f32 %v2385_v16  ;;  %v2180_v15 = vld [vmem:[#allocation11 + $0x38] sm:$0xf0] }
 0x155   : > { %vm665_vm3 = vmor %vm663_vm2, %vm664_vm1 }
 0x156   : > { %v659_v18 = vmul.f32 %v2385_v16, %v658_v17  ;;  %v1926_v17 = vor.u32 %v2180_v15, %v1925_v14 }
 0x158   : > { %v660_v19 = vmul.f32 0.5, %v659_v18  ;;  %v1927_v18 = vld [vmem:[#allocation11 + $0x3c] sm:$0xf0]  ;;  %880 = vmatpush.bf16.msra.mxu0 %v1926_v17 }
 0x15a   : > { %v661_v20 = vsub.f32 1.5, %v660_v19  ;;  %v1933_v19 = vld [vmem:[#allocation11 + $0x38] sm:$0xf] }
 0x15c   : > { %v662_v21 = vmul.f32 %v2385_v16, %v661_v20  ;;  %v2181_v20 = vld [vmem:[#allocation11 + $0x40] sm:$0xf0] }
 0x15e   : > { %v666_v23 = vsel %vm665_vm3, %v2385_v16, %v662_v21  ;;  %v2179_v16 = vld [vmem:[#allocation11 + $0x34] sm:$0xf] }
 0x15f   : > { %v667_v24 = vmul.f32 %v666_v23, %v651_v11  ;;  %v2184_v11 = vld [vmem:[#allocation11 + $0x58] sm:$0xf0]  ;;  %v1930_v21 = vor.u32 %v2179_v16, %v1927_v18  ;;  %v1913_v23 = vld [vmem:[#allocation11 + $0x18] sm:$0xf] }
 0x160   : > { %v1946_v13 = vor.u32 %v2184_v11, %v1945_v10 }
 0x161   : > { %v671_v26 = vmul.f32 %v2374_v22, %v667_v24  ;;  %v1934_v22 = vor.u32 %v2181_v20, %v1933_v19  ;;  %893 = vmatpush.bf16.msra.mxu1 %v1930_v21  ;;  %v2177_v24 = vld [vmem:[#allocation11 + $0x20] sm:$0xf0] }
 0x162   : > { %905 = vmatpush.bf16.msra.mxu2 %v1946_v13 }
 0x163   : > { %v3028_v27 = vadd.f32 %v2375_v25, %v671_v26  ;;  %v2176_v25 = vld [vmem:[#allocation11 + $0x1c] sm:$0xf]  ;;  %v1914_v26 = vor.u32 %v2177_v24, %v1913_v23 }
 0x164   : > { %v1918_v31 = vor.u32 %v2176_v25, %v1915_v28 }
 0x165   : > { %678 = vadd.xlane.f32.xlu1 %v3028_v27  ;;  %881 = vmatpush.bf16.msra.mxu0 %v1914_v26 }
 0x166   : > { %906 = vmatpush.bf16.msra.mxu2 %v1934_v22  ;;  %894 = vmatpush.bf16.msra.mxu1 %v1918_v31 }
 0x169   : > { %882 = vmatpush.bf16.msra.mxu0 %v1902_v36 }
 0x16a   : > { %907 = vmatpush.bf16.msra.mxu2 %v1922_v32 }
 0x1d8   : > { %v679_v37 = vpop.xlane.xlu1 %678 }
 0x1d9   : > { %v680_v38 = vmul.f32 %v679_v37, %v3024_v8  ;;  %v1903_v37 = vld [vmem:[#allocation11 + $0xc] sm:$0xf0] }
 0x1da   : > { %v1906_v41 = vor.u32 %v2173_v35, %v1903_v37 }
 0x1db   : > { %v3033_v39 = vsub.f32 %v3028_v27, %v680_v38  ;;  %v1909_v38 = vld [vmem:[#allocation11 + $0x8] sm:$0xf] }
 0x1dc   : > { %895 = vmatpush.bf16.msra.mxu1 %v1906_v41 }
 0x1dd   : > { %v682_v40 = vmul.f32 %v3033_v39, %v3033_v39 }
 0x1df   : > { %683 = vadd.xlane.f32.xlu1 %v682_v40  ;;  %v2175_v40 = vld [vmem:[#allocation11 + $0x10] sm:$0xf0] }
 0x1e0   : > { %v1910_v42 = vor.u32 %v2175_v40, %v1909_v38 }
 0x1e2   : > { %908 = vmatpush.bf16.msra.mxu2 %v1910_v42 }
 0x252   : > { %v684_v43 = vpop.xlane.xlu1 %683 }
 0x253   : > { %v685_v44 = vmul.f32 %v684_v43, %v3024_v8 }
 0x255   : > { %v686_v45 = vadd.f32 1e-05, %v685_v44 }
 0x257   : > { %2386 = vrsqrt.f32 %v686_v45  ;;  %vm693_vm5 = vweird.f32 %v686_v45 }
 0x25d   : > { %v2387_v46 = vpop.eup %2386 }
 0x25e   : > { %v688_v47 = vmul.f32 %v2387_v46, %v686_v45  ;;  %vm694_vm4 = vweird.f32 %v2387_v46 }
 0x25f   : > { %vm695_vm6 = vmor %vm693_vm5, %vm694_vm4 }
 0x260   : > { %v689_v48 = vmul.f32 %v2387_v46, %v688_v47 }
 0x262   : > { %v690_v49 = vmul.f32 0.5, %v689_v48 }
 0x264   : > { %v691_v50 = vsub.f32 1.5, %v690_v49 }
 0x266   : > { %v692_v51 = vmul.f32 %v2387_v46, %v691_v50 }
 0x268   : > { %v696_v53 = vsel %vm695_vm6, %v2387_v46, %v692_v51 }
 0x269   : > { %v697_v54 = vmul.f32 %v696_v53, %v3033_v39 }
 0x26b   : > { %v701_v56 = vmul.f32 %v2376_v52, %v697_v54 }
 0x26d   : > { %v705_v57 = vadd.f32 %v2377_v55, %v701_v56 }
 0x26f   : > { %v706_v58 = vpack.c.bf16 %v705_v57, %v705_v57 }
 0x271   : > { %883 = vmatmul.bf16.vlgmr.msra.gmra.mxu0 %v706_v58  ;;  %896 = vmatmul.bf16.vlgmr.msra.gmra.mxu1 %v706_v58 }
 0x272   : > { %909 = vmatmul.bf16.vlgmr.msra.gmra.mxu2 %v706_v58 }
 0x2ee   : > { %v884_v62 = vpop.f32.mrf.mxu0  ;;  %v897_v63 = vpop.f32.mrf.mxu1 }
 0x2ef   : > { %v885_v0 = vadd.f32 %v884_v62, %v741_v60  ;;  %v898_v1 = vadd.f32 %v897_v63, %v742_v61 }
 0x2f1   : > { %932 = vrot.lane.b32.xlu0 %v898_v1, %s2779_s26  ;;  %929 = vrot.lane.b32.xlu2 %v898_v1, %s2780_s17  ;;  %v938_v39 = vpack.c.bf16 %v898_v1, %v898_v1  ;;  %v924_v10 = vpack.c.bf16 %v885_v0, %v885_v0 }
 0x2f2   : > { %918 = vrot.lane.b32.xlu1 %v885_v0, %s2779_s26 }
 0x2f3   : > { %v961_v3 = vsel %vm956_vm7, %v938_v39, 0 }
 0x2f4   : > { %970 = vmatpush.bf16.xpose.msra.mxu3 %v961_v3 }
 0x2f5   : > { %v910_v4 = vpop.f32.mrf.mxu2 }
 0x2f6   : > { %v3046_v5 = vadd.f32 %v910_v4, %v743_v2  ;;  %v886_v6 = vpop.f32.mrf.mxu0  ;;  %v899_v7 = vpop.f32.mrf.mxu1 }
 0x2f8   : > { %v952_v9 = vpack.c.bf16 %v3046_v5, %v3046_v5 }
 0x2f9   : > { %915 = vrot.lane.b32.xlu2 %v885_v0, %s2780_s17 }
 0x2fa   : > { %v1091_v11 = vsel %vm1089_vm8, %v952_v9, 0 }
 0x2fb   : > { %1100 = vmatpush.bf16.msrb.mxu1 %v1091_v11  ;;  %1995 = vmatmul.msk.bf16.vlgmr.msra.gmra.mxu3 %vm956_vm7, %v924_v10 }
 0x2fd   : > { %v912_v12 = vpop.f32.mrf.mxu2 }
 0x2fe   : > { %v2198_v12 = vld [vmem:[#allocation13 + $0x8] sm:$0xff] }
 0x2ff   : > { %1204 = vmatpush.bf16.msra.mxu1 %v2198_v12 }
 0x301   : > { %935 = vrot.lane.b32.xlu2 %v898_v1, %s2781_s14 }
 0x309   : > { %921 = vrot.lane.b32.xlu2 %v885_v0, %s2781_s14 }
 0x34b   : > { %v930_v13 = vpop.permute.xlu2 %929 }
 0x34c   : > { %v939_v14 = vpack.c.bf16 %v930_v13, %v930_v13 }
 0x34e   : > { %v980_v15 = vsel %vm956_vm7, %v939_v14, 0 }
 0x34f   : > { %989 = vmatpush.bf16.xpose.msrb.mxu3 %v980_v15  ;;  %v2197_v15 = vld [vmem:[#allocation13] sm:$0xff] }
 0x350   : > { %1205 = vmatpush.bf16.msra.mxu1 %v2197_v15  ;;  %v2081_v15 = vld [vmem:[#allocation14 + $0x50] sm:$0xf] }
 0x353   : > { %v916_v16 = vpop.permute.xlu2 %915 }
 0x354   : > { %v925_v17 = vpack.c.bf16 %v916_v16, %v916_v16 }
 0x356   : > { %1996 = vmatmul.msk.bf16.vlgmr.msrb.gmra.mxu3 %vm956_vm7, %v925_v17 }
 0x35b   : > { %v936_v18 = vpop.permute.xlu2 %935 }
 0x35c   : > { %v941_v19 = vpack.c.bf16 %v936_v18, %v936_v18 }
 0x35e   : > { %v1018_v20 = vsel %vm956_vm7, %v941_v19, 0 }
 0x35f   : > { %1027 = vmatpush.bf16.xpose.msrb.mxu0 %v1018_v20  ;;  %v2200_v20 = vld [vmem:[#allocation13 + $0x18] sm:$0xff] }
 0x363   : > { %v933_v21 = vpop.permute.xlu0 %932  ;;  %v922_v22 = vpop.permute.xlu2 %921 }
 0x364   : > { %v940_v23 = vpack.c.bf16 %v933_v21, %v933_v21  ;;  %v927_v24 = vpack.c.bf16 %v922_v22, %v922_v22  ;;  %v919_v26 = vpop.permute.xlu1 %918 }
 0x365   : > { %v926_v28 = vpack.c.bf16 %v919_v26, %v919_v26 }
 0x366   : > { %v999_v25 = vsel %vm956_vm7, %v940_v23, 0  ;;  %1998 = vmatmul.msk.bf16.vlgmr.msrb.gmra.mxu0 %vm956_vm7, %v927_v24 }
 0x367   : > { %1008 = vmatpush.bf16.xpose.msra.mxu3 %v999_v25 }
 0x36e   : > { %1997 = vmatmul.msk.bf16.vlgmr.msra.gmra.mxu3 %vm956_vm7, %v926_v28 }
 0x37e   : > { %v972_v29 = vpop.f32.mrf.mxu3 }
 0x37f   : > { %v1033_v30 = vmul.f32 0.17677669, %v972_v29 }
 0x381   : > { %v1038_v31 = vsel %vm1037_vm9, %v1033_v30, -inf }
 0x382   : > { %1039 = vmax.xlane.f32.xlu1 %v1038_v31 }
 0x386   : > { %v974_v32 = vpop.f32.mrf.mxu3 }
 0x39b   : > { %943 = vrot.lane.b32.xlu1 %v3046_v5, %s2780_s17 }
 0x3d9   : > { %v991_v33 = vpop.f32.mrf.mxu3 }
 0x3da   : > { %v1034_v34 = vmul.f32 0.17677669, %v991_v33 }
 0x3dc   : > { %v1041_v35 = vsel %vm1037_vm9, %v1034_v34, -inf }
 0x3dd   : > { %1042 = vmax.xlane.f32.xlu2 %v1041_v35  ;;  %v2204_v35 = vld [vmem:[#allocation13 + $0x38] sm:$0xff] }
 0x3e1   : > { %v993_v36 = vpop.f32.mrf.mxu3 }
 0x3e2   : > { %v2202_v36 = vld [vmem:[#allocation13 + $0x28] sm:$0xff] }
 0x3e3   : > { %v1029_v37 = vpop.f32.mrf.mxu0 }
 0x3e4   : > { %v1036_v38 = vmul.f32 0.17677669, %v1029_v37  ;;  %v2203_v37 = vld [vmem:[#allocation13 + $0x30] sm:$0xff] }
 0x3e6   : > { %v1047_v40 = vsel %vm1037_vm9, %v1036_v38, -inf }
 0x3e7   : > { %1048 = vmax.xlane.f32.xlu2 %v1047_v40 }
 0x3eb   : > { %v1031_v41 = vpop.f32.mrf.mxu0 }
 0x3f1   : > { %v1010_v42 = vpop.f32.mrf.mxu3 }
 0x3f2   : > { %v1035_v43 = vmul.f32 0.17677669, %v1010_v42 }
 0x3f4   : > { %v1044_v44 = vsel %vm1037_vm9, %v1035_v43, -inf }
 0x3f5   : > { %v1040_v45 = vpop.xlane.xlu1 %1039  ;;  %1045 = vmax.xlane.f32.xlu0 %v1044_v44 }
 0x3f6   : > { %v1050_v46 = vsub.f32 %v1033_v30, %v1040_v45 }
 0x3f8   : > { %v1054_v47 = vmul.f32 1.442695, %v1050_v46 }
 0x3f9   : > { %v1012_v48 = vpop.f32.mrf.mxu3 }
 0x3fa   : > { %2388 = vpow2.f32 %v1054_v47 }
 0x400   : > { %v2389_v49 = vpop.eup %2388 }
 0x401   : > { %v1062_v50 = vsel %vm1037_vm9, %v2389_v49, 0.0 }
 0x402   : > { %1063 = vadd.xlane.f32.xlu2 %v1062_v50 }
 0x40d   : > { %v944_v51 = vpop.permute.xlu1 %943 }
 0x40e   : > { %v953_v52 = vpack.c.bf16 %v944_v51, %v944_v51 }
 0x410   : > { %v1110_v53 = vsel %vm1089_vm8, %v953_v52, 0 }
 0x411   : > { %1119 = vmatpush.bf16.msrb.mxu2 %v1110_v53 }
 0x415   : > { %1232 = vmatpush.bf16.msra.mxu2 %v2200_v20 }
 0x450   : > { %v1043_v54 = vpop.xlane.xlu2 %1042 }
 0x451   : > { %v1051_v55 = vsub.f32 %v1034_v34, %v1043_v54  ;;  %v2199_v34 = vld [vmem:[#allocation13 + $0x10] sm:$0xff] }
 0x452   : > { %1233 = vmatpush.bf16.msra.mxu2 %v2199_v34  ;;  %v2210_v34 = vld [vmem:[#allocation14 + $0x24] sm:$0xf0] }
 0x453   : > { %v1056_v56 = vmul.f32 1.442695, %v1051_v55 }
 0x455   : > { %2390 = vpow2.f32 %v1056_v56 }
 0x45a   : > { %v1049_v57 = vpop.xlane.xlu2 %1048 }
 0x45b   : > { %v2391_v58 = vpop.eup %2390  ;;  %v1053_v59 = vsub.f32 %v1036_v38, %v1049_v57  ;;  %v2201_v38 = vld [vmem:[#allocation13 + $0x20] sm:$0xff] }
 0x45c   : > { %v1065_v60 = vsel %vm1037_vm9, %v2391_v58, 0.0 }
 0x45d   : > { %v1060_v61 = vmul.f32 1.442695, %v1053_v59  ;;  %1066 = vadd.xlane.f32.xlu0 %v1065_v60 }
 0x45f   : > { %2392 = vpow2.f32 %v1060_v61 }
 0x465   : > { %v2393_v62 = vpop.eup %2392 }
 0x466   : > { %v1071_v63 = vsel %vm1037_vm9, %v2393_v62, 0.0 }
 0x467   : > { %1072 = vadd.xlane.f32.xlu2 %v1071_v63  ;;  %v2097_v63 = vld [vmem:[#allocation14 + $0x70] sm:$0xf] }
 0x468   : > { %v1046_v0 = vpop.xlane.xlu0 %1045 }
 0x469   : > { %v1052_v1 = vsub.f32 %v1035_v43, %v1046_v0  ;;  %v2220_v0 = vld [vmem:[#allocation14 + $0x74] sm:$0xf0] }
 0x46b   : > { %v1058_v39 = vmul.f32 1.442695, %v1052_v1  ;;  %v2219_v1 = vld [vmem:[#allocation14 + $0x74] sm:$0xf] }
 0x46d   : > { %2394 = vpow2.f32 %v1058_v39  ;;  %v2098_v39 = vor.u32 %v2220_v0, %v2097_v63 }
 0x471   : > { %946 = vrot.lane.b32.xlu0 %v3046_v5, %s2779_s26 }
 0x473   : > { %v2395_v2 = vpop.eup %2394 }
 0x474   : > { %v1068_v3 = vsel %vm1037_vm9, %v2395_v2, 0.0 }
 0x475   : > { %v1064_v4 = vpop.xlane.xlu2 %1063  ;;  %1069 = vadd.xlane.f32.xlu2 %v1068_v3 }
 0x476   : > { %2396 = vrcp.f32 %v1064_v4 }
 0x47c   : > { %v2397_v6 = vpop.eup %2396 }
 0x47d   : > { %v1078_v7 = vmul.f32 %v2397_v6, %v2389_v49 }
 0x47f   : > { %v1082_v9 = vpack.c.bf16 %v1078_v7, %v1078_v7 }
 0x481   : > { %1999 = vmatmul.msk.bf16.vlgmr.msrb.gmra.mxu1 %vm1037_vm9, %v1082_v9  ;;  %v2089_v9 = vld [vmem:[#allocation14 + $0x60] sm:$0xf] }
 0x482   : > { %1437 = vmatpush.bf16.msrb.mxu1 %v2098_v39 }
 0x48d   : > { %949 = vrot.lane.b32.xlu2 %v3046_v5, %s2781_s14  ;;  %s3220_s14 = sld [smem:[#allocation32_spill]] }
 0x4d0   : > { %v1067_v10 = vpop.xlane.xlu0 %1066 }
 0x4d1   : > { %2398 = vrcp.f32 %v1067_v10  ;;  %v2218_v10 = vld [vmem:[#allocation14 + $0x64] sm:$0xf0] }
 0x4d2   : > { %v2090_v12 = vor.u32 %v2218_v10, %v2089_v9  ;;  %v2236_v9 = vld [vmem:[#allocation16 + $0x78] sm:$0xff] }
 0x4d4   : > { %1438 = vmatpush.bf16.msrb.mxu1 %v2090_v12 }
 0x4d7   : > { %v2399_v11 = vpop.eup %2398 }
 0x4d8   : > { %v1079_v13 = vmul.f32 %v2399_v11, %v2391_v58  ;;  %v2378_v58 = vld [vmem:[%s3186_s8] ss:$0 sm:$0xff]  ;;  %v2217_v11 = vld [vmem:[#allocation14 + $0x64] sm:$0xf] }
 0x4da   : > { %v1083_v14 = vpack.c.bf16 %v1079_v13, %v1079_v13  ;;  %v1073_v16 = vpop.xlane.xlu2 %1072  ;;  %v2091_v13 = vld [vmem:[#allocation14 + $0x68] sm:$0xf0] }
 0x4db   : > { %2400 = vrcp.f32 %v1073_v16  ;;  %v2216_v16 = vld [vmem:[#allocation14 + $0x54] sm:$0xf0] }
 0x4dc   : > { %2000 = vmatmul.msk.bf16.vlgmr.msrb.gmra.mxu2 %vm1037_vm9, %v1083_v14  ;;  %v2094_v14 = vor.u32 %v2217_v11, %v2091_v13  ;;  %v2226_v11 = vld [vmem:[#allocation16 + $0x28] sm:$0xff] }
 0x4e1   : > { %v2401_v21 = vpop.eup %2400 }
 0x4e2   : > { %v1081_v25 = vmul.f32 %v2401_v21, %v2393_v62  ;;  %v2214_v21 = vld [vmem:[#allocation14 + $0x44] sm:$0xf0] }
 0x4e3   : > { %v947_v17 = vpop.permute.xlu0 %946 }
 0x4e4   : > { %v954_v18 = vpack.c.bf16 %v947_v17, %v947_v17  ;;  %v1085_v30 = vpack.c.bf16 %v1081_v25, %v1081_v25  ;;  %v2215_v17 = vld [vmem:[#allocation14 + $0x54] sm:$0xf] }
 0x4e6   : > { %v1129_v19 = vsel %vm1089_vm8, %v954_v18, 0  ;;  %v2082_v18 = vor.u32 %v2216_v16, %v2081_v15  ;;  %v2225_v16 = vld [vmem:[#allocation16 + $0x20] sm:$0xff] }
 0x4e7   : > { %1138 = vmatpush.bf16.msrb.mxu3 %v1129_v19  ;;  %v2083_v19 = vld [vmem:[#allocation14 + $0x58] sm:$0xf0] }
 0x4e8   : > { %v1070_v5 = vpop.xlane.xlu2 %1069  ;;  %v2086_v20 = vor.u32 %v2215_v17, %v2083_v19  ;;  %1439 = vmatpush.bf16.msrb.mxu1 %v2082_v18 }
 0x4e9   : > { %2402 = vrcp.f32 %v1070_v5  ;;  %v2073_v5 = vld [vmem:[#allocation14 + $0x40] sm:$0xf] }
 0x4eb   : > { %1260 = vmatpush.bf16.msra.mxu3 %v2202_v36 }
 0x4ef   : > { %v2403_v22 = vpop.eup %2402  ;;  %1261 = vmatpush.bf16.msra.mxu3 %v2201_v38 }
 0x4f0   : > { %v1080_v23 = vmul.f32 %v2403_v22, %v2395_v2  ;;  %v950_v24 = vpop.permute.xlu2 %949  ;;  %v2099_v2 = vld [vmem:[#allocation14 + $0x78] sm:$0xf0]  ;;  %v2213_v22 = vld [vmem:[#allocation14 + $0x44] sm:$0xf] }
 0x4f1   : > { %v955_v26 = vpack.c.bf16 %v950_v24, %v950_v24  ;;  %v2102_v3 = vor.u32 %v2219_v1, %v2099_v2  ;;  %v2075_v24 = vld [vmem:[#allocation14 + $0x48] sm:$0xf0] }
 0x4f2   : > { %v1084_v28 = vpack.c.bf16 %v1080_v23, %v1080_v23  ;;  %v2074_v23 = vor.u32 %v2214_v21, %v2073_v5  ;;  %v2078_v25 = vor.u32 %v2213_v22, %v2075_v24 }
 0x4f3   : > { %v1148_v29 = vsel %vm1089_vm8, %v955_v26, 0  ;;  %1450 = vmatpush.bf16.msrb.mxu2 %v2102_v3  ;;  %v2065_v26 = vld [vmem:[#allocation14 + $0x30] sm:$0xf]  ;;  %v2228_v3 = vld [vmem:[#allocation16 + $0x38] sm:$0xff] }
 0x4f4   : > { %2001 = vmatmul.msk.bf16.vlgmr.msrb.gmra.mxu3 %vm1037_vm9, %v1084_v28  ;;  %1157 = vmatpush.bf16.msra.mxu0 %v1148_v29  ;;  %v2212_v28 = vld [vmem:[#allocation14 + $0x34] sm:$0xf0]  ;;  %v2211_v29 = vld [vmem:[#allocation14 + $0x34] sm:$0xf] }
 0x4f5   : > { %1440 = vmatpush.bf16.msrb.mxu1 %v2074_v23  ;;  %1685 = vmatpush.bf16.msrb.mxu3 %v2228_v3  ;;  %v2224_v23 = vld [vmem:[#allocation16 + $0x18] sm:$0xff] }
 0x4f7   : > { %2002 = vmatmul.msk.bf16.vlgmr.msra.gmra.mxu0 %vm1037_vm9, %v1085_v30  ;;  %1451 = vmatpush.bf16.msrb.mxu2 %v2094_v14  ;;  %v2066_v30 = vor.u32 %v2212_v28, %v2065_v26  ;;  %v2235_v14 = vld [vmem:[#allocation16 + $0x70] sm:$0xff]  ;;  %v2233_v28 = vld [vmem:[#allocation16 + $0x60] sm:$0xff] }
 0x4f8   : > { %1288 = vmatpush.bf16.msrb.mxu0 %v2204_v35  ;;  %v2209_v35 = vld [vmem:[#allocation14 + $0x24] sm:$0xf] }
 0x4f9   : > { %1441 = vmatpush.bf16.msrb.mxu1 %v2066_v30 }
 0x4fb   : > { %1452 = vmatpush.bf16.msrb.mxu2 %v2086_v20  ;;  %v2234_v20 = vld [vmem:[#allocation16 + $0x68] sm:$0xff] }
 0x4fc   : > { %1289 = vmatpush.bf16.msrb.mxu0 %v2203_v37  ;;  %v2059_v37 = vld [vmem:[#allocation14 + $0x28] sm:$0xf0] }
 0x4fd   : > { %v2062_v38 = vor.u32 %v2209_v35, %v2059_v37 }
 0x4fe   : > { %v1102_v31 = vpop.f32.mrf.mxu1 }
 0x4ff   : > { %v1163_v32 = vpack.c.bf16 %v1102_v31, %v1102_v31  ;;  %1453 = vmatpush.bf16.msrb.mxu2 %v2078_v25  ;;  %v2067_v31 = vld [vmem:[#allocation14 + $0x38] sm:$0xf0] }
 0x500   : > { %1698 = vmatpush.bf16.msra.mxu0 %v2236_v9 }
 0x501   : > { %2011 = vmatmul.msk.bf16.vlgmr.msra.gmra.mxu1 %vm956_vm7, %v1163_v32  ;;  %v2070_v32 = vor.u32 %v2211_v29, %v2067_v31 }
 0x503   : > { %1454 = vmatpush.bf16.msrb.mxu2 %v2070_v32  ;;  %v2223_v32 = vld [vmem:[#allocation16 + $0x10] sm:$0xff] }
 0x504   : > { %1699 = vmatpush.bf16.msra.mxu0 %v2235_v14 }
 0x506   : > { %v1104_v33 = vpop.f32.mrf.mxu1 }
 0x507   : > { %v2057_v33 = vld [vmem:[#allocation14 + $0x20] sm:$0xf]  ;;  %1455 = vmatpush.bf16.msrb.mxu2 %v2062_v38 }
 0x508   : > { %v2058_v36 = vor.u32 %v2210_v34, %v2057_v33  ;;  %1700 = vmatpush.bf16.msra.mxu0 %v2234_v20 }
 0x50a   : > { %1442 = vmatpush.bf16.msrb.mxu1 %v2058_v36  ;;  %v2232_v36 = vld [vmem:[#allocation16 + $0x58] sm:$0xff] }
 0x50c   : > { %1701 = vmatpush.bf16.msra.mxu0 %v2233_v28 }
 0x510   : > { %1702 = vmatpush.bf16.msra.mxu0 %v2232_v36 }
 0x55f   : > { %v1121_v40 = vpop.f32.mrf.mxu2 }
 0x560   : > { %v1164_v41 = vpack.c.bf16 %v1121_v40, %v1121_v40  ;;  %v2049_v40 = vld [vmem:[#allocation14 + $0x10] sm:$0xf] }
 0x562   : > { %2020 = vmatmul.msk.bf16.vlgmr.msra.gmra.mxu2 %vm956_vm7, %v1164_v41  ;;  %v2208_v41 = vld [vmem:[#allocation14 + $0x14] sm:$0xf0] }
 0x567   : > { %v1123_v42 = vpop.f32.mrf.mxu2 }
 0x568   : > { %v2207_v42 = vld [vmem:[#allocation14 + $0x14] sm:$0xf] }
 0x574   : > { %v1159_v43 = vpop.f32.mrf.mxu0 }
 0x575   : > { %v1166_v44 = vpack.c.bf16 %v1159_v43, %v1159_v43  ;;  %v2050_v43 = vor.u32 %v2208_v41, %v2049_v40 }
 0x577   : > { %v1140_v45 = vpop.f32.mrf.mxu3  ;;  %2038 = vmatmul.msk.bf16.vlgmr.msrb.gmra.mxu0 %vm956_vm7, %v1166_v44  ;;  %v2051_v44 = vld [vmem:[#allocation14 + $0x18] sm:$0xf0]  ;;  %1443 = vmatpush.bf16.msrb.mxu1 %v2050_v43 }
 0x578   : > { %v1165_v46 = vpack.c.bf16 %v1140_v45, %v1140_v45  ;;  %v2041_v45 = vld [vmem:[#allocation14] sm:$0xf] }
 0x57a   : > { %2029 = vmatmul.msk.bf16.vlgmr.msra.gmra.mxu3 %vm956_vm7, %v1165_v46  ;;  %v2206_v46 = vld [vmem:[#allocation14 + $0x4] sm:$0xf0] }
 0x57c   : > { %v1161_v47 = vpop.f32.mrf.mxu0 }
 0x57d   : > { %v2054_v47 = vor.u32 %v2207_v42, %v2051_v44  ;;  %v2222_v42 = vld [vmem:[#allocation16 + $0x8] sm:$0xff] }
 0x57e   : > { %v1207_v48 = vpop.f32.mrf.mxu1 }
 0x57f   : > { %v1142_v49 = vpop.f32.mrf.mxu3  ;;  %1456 = vmatpush.bf16.msrb.mxu2 %v2054_v47 }
 0x580   : > { %v2043_v49 = vld [vmem:[#allocation14 + $0x8] sm:$0xf0] }
 0x586   : > { %v1209_v50 = vpop.f32.mrf.mxu1 }
 0x587   : > { %v2042_v50 = vor.u32 %v2206_v46, %v2041_v45  ;;  %v2231_v46 = vld [vmem:[#allocation16 + $0x50] sm:$0xff] }
 0x588   : > { %1703 = vmatpush.bf16.msra.mxu0 %v2231_v46 }
 0x589   : > { %1444 = vmatpush.bf16.msrb.mxu1 %v2042_v50 }
 0x5e5   : > { %v1235_v51 = vpop.f32.mrf.mxu2 }
 0x5e6   : > { %v1295_v54 = vadd.f32 %v1235_v51, %v1207_v48  ;;  %v2205_v48 = vld [vmem:[#allocation14 + $0x4] sm:$0xf] }
 0x5e7   : > { %v2046_v51 = vor.u32 %v2205_v48, %v2043_v49 }
 0x5e9   : > { %1457 = vmatpush.bf16.msrb.mxu2 %v2046_v51  ;;  %v2221_v51 = vld [vmem:[#allocation16] sm:$0xff] }
 0x5ed   : > { %v1237_v52 = vpop.f32.mrf.mxu2 }
 0x5f4   : > { %v1291_v53 = vpop.f32.mrf.mxu0 }
 0x5fc   : > { %v1293_v55 = vpop.f32.mrf.mxu0 }
 0x5fd   : > { %v1263_v56 = vpop.f32.mrf.mxu3 }
 0x5fe   : > { %v1296_v57 = vadd.f32 %v1295_v54, %v1263_v56 }
 0x600   : > { %v1297_v59 = vadd.f32 %v1296_v57, %v1291_v53 }
 0x602   : > { %v1302_v60 = vadd.f32 %v2378_v58, %v1297_v59 }
 0x604   : > { %v3090_v61 = vadd.f32 %v1302_v60, %v3028_v27 }
 0x605   : > { %v1265_v62 = vpop.f32.mrf.mxu3 }
 0x606   : > { %1306 = vadd.xlane.f32.xlu0 %v3090_v61  ;;  %v2379_v62 = vld [vmem:[%s3187_s9] ss:$0 sm:$0xff] }
 0x679   : > { %v1307_v4 = vpop.xlane.xlu0 %1306 }
 0x67a   : > { %v1308_v6 = vmul.f32 %v1307_v4, %v3024_v8  ;;  %v1351_v4 = vld [vmem:[%s3219_s27] sm:$0x3] }
 0x67b   : > { %v1354_v13 = vperm.slane %v1351_v4, 1 }
 0x67c   : > { %v3095_v7 = vsub.f32 %v3090_v61, %v1308_v6  ;;  %v1353_v6 = vperm.slane %v1351_v4, 0 }
 0x67e   : > { %v1310_v27 = vmul.f32 %v3095_v7, %v3095_v7 }
 0x680   : > { %1311 = vadd.xlane.f32.xlu1 %v1310_v27  ;;  %v2227_v27 = vld [vmem:[#allocation16 + $0x30] sm:$0xff] }
 0x681   : > { %1686 = vmatpush.bf16.msrb.mxu3 %v2227_v27 }
 0x685   : > { %1687 = vmatpush.bf16.msrb.mxu3 %v2226_v11 }
 0x689   : > { %1688 = vmatpush.bf16.msrb.mxu3 %v2225_v16 }
 0x68d   : > { %1689 = vmatpush.bf16.msrb.mxu3 %v2224_v23 }
 0x691   : > { %1690 = vmatpush.bf16.msrb.mxu3 %v2223_v32 }
 0x695   : > { %1691 = vmatpush.bf16.msrb.mxu3 %v2222_v42 }
 0x699   : > { %1692 = vmatpush.bf16.msrb.mxu3 %v2221_v51 }
 0x6f3   : > { %v1312_v52 = vpop.xlane.xlu1 %1311 }
 0x6f4   : > { %v1313_v53 = vmul.f32 %v1312_v52, %v3024_v8  ;;  %v2380_v8 = vld [vmem:[%s3218_s5] ss:$0 sm:$0xff]  ;;  %s1728_s5 = sshll.u32 %s1724_s24, 4  ;;  %s1729_s5 = int_to_ptr.hbm [resolvable:$true] %s1728_s5 }
 0x6f5   : > { %s2694_s23 = sshra.s32 %s1729_s5, 4  ;;  %s2695_s23 = int_to_ptr.hbm [resolvable:$true] %s2694_s23 }
 0x6f6   : > { %v1314_v54 = vadd.f32 1e-05, %v1313_v53  ;;  %s2696_s3 = scalar_lea.hbm %s2695_s23, 8  ;;  %p2701_p12 = scmp.lt.s32.totalorder %s2695_s23, %s3221_s30 }
 0x6f7   : > { %p2697_p1 = scmp.ne.s32.totalorder %s2695_s23, %s2696_s3  ;;  %p2702_p7 = scmp.lt.s32.totalorder %s2700_s2, %s2696_s3 }
 0x6f8   : > { %2404 = vrsqrt.f32 %v1314_v54  ;;  %vm1321_vm11 = vweird.f32 %v1314_v54 }
 0x6f9   : > { %p2698_p3 = pnand %p2697_p1, %p2969_p5  ;;  %p2703_p8 = por %p2702_p7, %p2701_p12 }
 0x6fb   : > { %p2699_p4 = pneg %p2698_p3 }
 0x6fd   : > { %p2704_p9 = pnand %p2703_p8, %p2699_p4 }
 0x6fe   : > { %v2405_v55 = vpop.eup %2404 }
 0x6ff   : > { %v1316_v56 = vmul.f32 %v2405_v55, %v1314_v54  ;;  %vm1322_vm10 = vweird.f32 %v2405_v55 }
 0x700   : > { %vm1323_vm12 = vmor %vm1321_vm11, %vm1322_vm10 }
 0x701   : > { %v1317_v57 = vmul.f32 %v2405_v55, %v1316_v56 }
 0x703   : > { %v1318_v58 = vmul.f32 0.5, %v1317_v57 }
 0x705   : > { %v1319_v59 = vsub.f32 1.5, %v1318_v58 }
 0x707   : > { %v1320_v60 = vmul.f32 %v2405_v55, %v1319_v59 }
 0x709   : > { %v1324_v63 = vsel %vm1323_vm12, %v2405_v55, %v1320_v60  ;;  %v2230_v55 = vld [vmem:[#allocation16 + $0x48] sm:$0xff] }
 0x70a   : > { %v1325_v0 = vmul.f32 %v1324_v63, %v3095_v7  ;;  %1704 = vmatpush.bf16.msra.mxu0 %v2230_v55  ;;  %v2229_v63 = vld [vmem:[#allocation16 + $0x40] sm:$0xff] }
 0x70c   : > { %v1329_v1 = vmul.f32 %v2379_v62, %v1325_v0 }
 0x70e   : > { %v1333_v39 = vadd.f32 %v2380_v8, %v1329_v1  ;;  %1705 = vmatpush.bf16.msra.mxu0 %v2229_v63 }
 0x710   : > { %v1334_v2 = vpack.c.bf16 %v1333_v39, %v1333_v39 }
 0x712   : > { %1445 = vmatmul.bf16.vlgmr.msrb.gmra.mxu1 %v1334_v2  ;;  %1458 = vmatmul.bf16.vlgmr.msrb.gmra.mxu2 %v1334_v2 }
 0x78f   : > { %v1446_v7 = vpop.f32.mrf.mxu1 }
 0x790   : > { %v3110_v10 = vadd.f32 %v1446_v7, %v1353_v6 }
 0x792   : > { %v3113_v12 = vmul.f32 0.70710677, %v3110_v10 }
 0x794   : > { %v1467_v15 = vmul.f32 %v3113_v12, %v3113_v12 }
 0x795   : > { %v1459_v17 = vpop.f32.mrf.mxu2 }
 0x796   : > { %v3117_v18 = vmin.f32 %v1467_v15, 16.0  ;;  %v3119_v19 = vadd.f32 %v1459_v17, %v1354_v13 }
 0x797   : > { %v1448_v5 = vpop.f32.mrf.mxu1 }
 0x798   : > { %v1469_v21 = vmul.f32 2.1237322e-06, %v3117_v18  ;;  %v1480_v22 = vmul.f32 3.8918573e-05, %v3117_v18  ;;  %v3124_v24 = vmul.f32 0.70710677, %v3119_v19 }
 0x799   : > { %v1464_v46 = vmul.f32 0.5, %v3119_v19 }
 0x79a   : > { %v1470_v25 = vadd.f32 0.00028619796, %v1469_v21  ;;  %v1481_v26 = vadd.f32 0.001143296, %v1480_v22  ;;  %v1507_v29 = vmul.f32 %v3124_v24, %v3124_v24 }
 0x79c   : > { %v1471_v30 = vmul.f32 %v1470_v25, %v3117_v18  ;;  %v1482_v31 = vmul.f32 %v1481_v26, %v3117_v18  ;;  %v1508_v33 = vmin.f32 %v1507_v29, 16.0 }
 0x79d   : > { %v1461_v34 = vpop.f32.mrf.mxu2 }
 0x79e   : > { %v1483_v35 = vadd.f32 0.014752088, %v1482_v31  ;;  %v1472_v37 = vadd.f32 0.0036580483, %v1471_v30  ;;  %v1509_v38 = vmul.f32 2.1237322e-06, %v1508_v33 }
 0x79f   : > { %v1520_v40 = vmul.f32 3.8918573e-05, %v1508_v33 }
 0x7a0   : > { %v1484_v41 = vmul.f32 %v1483_v35, %v3117_v18  ;;  %v1510_v43 = vadd.f32 0.00028619796, %v1509_v38  ;;  %v1473_v47 = vmul.f32 %v1472_v37, %v3117_v18  ;;  %v1463_v37 = vmul.f32 0.5, %v3110_v10 }
 0x7a1   : > { %v1521_v44 = vadd.f32 0.001143296, %v1520_v40 }
 0x7a2   : > { %v1485_v45 = vadd.f32 0.112945676, %v1484_v41  ;;  %v1511_v48 = vmul.f32 %v1510_v43, %v1508_v33  ;;  %v1474_v56 = vadd.f32 0.05243302, %v1473_v47 }
 0x7a3   : > { %v1522_v49 = vmul.f32 %v1521_v44, %v1508_v33 }
 0x7a4   : > { %v1486_v50 = vmul.f32 %v1485_v45, %v3117_v18  ;;  %v1512_v54 = vadd.f32 0.0036580483, %v1511_v48  ;;  %v1475_v0 = vmul.f32 %v1474_v56, %v3117_v18 }
 0x7a5   : > { %v1523_v52 = vadd.f32 0.014752088, %v1522_v49 }
 0x7a6   : > { %v1487_v53 = vadd.f32 0.4994258, %v1486_v50  ;;  %v1513_v62 = vmul.f32 %v1512_v54, %v1508_v33  ;;  %v1476_v2 = vadd.f32 0.18741608, %v1475_v0 }
 0x7a7   : > { %v1524_v57 = vmul.f32 %v1523_v52, %v1508_v33 }
 0x7a8   : > { %v1488_v58 = vmul.f32 %v1487_v53, %v3117_v18  ;;  %v1514_v39 = vadd.f32 0.05243302, %v1513_v62  ;;  %v1477_v9 = vmul.f32 %v1476_v2, %v3117_v18 }
 0x7a9   : > { %v1525_v59 = vadd.f32 0.112945676, %v1524_v57 }
 0x7aa   : > { %v1489_v60 = vadd.f32 1.0, %v1488_v58  ;;  %v1515_v27 = vmul.f32 %v1514_v39, %v1508_v33  ;;  %v1478_v15 = vadd.f32 1.1283791, %v1477_v9 }
 0x7ab   : > { %v1526_v8 = vmul.f32 %v1525_v59, %v1508_v33 }
 0x7ac   : > { %2406 = vrcp.f32 %v1489_v60  ;;  %v1501_v13 = vand.u32 2147483648, %v1489_v60  ;;  %v1516_v14 = vadd.f32 0.18741608, %v1515_v27  ;;  %v1499_v17 = vand.u32 2147483647, %v1489_v60 }
 0x7ad   : > { %v1527_v1 = vadd.f32 0.4994258, %v1526_v8  ;;  %vm1495_vm14 = vweird.f32 %v1489_v60  ;;  %v1479_v25 = vmul.f32 %v1478_v15, %v3113_v12 }
 0x7ae   : > { %v1502_v21 = vor.u32 1.1754944e-38, %v1501_v13  ;;  %v1517_v22 = vmul.f32 %v1516_v14, %v1508_v33  ;;  %vm1500_vm0 = vcmp.eq.f32.partialorder %v1499_v17, 8.507059e+37 }
 0x7af   : > { %v1528_v3 = vmul.f32 %v1527_v1, %v1508_v33 }
 0x7b0   : > { %v1518_v31 = vadd.f32 1.1283791, %v1517_v22 }
 0x7b1   : > { %v1529_v4 = vadd.f32 1.0, %v1528_v3 }
 0x7b2   : > { %v2407_v6 = vpop.eup %2406  ;;  %v1519_v12 = vmul.f32 %v1518_v31, %v3124_v24  ;;  %v2381_v24 = vld [vmem:[%s3220_s14] ss:$0 sm:$0xff] }
 0x7b3   : > { %v1491_v7 = vmul.f32 %v2407_v6, %v1489_v60  ;;  %2408 = vrcp.f32 %v1529_v4  ;;  %vm1496_vm13 = vweird.f32 %v2407_v6  ;;  %v1541_v30 = vand.u32 2147483648, %v1529_v4 }
 0x7b4   : > { %vm1497_vm15 = vmor %vm1495_vm14, %vm1496_vm13  ;;  %v1539_v34 = vand.u32 2147483647, %v1529_v4  ;;  %vm1535_vm2 = vweird.f32 %v1529_v4 }
 0x7b5   : > { %v1492_v11 = vsub.f32 1.0, %v1491_v7  ;;  %v1542_v33 = vor.u32 1.1754944e-38, %v1541_v30 }
 0x7b6   : > { %vm1540_vm4 = vcmp.eq.f32.partialorder %v1539_v34, 8.507059e+37 }
 0x7b7   : > { %v1493_v16 = vmul.f32 %v2407_v6, %v1492_v11 }
 0x7b9   : > { %v2409_v20 = vpop.eup %2408  ;;  %v1494_v5 = vadd.f32 %v2407_v6, %v1493_v16 }
 0x7ba   : > { %v1531_v23 = vmul.f32 %v2409_v20, %v1529_v4  ;;  %vm1536_vm1 = vweird.f32 %v2409_v20 }
 0x7bb   : > { %v1498_v26 = vsel %vm1497_vm15, %v2407_v6, %v1494_v5  ;;  %vm1537_vm3 = vmor %vm1535_vm2, %vm1536_vm1 }
 0x7bc   : > { %v1503_v18 = vsel %vm1500_vm0, %v1502_v21, %v1498_v26  ;;  %v1532_v28 = vsub.f32 1.0, %v1531_v23 }
 0x7bd   : > { %v1504_v29 = vmul.f32 %v1503_v18, %v1479_v25 }
 0x7be   : > { %v1533_v32 = vmul.f32 %v2409_v20, %v1532_v28 }
 0x7bf   : > { %v2103_v35 = vclamps-f32 %v1504_v29, 1.0 }
 0x7c0   : > { %v1534_v36 = vadd.f32 %v2409_v20, %v1533_v32 }
 0x7c1   : > { %v1547_v38 = vadd.f32 1.0, %v2103_v35 }
 0x7c2   : > { %v1538_v40 = vsel %vm1537_vm3, %v2409_v20, %v1534_v36 }
 0x7c3   : > { %v1549_v41 = vmul.f32 %v1547_v38, %v1463_v37  ;;  %v1543_v42 = vsel %vm1540_vm4, %v1542_v33, %v1538_v40 }
 0x7c4   : > { %v1544_v43 = vmul.f32 %v1543_v42, %v1519_v12 }
 0x7c5   : > { %v1551_v44 = vpack.c.bf16 %v1549_v41, %v1549_v41 }
 0x7c6   : > { %v2104_v45 = vclamps-f32 %v1544_v43, 1.0 }
 0x7c7   : > { %1693 = vmatmul.bf16.vlgmr.msrb.gmra.mxu3 %v1551_v44 }
 0x7c8   : > { %v1548_v47 = vadd.f32 1.0, %v2104_v45 }
 0x7ca   : > { %v1550_v48 = vmul.f32 %v1548_v47, %v1464_v46 }
 0x7cc   : > { %v1552_v10 = vpack.c.bf16 %v1550_v48, %v1550_v48 }
 0x7ce   : > { %1706 = vmatmul.bf16.vlgmr.msra.gmra.mxu0 %v1552_v10 }
 0x84a   : > { %v1694_v49 = vpop.f32.mrf.mxu3 }
 0x84b   : > { %v1695_v50 = vadd.f32 %v2381_v24, %v1694_v49  ;;  %v1707_v51 = vpop.f32.mrf.mxu0 }
 0x84d   : > { %v1708_v19 = vadd.f32 %v1707_v51, %v1695_v50 }
 0x84f   : > { %v1711_v52 = vadd.f32 %v1708_v19, %v3090_v61 }
 0x851   : > { %1712 = vst [vmem:[%s635_s28] sm:$0xff] %v1711_v52 }
 0x852   : > { %v1696_v53 = vpop.f32.mrf.mxu3 }
 0x853   : > { %2707 = shalt.err (!%p2704_p9)
}
 0x854   : > { %2271 = dma.vmem_to_hbm [thread:$0]  (%p2969_p5), %s1727_s16, 128, %s1729_s5, %s1714_s25   ;;  %v1709_v61 = vpop.f32.mrf.mxu0 }
 0x855 PF: > { %s1740_s12 = sand.u32 1, %s2750_s18   ;;  %p3222_p10 = scmp.ge.s32.totalorder %s2762_s21, 2 }
 0x856   : > { %s1741_s14 = scalar_lea.sflag [#allocation4], %s1740_s12 }
 0x857   : > { %p2303_p13 = pnand %p3222_p10, %p2973_p6 }
 0x859   : > { %p2304_p11 = pneg %p2303_p13 }
 0x85b   : > { %2745 = dma.done.wait (%p2304_p11), %s1741_s14, 128  }
 0x85c   : > { %2747 = vsyncadd (%p2304_p11), %s1741_s14, 4294967168  ;;  %p32_p0 = scmp.ge.s32.totalorder %s2943_s10, 4   ;;  %s3223_s18 = smov %s2754_s19 }
 0x85d   : > { %s3224_s19 = smov %s2758_s20  ;;  %s3225_s20 = smov %s2954_s22 }
 0x85e   : > { %s3226_s21 = smov %s2943_s10  ;;  %34 = sbr.rel (!%p32_p0) target bundleno = 20 (0x14), region = 157 }
 0x863   :  { %1747 = vsyncpa [#allocation3], 1 }
 0x864   :  { %1749 = vsyncpa [#allocation3 + $0x1], 1 }
 0x865   :  { %1750 = vsyncpa [#allocation6], 1 }
 0x866   :  { %1751 = vsyncpa [#allocation9], 1 }
 0x867   :  { %1752 = vsyncpa [#allocation12], 1 }
 0x868   :  { %1753 = vsyncpa [#allocation15], 1 }
 0x869   :  { %1754 = vsyncpa [#allocation4], 1 }
 0x86a   :  { %1756 = vsyncpa [#allocation4 + $0x1], 1 }

// kernel: tpu_custom_call.1
= control target key start
LH: loop header
LB: loop body
LE: loop exit
PB: predicated region body
PF: predicated region fallthrough
CT: control target
= control target key end

     0   :  { %s3178_s0 = inlined_call_operand.hbm [shape: bf16[2,8,128], index: 0, kind: input, shape index: {}]   ;;  %s3179_s1 = inlined_call_operand.hbm [shape: f32[1,128], index: 1, kind: input, shape index: {}]   ;;  %s3180_s2 = inlined_call_operand.hbm [shape: f32[1,128], index: 2, kind: input, shape index: {}]   ;;  %s3181_s3 = inlined_call_operand.hbm [shape: f32[1,128], index: 3, kind: input, shape index: {}]   ;;  %s3182_s4 = inlined_call_operand.hbm [shape: f32[1,128], index: 4, kind: input, shape index: {}]   ;;  %s3183_s5 = inlined_call_operand.hbm [shape: bf16[128,384], index: 5, kind: input, shape index: {}]   ;;  %s3184_s6 = inlined_call_operand.vmem [shape: f32[1,384], index: 6, kind: input, shape index: {}]   ;;  %s3185_s7 = inlined_call_operand.hbm [shape: bf16[4,32,128], index: 7, kind: input, shape index: {}]   ;;  %s3186_s8 = inlined_call_operand.vmem [shape: f32[1,128], index: 8, kind: input, shape index: {}]   ;;  %s3187_s9 = inlined_call_operand.vmem [shape: f32[1,128], index: 9, kind: input, shape index: {}]   ;;  %s3188_s10 = inlined_call_operand.vmem [shape: f32[1,128], index: 10, kind: input, shape index: {}]   ;;  %s3189_s11 = inlined_call_operand.hbm [shape: bf16[128,256], index: 11, kind: input, shape index: {}]   ;;  %s3190_s12 = inlined_call_operand.vmem [shape: f32[1,256], index: 12, kind: input, shape index: {}]   ;;  %s3191_s13 = inlined_call_operand.hbm [shape: bf16[256,128], index: 13, kind: input, shape index: {}]   ;;  %s3192_s14 = inlined_call_operand.vmem [shape: f32[1,128], index: 14, kind: input, shape index: {}]   ;;  %s3193_s15 = inlined_call_operand.hbm [shape: f32[2,8,128], index: 15, kind: output, shape index: {}]  }
   0x1   :  { %3195 = sst [smem:[#allocation24_spill]] %s3179_s1 }
   0x2   :  { %3196 = sst [smem:[#allocation25_spill]] %s3180_s2 }
   0x3   :  { %3197 = sst [smem:[#allocation26_spill]] %s3181_s3 }
   0x4   :  { %3198 = sst [smem:[#allocation27_spill]] %s3182_s4 }
   0x5   :  { %3199 = sst [smem:[#allocation28_spill]] %s3183_s5 }
   0x6   :  { %3200 = sst [smem:[#allocation29_spill]] %s3188_s10 }
   0x7   :  { %3201 = sst [smem:[#allocation30_spill]] %s3189_s11 }
   0x8   :  { %3202 = sst [smem:[#allocation31_spill]] %s3190_s12 }
   0x9   :  { %3203 = sst [smem:[#allocation32_spill]] %s3192_s14 }
   0xa   :  { %3204 = sst [smem:[#allocation33_spill]] %s3193_s15 }
   0xb   :  { %20 = vsyncpa [#allocation3], 0 }
   0xc   :  { %22 = vsyncpa [#allocation3 + $0x1], 0 }
   0xd   :  { %23 = vsyncpa [#allocation6], 0 }
   0xe   :  { %24 = vsyncpa [#allocation9], 0 }
   0xf   :  { %25 = vsyncpa [#allocation12], 0 }
  0x10   :  { %26 = vsyncpa [#allocation15], 0 }
  0x11   :  { %27 = vsyncpa [#allocation4], 0 }
  0x12   :  { %29 = vsyncpa [#allocation4 + $0x1], 0  ;;  %s2862_s18 = smov 0   ;;  %s2864_s19 = smov 0  }
  0x13   :  { %s2866_s20 = smov 0   ;;  %s2868_s21 = smov 0  }
  0x14 LB: > { %s3205_s1 = sld [smem:[#allocation24_spill]]  ;;  %s2886_s25 = sadd.s32 4294967295, %s2762_s21   ;;  %s2762_s21 = sphi %s2868_s21, %s3226_s21   ;;  %s2758_s20 = sphi %s2866_s20, %s3225_s20   ;;  %s2754_s19 = sphi %s2864_s19, %s3224_s19   ;;  %s2750_s18 = sphi %s2862_s18, %s3223_s18  }
  0x15   : > { %p1876_p0 = scmp.ge.s32.totalorder %s2762_s21, 1  ;;  %p56_p1 = scmp.eq.s32.totalorder %s2886_s25, 0 }
  0x16   : > { %p386_p2 = scmp.lt.s32.totalorder %s2762_s21, 3  ;;  %s2764_s27 = smov [#allocation5]  }
  0x17   : > { %s400_s28 = sshll.u32 %s2764_s27, 4  ;;  %s3207_s3 = sld [smem:[#allocation26_spill]]  ;;  %s401_s28 = int_to_ptr.vmem [resolvable:$true] %s400_s28 }
  0x18   : > { %p2891_p3 = pnand %p1876_p0, %p386_p2  ;;  %s2765_s22 = smov [#allocation8]  }
  0x19   : > { %s424_s23 = sshll.u32 %s2765_s22, 4  ;;  %s3209_s5 = sld [smem:[#allocation28_spill]]  ;;  %s425_s23 = int_to_ptr.vmem [resolvable:$true] %s424_s23 }
  0x1a   : > { %s398_s24 = sshll.u32 %s3205_s1, 4  ;;  %p2273_p5 = pneg %p2891_p3  ;;  %s399_s24 = int_to_ptr.hbm [resolvable:$true] %s398_s24 }
  0x1b   : > { %s2766_s29 = smov [#allocation11]   ;;  %s3210_s11 = sld [smem:[#allocation30_spill]] }
  0x1c   : > { %p2903_p6 = pnand %p2273_p5, %p56_p1  ;;  %s447_s30 = sshll.u32 %s2766_s29, 4  ;;  %s448_s30 = int_to_ptr.vmem [resolvable:$true] %s447_s30 }
  0x1d   : > { %s422_s16 = sshll.u32 %s3207_s3, 4  ;;  %s2767_s10 = smov 192   ;;  %s423_s16 = int_to_ptr.hbm [resolvable:$true] %s422_s16 }
  0x1e   : > { %2276 = dma.hbm_to_vmem [thread:$0]  (!%p2903_p6), %s399_s24, 16, %s401_s28, [#allocation6]  }
  0x1f   : > { %s445_s15 = sshll.u32 %s3209_s5, 4  ;;  %s2768_s22 = smov 12   ;;  %s446_s15 = int_to_ptr.hbm [resolvable:$true] %s445_s15 }
  0x20   : > { %2282 = dma.hbm_to_vmem [thread:$0]  (!%p2903_p6), %s423_s16, 16, %s425_s23, [#allocation9]  }
  0x21   : > { %s485_s12 = sshll.u32 %s3210_s11, 4  ;;  %s2769_s1 = smov [#allocation14]   ;;  %s486_s12 = int_to_ptr.hbm [resolvable:$true] %s485_s12 }
  0x22   : > { %2288 = dma.hbm_to_vmem [thread:$0]  (!%p2903_p6), %s446_s15, 3072, %s448_s30, [#allocation12], %s2767_s10, %s2767_s10, %s2768_s22  }
  0x23   : > { %s487_s27 = sshll.u32 %s2769_s1, 4  ;;  %s2770_s5 = smov 128   ;;  %s488_s27 = int_to_ptr.vmem [resolvable:$true] %s487_s27 }
  0x24   : > { %s2771_s24 = smov 8   ;;  %s3211_s2 = sld [smem:[#allocation25_spill]] }
  0x25   : > { %2294 = dma.hbm_to_vmem [thread:$0]  (!%p2903_p6), %s486_s12, 2048, %s488_s27, [#allocation15], %s2770_s5, %s2770_s5, %s2771_s24  }
  0x26   : > { %s2772_s3 = smov [#allocation7]   ;;  %s3212_s4 = sld [smem:[#allocation27_spill]] }
  0x27   : > { %s412_s14 = sshll.u32 %s2772_s3, 4  ;;  %s2773_s15 = smov [#allocation10]   ;;  %s413_s14 = int_to_ptr.vmem [resolvable:$true] %s412_s14 }
  0x28   : > { %s436_s30 = sshll.u32 %s2773_s15, 4  ;;  %s462_s12 = sshll.u32 %s3185_s7, 4  ;;  %s437_s30 = int_to_ptr.vmem [resolvable:$true] %s436_s30  ;;  %s463_s12 = int_to_ptr.hbm [resolvable:$true] %s462_s12 }
  0x29   : > { %s2774_s11 = smov [#allocation13]   ;;  %s502_s28 = sshll.u32 %s3191_s13, 4  ;;  %s503_s28 = int_to_ptr.hbm [resolvable:$true] %s502_s28 }
  0x2a   : > { %s410_s23 = sshll.u32 %s3211_s2, 4  ;;  %s464_s1 = sshll.u32 %s2774_s11, 4  ;;  %s411_s23 = int_to_ptr.hbm [resolvable:$true] %s410_s23  ;;  %s465_s1 = int_to_ptr.vmem [resolvable:$true] %s464_s1 }
  0x2b   : > { %2279 = dma.hbm_to_vmem [thread:$0]  (!%p2903_p6), %s411_s23, 16, %s413_s14, [#allocation6]  }
  0x2c   : > { %s434_s10 = sshll.u32 %s3212_s4, 4  ;;  %s2775_s16 = smov 64   ;;  %s435_s10 = int_to_ptr.hbm [resolvable:$true] %s434_s10 }
  0x2d   : > { %2285 = dma.hbm_to_vmem [thread:$0]  (!%p2903_p6), %s435_s10, 16, %s437_s30, [#allocation9]  }
  0x2e   : > { %s2776_s23 = smov 4   ;;  %s2777_s3 = smov [#allocation16]  }
  0x2f   : > { %2291 = dma.hbm_to_vmem [thread:$0]  (!%p2903_p6), %s463_s12, 1024, %s465_s1, [#allocation12], %s2775_s16, %s2775_s16, %s2776_s23  }
  0x30   : > { %s504_s14 = sshll.u32 %s2777_s3, 4  ;;  %s1875_s29 = sadd.s32 4294967294, %s2762_s21   ;;  %s505_s14 = int_to_ptr.vmem [resolvable:$true] %s504_s14 }
  0x31   : > { %2297 = dma.hbm_to_vmem [thread:$0]  (!%p2903_p6), %s503_s28, 2048, %s505_s14, [#allocation15], %s2775_s16, %s2775_s16, %s2776_s23  }
  0x32   : > { %s2943_s10 = sadd.s32 1, %s2762_s21   ;;  %s42_s30 = sadd.s32 1, %s2758_s20 }
  0x33   : > { %s39_s15 = ssub.s32 %s2762_s21, %s2943_s10  ;;  %p49_p8 = scmp.ne.s32.totalorder %s2758_s20, %s2754_s19 }
  0x34   : > { %p40_p7 = scmp.eq.s32.totalorder %s39_s15, 0  ;;  %p50_p9 = scmp.eq.s32.totalorder %s2762_s21, 0 }
  0x35   : > { %p55_p10 = scmp.ne.s32.totalorder %s2754_s19, %s2750_s18  ;;  %p373_p13 = scmp.eq.s32.totalorder %s2886_s25, 1 }
  0x36   : > { %s2954_s22 = scalar_select %p40_p7, %s2758_s20, %s42_s30  }
  0x37   : > { %p2956_p11 = por %p50_p9, %p49_p8  ;;  %p2962_p12 = por %p56_p1, %p55_p10 }
  0x38   : > { %p379_p0 = scmp.eq.s32.totalorder %s1875_s29, 1  ;;  %p2314_p2 = scmp.lt.s32.totalorder %s2762_s21, 2 }
  0x39   : > { %s521_s12 = sand.u32 1, %s2758_s20   ;;  %p2969_p5 = por %p373_p13, %p49_p8 }
  0x3a   : > { %p2973_p6 = por %p379_p0, %p55_p10  ;;  %s1886_s27 = sshll.u32 %s521_s12, 2 }
  0x3b   : > { %s1887_s24 = sshll.u32 %s2762_s21, 2  ;;  %s525_s3 = scalar_lea.vmem [#allocation2], %s1886_s27 }
  0x3c   : > { %s529_s23 = scalar_lea.hbm %s3178_s0, %s1887_s24  ;;  %s533_s14 = sshll.u32 %s525_s3, 4  ;;  %s534_s14 = int_to_ptr.vmem [resolvable:$true] %s533_s14 }
  0x3d   : > { %s531_s15 = sshll.u32 %s529_s23, 4  ;;  %p2983_p7 = pnand %p2314_p2, %p2956_p11  ;;  %s532_s15 = int_to_ptr.hbm [resolvable:$true] %s531_s15 }
  0x3e   : > { %s522_s30 = scalar_lea.sflag [#allocation3], %s521_s12  ;;  %s2650_s2 = sshra.s32 %s532_s15, 4  ;;  %s2651_s2 = int_to_ptr.hbm [resolvable:$true] %s2650_s2 }
  0x3f   : > { %s2652_s4 = scalar_lea.hbm %s2651_s2, 4  ;;  %p2654_p9 = pneg %p2983_p7 }
  0x40   : > { %p2653_p8 = scmp.ne.s32.totalorder %s2651_s2, %s2652_s4  ;;  %s2657_s28 = scalar_lea.hbm %s3178_s0, 8 }
  0x41   : > { %p2658_p11 = scmp.lt.s32.totalorder %s2651_s2, %s3178_s0  ;;  %p2659_p0 = scmp.lt.s32.totalorder %s2657_s28, %s2652_s4 }
  0x42   : > { %p2655_p10 = pnand %p2654_p9, %p2653_p8 }
  0x43   : > { %p2660_p2 = por %p2659_p0, %p2658_p11 }
  0x44   : > { %p2656_p13 = pneg %p2655_p10 }
  0x46   : > { %p2661_p4 = pnand %p2660_p2, %p2656_p13 }
  0x48   : > { %2664 = shalt.err (!%p2661_p4)
}
  0x49   : > { %2301 = dma.hbm_to_vmem [thread:$0]  (!%p2983_p7), %s532_s15, 64, %s534_s14, %s522_s30  }
  0x4a   : > { %542 = sbr.rel (%p2891_p3) target bundleno = 2133 (0x855), region = 80  ;;  %s3000_s12 = sand.u32 (!%p2891_p3), 1, %s2754_s19  }
  0x4b   : > { %s1889_s23 = sshll.u32 (!%p2891_p3), %s3000_s12, 2  ;;  %s545_s3 = scalar_lea.sflag (!%p2891_p3), [#allocation3], %s3000_s12 }
  0x4c   : > { %s548_s27 = scalar_lea.vmem (!%p2891_p3), [#allocation2], %s1889_s23 }
  0x4f   : > { %2725 = dma.done.wait (%p2962_p12), %s545_s3, 64  }
  0x50   : > { %2727 = vsyncadd (%p2962_p12), %s545_s3, 4294967232 }
  0x51   : > { %2729 = dma.done.wait (%p56_p1), [#allocation6], 32  }
  0x52   : > { %2731 = vsyncadd (%p56_p1), [#allocation6], 4294967264 }
  0x53   : > { %2733 = dma.done.wait (%p56_p1), [#allocation9], 32  }
  0x54   : > { %2735 = vsyncadd (%p56_p1), [#allocation9], 4294967264 }
  0x55   : > { %2737 = dma.done.wait (%p56_p1), [#allocation12], 4096  }
  0x56   : > { %2739 = vsyncadd (%p56_p1), [#allocation12], 4294963200 }
  0x57   : > { %2741 = dma.done.wait (%p56_p1), [#allocation15], 4096  }
  0x58   : > { %2743 = vsyncadd (%p56_p1), [#allocation15], 4294963200  ;;  %v637_v0 = vld [vmem:[%s548_s27] sm:$0xf]  ;;  %v2778_v2 = vmov 128.0   ;;  %vm956_vm7 = vcmask 261120  }
  0x59   : > { %v638_v1 = vunpack.c.l.bf16 %v637_v0  ;;  %2382 = vrcp.f32 %v2778_v2  ;;  %v2374_v22 = vld [vmem:[#allocation5] ss:$0 sm:$0xff]  ;;  %v2375_v25 = vld [vmem:[#allocation7] ss:$0 sm:$0xff]  ;;  %v1985_v28 = vld [vmem:[#allocation11 + $0xa8] sm:$0xf] }
  0x5a   : > { %v2195_v29 = vld [vmem:[#allocation11 + $0xb0] sm:$0xf0]  ;;  %v2194_v30 = vld [vmem:[#allocation11 + $0xac] sm:$0xf]  ;;  %v1987_v32 = vld [vmem:[#allocation11 + $0xb4] sm:$0xf0] }
  0x5b   : > { %641 = vadd.xlane.f32.xlu0 %v638_v1  ;;  %v1986_v31 = vor.u32 %v2195_v29, %v1985_v28  ;;  %v1993_v33 = vld [vmem:[#allocation11 + $0xb0] sm:$0xf]  ;;  %v2196_v34 = vld [vmem:[#allocation11 + $0xb8] sm:$0xf0]  ;;  %v1990_v35 = vor.u32 %v2194_v30, %v1987_v32  ;;  %v2191_v43 = vld [vmem:[#allocation11 + $0x94] sm:$0xf] }
  0x5c   : > { %v1994_v36 = vor.u32 %v2196_v34, %v1993_v33  ;;  %v1973_v41 = vld [vmem:[#allocation11 + $0x90] sm:$0xf]  ;;  %v2192_v42 = vld [vmem:[#allocation11 + $0x98] sm:$0xf0]  ;;  %v1975_v45 = vld [vmem:[#allocation11 + $0x9c] sm:$0xf0] }
  0x5d   : > { %875 = vmatpush.bf16.msra.mxu0 %v1986_v31  ;;  %888 = vmatpush.bf16.msra.mxu1 %v1990_v35  ;;  %v1974_v44 = vor.u32 %v2192_v42, %v1973_v41  ;;  %v1981_v46 = vld [vmem:[#allocation11 + $0x98] sm:$0xf]  ;;  %v2193_v47 = vld [vmem:[#allocation11 + $0xa0] sm:$0xf0]  ;;  %v1978_v48 = vor.u32 %v2191_v43, %v1975_v45  ;;  %v2188_v52 = vld [vmem:[#allocation11 + $0x7c] sm:$0xf] }
  0x5e   : > { %901 = vmatpush.bf16.msra.mxu2 %v1994_v36  ;;  %v1982_v49 = vor.u32 %v2193_v47, %v1981_v46  ;;  %v1961_v50 = vld [vmem:[#allocation11 + $0x78] sm:$0xf]  ;;  %v2189_v51 = vld [vmem:[#allocation11 + $0x80] sm:$0xf0]  ;;  %v1963_v54 = vld [vmem:[#allocation11 + $0x84] sm:$0xf0] }
  0x5f   : > { %v2383_v3 = vpop.eup %2382  ;;  %v1962_v53 = vor.u32 %v2189_v51, %v1961_v50  ;;  %v1969_v55 = vld [vmem:[#allocation11 + $0x80] sm:$0xf]  ;;  %v2190_v56 = vld [vmem:[#allocation11 + $0x88] sm:$0xf0]  ;;  %v1966_v57 = vor.u32 %v2188_v52, %v1963_v54  ;;  %v2185_v61 = vld [vmem:[#allocation11 + $0x64] sm:$0xf] }
  0x60   : > { %v644_v4 = vmul.f32 128.0, %v2383_v3  ;;  %vm648_vm0 = vweird.f32 %v2383_v3  ;;  %v1970_v58 = vor.u32 %v2190_v56, %v1969_v55  ;;  %v1949_v59 = vld [vmem:[#allocation11 + $0x60] sm:$0xf]  ;;  %v2186_v60 = vld [vmem:[#allocation11 + $0x68] sm:$0xf0]  ;;  %s2779_s26 = smov 64  }
  0x61   : > { %876 = vmatpush.bf16.msra.mxu0 %v1974_v44  ;;  %889 = vmatpush.bf16.msra.mxu1 %v1978_v48  ;;  %v1950_v62 = vor.u32 %v2186_v60, %v1949_v59  ;;  %v1951_v63 = vld [vmem:[#allocation11 + $0x6c] sm:$0xf0]  ;;  %v1957_v0 = vld [vmem:[#allocation11 + $0x68] sm:$0xf]  ;;  %v1921_v29 = vld [vmem:[#allocation11 + $0x20] sm:$0xf] }
  0x62   : > { %v645_v5 = vsub.f32 1.0, %v644_v4  ;;  %902 = vmatpush.bf16.msra.mxu2 %v1982_v49  ;;  %v1954_v2 = vor.u32 %v2185_v61, %v1951_v63  ;;  %v1937_v4 = vld [vmem:[#allocation11 + $0x48] sm:$0xf]  ;;  %v2178_v30 = vld [vmem:[#allocation11 + $0x28] sm:$0xf0]  ;;  %s2780_s17 = smov 96  }
  0x63   : > { %v1915_v28 = vld [vmem:[#allocation11 + $0x24] sm:$0xf0]  ;;  %v1922_v32 = vor.u32 %v2178_v30, %v1921_v29  ;;  %v1901_v33 = vld [vmem:[#allocation11] sm:$0xf]  ;;  %v2174_v34 = vld [vmem:[#allocation11 + $0x8] sm:$0xf0] }
  0x64   : > { %v646_v6 = vmul.f32 %v2383_v3, %v645_v5  ;;  %v2183_v5 = vld [vmem:[#allocation11 + $0x50] sm:$0xf0]  ;;  %v2173_v35 = vld [vmem:[#allocation11 + $0x4] sm:$0xf]  ;;  %v1902_v36 = vor.u32 %v2174_v34, %v1901_v33  ;;  %v2376_v52 = vld [vmem:[#allocation8] ss:$0 sm:$0xff] }
  0x65   : > { %877 = vmatpush.bf16.msra.mxu0 %v1962_v53  ;;  %890 = vmatpush.bf16.msra.mxu1 %v1966_v57  ;;  %v2377_v55 = vld [vmem:[#allocation10] ss:$0 sm:$0xff]  ;;  %v739_v59 = vld [vmem:[%s3184_s6] sm:$0x7]  ;;  %vm1089_vm8 = vcmask 1043456   ;;  %s2781_s14 = smov 32  }
  0x66   : > { %v647_v7 = vadd.f32 %v2383_v3, %v646_v6  ;;  %903 = vmatpush.bf16.msra.mxu2 %v1970_v58  ;;  %v2182_v6 = vld [vmem:[#allocation11 + $0x4c] sm:$0xf]  ;;  %v741_v60 = vperm.slane %v739_v59, 0  ;;  %v742_v61 = vperm.slane %v739_v59, 1  ;;  %vm1037_vm9 = vcmask 64512   ;;  %s3218_s5 = sld [smem:[#allocation29_spill]] }
  0x67   : > { %s3219_s27 = sld [smem:[#allocation31_spill]]  ;;  %s1898_s2 = sshll.u32 %s3000_s12, 3 }
  0x68   : > { %v3024_v8 = vsel %vm648_vm0, %v2383_v3, %v647_v7  ;;  %v1938_v7 = vor.u32 %v2183_v5, %v1937_v4  ;;  %s2170_s4 = sshll.u32 %s2886_s25, 3  ;;  %s3221_s30 = sld [smem:[#allocation33_spill]] }
  0x69   : > { %878 = vmatpush.bf16.msra.mxu0 %v1950_v62  ;;  %891 = vmatpush.bf16.msra.mxu1 %v1954_v2  ;;  %v743_v2 = vperm.slane %v739_v59, 2  ;;  %s635_s28 = scalar_lea.vmem [#allocation17], %s1898_s2  ;;  %s1714_s25 = scalar_lea.sflag [#allocation4], %s3000_s12 }
  0x6a   : > { %s1726_s16 = sshll.u32 %s635_s28, 4  ;;  %s1727_s16 = int_to_ptr.vmem [resolvable:$true] %s1726_s16 }
  0x6d   : > { %879 = vmatpush.bf16.msra.mxu0 %v1938_v7 }
  0x6e   : > { %s1724_s24 = scalar_lea.hbm %s3221_s30, %s2170_s4  ;;  %s2700_s2 = scalar_lea.hbm %s3221_s30, 16 }
  0xce   : > { %v642_v9 = vpop.xlane.xlu0 %641 }
  0xcf   : > { %v650_v10 = vmul.f32 %v3024_v8, %v642_v9  ;;  %v1939_v9 = vld [vmem:[#allocation11 + $0x54] sm:$0xf0] }
  0xd1   : > { %v651_v11 = vsub.f32 %v638_v1, %v650_v10  ;;  %v2187_v1 = vld [vmem:[#allocation11 + $0x70] sm:$0xf0]  ;;  %v1945_v10 = vld [vmem:[#allocation11 + $0x50] sm:$0xf] }
  0xd2   : > { %v1958_v3 = vor.u32 %v2187_v1, %v1957_v0 }
  0xd3   : > { %v652_v12 = vmul.f32 %v651_v11, %v651_v11 }
  0xd4   : > { %904 = vmatpush.bf16.msra.mxu2 %v1958_v3 }
  0xd5   : > { %653 = vadd.xlane.f32.xlu0 %v652_v12  ;;  %v1942_v12 = vor.u32 %v2182_v6, %v1939_v9 }
  0xd7   : > { %892 = vmatpush.bf16.msra.mxu1 %v1942_v12 }
 0x148   : > { %v654_v13 = vpop.xlane.xlu0 %653 }
 0x149   : > { %v655_v14 = vmul.f32 %v654_v13, %v3024_v8 }
 0x14b   : > { %v656_v15 = vadd.f32 1e-12, %v655_v14  ;;  %v1925_v14 = vld [vmem:[#allocation11 + $0x30] sm:$0xf] }
 0x14d   : > { %2384 = vrsqrt.f32 %v656_v15  ;;  %vm663_vm2 = vweird.f32 %v656_v15 }
 0x153   : > { %v2385_v16 = vpop.eup %2384 }
 0x154   : > { %v658_v17 = vmul.f32 %v2385_v16, %v656_v15  ;;  %vm664_vm1 = vweird.f32 %v2385_v16  ;;  %v2180_v15 = vld [vmem:[#allocation11 + $0x38] sm:$0xf0] }
 0x155   : > { %vm665_vm3 = vmor %vm663_vm2, %vm664_vm1 }
 0x156   : > { %v659_v18 = vmul.f32 %v2385_v16, %v658_v17  ;;  %v1926_v17 = vor.u32 %v2180_v15, %v1925_v14 }
 0x158   : > { %v660_v19 = vmul.f32 0.5, %v659_v18  ;;  %v1927_v18 = vld [vmem:[#allocation11 + $0x3c] sm:$0xf0]  ;;  %880 = vmatpush.bf16.msra.mxu0 %v1926_v17 }
 0x15a   : > { %v661_v20 = vsub.f32 1.5, %v660_v19  ;;  %v1933_v19 = vld [vmem:[#allocation11 + $0x38] sm:$0xf] }
 0x15c   : > { %v662_v21 = vmul.f32 %v2385_v16, %v661_v20  ;;  %v2181_v20 = vld [vmem:[#allocation11 + $0x40] sm:$0xf0] }
 0x15e   : > { %v666_v23 = vsel %vm665_vm3, %v2385_v16, %v662_v21  ;;  %v2179_v16 = vld [vmem:[#allocation11 + $0x34] sm:$0xf] }
 0x15f   : > { %v667_v24 = vmul.f32 %v666_v23, %v651_v11  ;;  %v2184_v11 = vld [vmem:[#allocation11 + $0x58] sm:$0xf0]  ;;  %v1930_v21 = vor.u32 %v2179_v16, %v1927_v18  ;;  %v1913_v23 = vld [vmem:[#allocation11 + $0x18] sm:$0xf] }
 0x160   : > { %v1946_v13 = vor.u32 %v2184_v11, %v1945_v10 }
 0x161   : > { %v671_v26 = vmul.f32 %v2374_v22, %v667_v24  ;;  %v1934_v22 = vor.u32 %v2181_v20, %v1933_v19  ;;  %893 = vmatpush.bf16.msra.mxu1 %v1930_v21  ;;  %v2177_v24 = vld [vmem:[#allocation11 + $0x20] sm:$0xf0] }
 0x162   : > { %905 = vmatpush.bf16.msra.mxu2 %v1946_v13 }
 0x163   : > { %v3028_v27 = vadd.f32 %v2375_v25, %v671_v26  ;;  %v2176_v25 = vld [vmem:[#allocation11 + $0x1c] sm:$0xf]  ;;  %v1914_v26 = vor.u32 %v2177_v24, %v1913_v23 }
 0x164   : > { %v1918_v31 = vor.u32 %v2176_v25, %v1915_v28 }
 0x165   : > { %678 = vadd.xlane.f32.xlu1 %v3028_v27  ;;  %881 = vmatpush.bf16.msra.mxu0 %v1914_v26 }
 0x166   : > { %906 = vmatpush.bf16.msra.mxu2 %v1934_v22  ;;  %894 = vmatpush.bf16.msra.mxu1 %v1918_v31 }
 0x169   : > { %882 = vmatpush.bf16.msra.mxu0 %v1902_v36 }
 0x16a   : > { %907 = vmatpush.bf16.msra.mxu2 %v1922_v32 }
 0x1d8   : > { %v679_v37 = vpop.xlane.xlu1 %678 }
 0x1d9   : > { %v680_v38 = vmul.f32 %v679_v37, %v3024_v8  ;;  %v1903_v37 = vld [vmem:[#allocation11 + $0xc] sm:$0xf0] }
 0x1da   : > { %v1906_v41 = vor.u32 %v2173_v35, %v1903_v37 }
 0x1db   : > { %v3033_v39 = vsub.f32 %v3028_v27, %v680_v38  ;;  %v1909_v38 = vld [vmem:[#allocation11 + $0x8] sm:$0xf] }
 0x1dc   : > { %895 = vmatpush.bf16.msra.mxu1 %v1906_v41 }
 0x1dd   : > { %v682_v40 = vmul.f32 %v3033_v39, %v3033_v39 }
 0x1df   : > { %683 = vadd.xlane.f32.xlu1 %v682_v40  ;;  %v2175_v40 = vld [vmem:[#allocation11 + $0x10] sm:$0xf0] }
 0x1e0   : > { %v1910_v42 = vor.u32 %v2175_v40, %v1909_v38 }
 0x1e2   : > { %908 = vmatpush.bf16.msra.mxu2 %v1910_v42 }
 0x252   : > { %v684_v43 = vpop.xlane.xlu1 %683 }
 0x253   : > { %v685_v44 = vmul.f32 %v684_v43, %v3024_v8 }
 0x255   : > { %v686_v45 = vadd.f32 1e-05, %v685_v44 }
 0x257   : > { %2386 = vrsqrt.f32 %v686_v45  ;;  %vm693_vm5 = vweird.f32 %v686_v45 }
 0x25d   : > { %v2387_v46 = vpop.eup %2386 }
 0x25e   : > { %v688_v47 = vmul.f32 %v2387_v46, %v686_v45  ;;  %vm694_vm4 = vweird.f32 %v2387_v46 }
 0x25f   : > { %vm695_vm6 = vmor %vm693_vm5, %vm694_vm4 }
 0x260   : > { %v689_v48 = vmul.f32 %v2387_v46, %v688_v47 }
 0x262   : > { %v690_v49 = vmul.f32 0.5, %v689_v48 }
 0x264   : > { %v691_v50 = vsub.f32 1.5, %v690_v49 }
 0x266   : > { %v692_v51 = vmul.f32 %v2387_v46, %v691_v50 }
 0x268   : > { %v696_v53 = vsel %vm695_vm6, %v2387_v46, %v692_v51 }
 0x269   : > { %v697_v54 = vmul.f32 %v696_v53, %v3033_v39 }
 0x26b   : > { %v701_v56 = vmul.f32 %v2376_v52, %v697_v54 }
 0x26d   : > { %v705_v57 = vadd.f32 %v2377_v55, %v701_v56 }
 0x26f   : > { %v706_v58 = vpack.c.bf16 %v705_v57, %v705_v57 }
 0x271   : > { %883 = vmatmul.bf16.vlgmr.msra.gmra.mxu0 %v706_v58  ;;  %896 = vmatmul.bf16.vlgmr.msra.gmra.mxu1 %v706_v58 }
 0x272   : > { %909 = vmatmul.bf16.vlgmr.msra.gmra.mxu2 %v706_v58 }
 0x2ee   : > { %v884_v62 = vpop.f32.mrf.mxu0  ;;  %v897_v63 = vpop.f32.mrf.mxu1 }
 0x2ef   : > { %v885_v0 = vadd.f32 %v884_v62, %v741_v60  ;;  %v898_v1 = vadd.f32 %v897_v63, %v742_v61 }
 0x2f1   : > { %932 = vrot.lane.b32.xlu0 %v898_v1, %s2779_s26  ;;  %929 = vrot.lane.b32.xlu2 %v898_v1, %s2780_s17  ;;  %v938_v39 = vpack.c.bf16 %v898_v1, %v898_v1  ;;  %v924_v10 = vpack.c.bf16 %v885_v0, %v885_v0 }
 0x2f2   : > { %918 = vrot.lane.b32.xlu1 %v885_v0, %s2779_s26 }
 0x2f3   : > { %v961_v3 = vsel %vm956_vm7, %v938_v39, 0 }
 0x2f4   : > { %970 = vmatpush.bf16.xpose.msra.mxu3 %v961_v3 }
 0x2f5   : > { %v910_v4 = vpop.f32.mrf.mxu2 }
 0x2f6   : > { %v3046_v5 = vadd.f32 %v910_v4, %v743_v2  ;;  %v886_v6 = vpop.f32.mrf.mxu0  ;;  %v899_v7 = vpop.f32.mrf.mxu1 }
 0x2f8   : > { %v952_v9 = vpack.c.bf16 %v3046_v5, %v3046_v5 }
 0x2f9   : > { %915 = vrot.lane.b32.xlu2 %v885_v0, %s2780_s17 }
 0x2fa   : > { %v1091_v11 = vsel %vm1089_vm8, %v952_v9, 0 }
 0x2fb   : > { %1100 = vmatpush.bf16.msrb.mxu1 %v1091_v11  ;;  %1995 = vmatmul.msk.bf16.vlgmr.msra.gmra.mxu3 %vm956_vm7, %v924_v10 }
 0x2fd   : > { %v912_v12 = vpop.f32.mrf.mxu2 }
 0x2fe   : > { %v2198_v12 = vld [vmem:[#allocation13 + $0x8] sm:$0xff] }
 0x2ff   : > { %1204 = vmatpush.bf16.msra.mxu1 %v2198_v12 }
 0x301   : > { %935 = vrot.lane.b32.xlu2 %v898_v1, %s2781_s14 }
 0x309   : > { %921 = vrot.lane.b32.xlu2 %v885_v0, %s2781_s14 }
 0x34b   : > { %v930_v13 = vpop.permute.xlu2 %929 }
 0x34c   : > { %v939_v14 = vpack.c.bf16 %v930_v13, %v930_v13 }
 0x34e   : > { %v980_v15 = vsel %vm956_vm7, %v939_v14, 0 }
 0x34f   : > { %989 = vmatpush.bf16.xpose.msrb.mxu3 %v980_v15  ;;  %v2197_v15 = vld [vmem:[#allocation13] sm:$0xff] }
 0x350   : > { %1205 = vmatpush.bf16.msra.mxu1 %v2197_v15  ;;  %v2081_v15 = vld [vmem:[#allocation14 + $0x50] sm:$0xf] }
 0x353   : > { %v916_v16 = vpop.permute.xlu2 %915 }
 0x354   : > { %v925_v17 = vpack.c.bf16 %v916_v16, %v916_v16 }
 0x356   : > { %1996 = vmatmul.msk.bf16.vlgmr.msrb.gmra.mxu3 %vm956_vm7, %v925_v17 }
 0x35b   : > { %v936_v18 = vpop.permute.xlu2 %935 }
 0x35c   : > { %v941_v19 = vpack.c.bf16 %v936_v18, %v936_v18 }
 0x35e   : > { %v1018_v20 = vsel %vm956_vm7, %v941_v19, 0 }
 0x35f   : > { %1027 = vmatpush.bf16.xpose.msrb.mxu0 %v1018_v20  ;;  %v2200_v20 = vld [vmem:[#allocation13 + $0x18] sm:$0xff] }
 0x363   : > { %v933_v21 = vpop.permute.xlu0 %932  ;;  %v922_v22 = vpop.permute.xlu2 %921 }
 0x364   : > { %v940_v23 = vpack.c.bf16 %v933_v21, %v933_v21  ;;  %v927_v24 = vpack.c.bf16 %v922_v22, %v922_v22  ;;  %v919_v26 = vpop.permute.xlu1 %918 }
 0x365   : > { %v926_v28 = vpack.c.bf16 %v919_v26, %v919_v26 }
 0x366   : > { %v999_v25 = vsel %vm956_vm7, %v940_v23, 0  ;;  %1998 = vmatmul.msk.bf16.vlgmr.msrb.gmra.mxu0 %vm956_vm7, %v927_v24 }
 0x367   : > { %1008 = vmatpush.bf16.xpose.msra.mxu3 %v999_v25 }
 0x36e   : > { %1997 = vmatmul.msk.bf16.vlgmr.msra.gmra.mxu3 %vm956_vm7, %v926_v28 }
 0x37e   : > { %v972_v29 = vpop.f32.mrf.mxu3 }
 0x37f   : > { %v1033_v30 = vmul.f32 0.17677669, %v972_v29 }
 0x381   : > { %v1038_v31 = vsel %vm1037_vm9, %v1033_v30, -inf }
 0x382   : > { %1039 = vmax.xlane.f32.xlu1 %v1038_v31 }
 0x386   : > { %v974_v32 = vpop.f32.mrf.mxu3 }
 0x39b   : > { %943 = vrot.lane.b32.xlu1 %v3046_v5, %s2780_s17 }
 0x3d9   : > { %v991_v33 = vpop.f32.mrf.mxu3 }
 0x3da   : > { %v1034_v34 = vmul.f32 0.17677669, %v991_v33 }
 0x3dc   : > { %v1041_v35 = vsel %vm1037_vm9, %v1034_v34, -inf }
 0x3dd   : > { %1042 = vmax.xlane.f32.xlu2 %v1041_v35  ;;  %v2204_v35 = vld [vmem:[#allocation13 + $0x38] sm:$0xff] }
 0x3e1   : > { %v993_v36 = vpop.f32.mrf.mxu3 }
 0x3e2   : > { %v2202_v36 = vld [vmem:[#allocation13 + $0x28] sm:$0xff] }
 0x3e3   : > { %v1029_v37 = vpop.f32.mrf.mxu0 }
 0x3e4   : > { %v1036_v38 = vmul.f32 0.17677669, %v1029_v37  ;;  %v2203_v37 = vld [vmem:[#allocation13 + $0x30] sm:$0xff] }
 0x3e6   : > { %v1047_v40 = vsel %vm1037_vm9, %v1036_v38, -inf }
 0x3e7   : > { %1048 = vmax.xlane.f32.xlu2 %v1047_v40 }
 0x3eb   : > { %v1031_v41 = vpop.f32.mrf.mxu0 }
 0x3f1   : > { %v1010_v42 = vpop.f32.mrf.mxu3 }
 0x3f2   : > { %v1035_v43 = vmul.f32 0.17677669, %v1010_v42 }
 0x3f4   : > { %v1044_v44 = vsel %vm1037_vm9, %v1035_v43, -inf }
 0x3f5   : > { %v1040_v45 = vpop.xlane.xlu1 %1039  ;;  %1045 = vmax.xlane.f32.xlu0 %v1044_v44 }
 0x3f6   : > { %v1050_v46 = vsub.f32 %v1033_v30, %v1040_v45 }
 0x3f8   : > { %v1054_v47 = vmul.f32 1.442695, %v1050_v46 }
 0x3f9   : > { %v1012_v48 = vpop.f32.mrf.mxu3 }
 0x3fa   : > { %2388 = vpow2.f32 %v1054_v47 }
 0x400   : > { %v2389_v49 = vpop.eup %2388 }
 0x401   : > { %v1062_v50 = vsel %vm1037_vm9, %v2389_v49, 0.0 }
 0x402   : > { %1063 = vadd.xlane.f32.xlu2 %v1062_v50 }
 0x40d   : > { %v944_v51 = vpop.permute.xlu1 %943 }
 0x40e   : > { %v953_v52 = vpack.c.bf16 %v944_v51, %v944_v51 }
 0x410   : > { %v1110_v53 = vsel %vm1089_vm8, %v953_v52, 0 }
 0x411   : > { %1119 = vmatpush.bf16.msrb.mxu2 %v1110_v53 }
 0x415   : > { %1232 = vmatpush.bf16.msra.mxu2 %v2200_v20 }
 0x450   : > { %v1043_v54 = vpop.xlane.xlu2 %1042 }
 0x451   : > { %v1051_v55 = vsub.f32 %v1034_v34, %v1043_v54  ;;  %v2199_v34 = vld [vmem:[#allocation13 + $0x10] sm:$0xff] }
 0x452   : > { %1233 = vmatpush.bf16.msra.mxu2 %v2199_v34  ;;  %v2210_v34 = vld [vmem:[#allocation14 + $0x24] sm:$0xf0] }
 0x453   : > { %v1056_v56 = vmul.f32 1.442695, %v1051_v55 }
 0x455   : > { %2390 = vpow2.f32 %v1056_v56 }
 0x45a   : > { %v1049_v57 = vpop.xlane.xlu2 %1048 }
 0x45b   : > { %v2391_v58 = vpop.eup %2390  ;;  %v1053_v59 = vsub.f32 %v1036_v38, %v1049_v57  ;;  %v2201_v38 = vld [vmem:[#allocation13 + $0x20] sm:$0xff] }
 0x45c   : > { %v1065_v60 = vsel %vm1037_vm9, %v2391_v58, 0.0 }
 0x45d   : > { %v1060_v61 = vmul.f32 1.442695, %v1053_v59  ;;  %1066 = vadd.xlane.f32.xlu0 %v1065_v60 }
 0x45f   : > { %2392 = vpow2.f32 %v1060_v61 }
 0x465   : > { %v2393_v62 = vpop.eup %2392 }
 0x466   : > { %v1071_v63 = vsel %vm1037_vm9, %v2393_v62, 0.0 }
 0x467   : > { %1072 = vadd.xlane.f32.xlu2 %v1071_v63  ;;  %v2097_v63 = vld [vmem:[#allocation14 + $0x70] sm:$0xf] }
 0x468   : > { %v1046_v0 = vpop.xlane.xlu0 %1045 }
 0x469   : > { %v1052_v1 = vsub.f32 %v1035_v43, %v1046_v0  ;;  %v2220_v0 = vld [vmem:[#allocation14 + $0x74] sm:$0xf0] }
 0x46b   : > { %v1058_v39 = vmul.f32 1.442695, %v1052_v1  ;;  %v2219_v1 = vld [vmem:[#allocation14 + $0x74] sm:$0xf] }
 0x46d   : > { %2394 = vpow2.f32 %v1058_v39  ;;  %v2098_v39 = vor.u32 %v2220_v0, %v2097_v63 }
 0x471   : > { %946 = vrot.lane.b32.xlu0 %v3046_v5, %s2779_s26 }
 0x473   : > { %v2395_v2 = vpop.eup %2394 }
 0x474   : > { %v1068_v3 = vsel %vm1037_vm9, %v2395_v2, 0.0 }
 0x475   : > { %v1064_v4 = vpop.xlane.xlu2 %1063  ;;  %1069 = vadd.xlane.f32.xlu2 %v1068_v3 }
 0x476   : > { %2396 = vrcp.f32 %v1064_v4 }
 0x47c   : > { %v2397_v6 = vpop.eup %2396 }
 0x47d   : > { %v1078_v7 = vmul.f32 %v2397_v6, %v2389_v49 }
 0x47f   : > { %v1082_v9 = vpack.c.bf16 %v1078_v7, %v1078_v7 }
 0x481   : > { %1999 = vmatmul.msk.bf16.vlgmr.msrb.gmra.mxu1 %vm1037_vm9, %v1082_v9  ;;  %v2089_v9 = vld [vmem:[#allocation14 + $0x60] sm:$0xf] }
 0x482   : > { %1437 = vmatpush.bf16.msrb.mxu1 %v2098_v39 }
 0x48d   : > { %949 = vrot.lane.b32.xlu2 %v3046_v5, %s2781_s14  ;;  %s3220_s14 = sld [smem:[#allocation32_spill]] }
 0x4d0   : > { %v1067_v10 = vpop.xlane.xlu0 %1066 }
 0x4d1   : > { %2398 = vrcp.f32 %v1067_v10  ;;  %v2218_v10 = vld [vmem:[#allocation14 + $0x64] sm:$0xf0] }
 0x4d2   : > { %v2090_v12 = vor.u32 %v2218_v10, %v2089_v9  ;;  %v2236_v9 = vld [vmem:[#allocation16 + $0x78] sm:$0xff] }
 0x4d4   : > { %1438 = vmatpush.bf16.msrb.mxu1 %v2090_v12 }
 0x4d7   : > { %v2399_v11 = vpop.eup %2398 }
 0x4d8   : > { %v1079_v13 = vmul.f32 %v2399_v11, %v2391_v58  ;;  %v2378_v58 = vld [vmem:[%s3186_s8] ss:$0 sm:$0xff]  ;;  %v2217_v11 = vld [vmem:[#allocation14 + $0x64] sm:$0xf] }
 0x4da   : > { %v1083_v14 = vpack.c.bf16 %v1079_v13, %v1079_v13  ;;  %v1073_v16 = vpop.xlane.xlu2 %1072  ;;  %v2091_v13 = vld [vmem:[#allocation14 + $0x68] sm:$0xf0] }
 0x4db   : > { %2400 = vrcp.f32 %v1073_v16  ;;  %v2216_v16 = vld [vmem:[#allocation14 + $0x54] sm:$0xf0] }
 0x4dc   : > { %2000 = vmatmul.msk.bf16.vlgmr.msrb.gmra.mxu2 %vm1037_vm9, %v1083_v14  ;;  %v2094_v14 = vor.u32 %v2217_v11, %v2091_v13  ;;  %v2226_v11 = vld [vmem:[#allocation16 + $0x28] sm:$0xff] }
 0x4e1   : > { %v2401_v21 = vpop.eup %2400 }
 0x4e2   : > { %v1081_v25 = vmul.f32 %v2401_v21, %v2393_v62  ;;  %v2214_v21 = vld [vmem:[#allocation14 + $0x44] sm:$0xf0] }
 0x4e3   : > { %v947_v17 = vpop.permute.xlu0 %946 }
 0x4e4   : > { %v954_v18 = vpack.c.bf16 %v947_v17, %v947_v17  ;;  %v1085_v30 = vpack.c.bf16 %v1081_v25, %v1081_v25  ;;  %v2215_v17 = vld [vmem:[#allocation14 + $0x54] sm:$0xf] }
 0x4e6   : > { %v1129_v19 = vsel %vm1089_vm8, %v954_v18, 0  ;;  %v2082_v18 = vor.u32 %v2216_v16, %v2081_v15  ;;  %v2225_v16 = vld [vmem:[#allocation16 + $0x20] sm:$0xff] }
 0x4e7   : > { %1138 = vmatpush.bf16.msrb.mxu3 %v1129_v19  ;;  %v2083_v19 = vld [vmem:[#allocation14 + $0x58] sm:$0xf0] }
 0x4e8   : > { %v1070_v5 = vpop.xlane.xlu2 %1069  ;;  %v2086_v20 = vor.u32 %v2215_v17, %v2083_v19  ;;  %1439 = vmatpush.bf16.msrb.mxu1 %v2082_v18 }
 0x4e9   : > { %2402 = vrcp.f32 %v1070_v5  ;;  %v2073_v5 = vld [vmem:[#allocation14 + $0x40] sm:$0xf] }
 0x4eb   : > { %1260 = vmatpush.bf16.msra.mxu3 %v2202_v36 }
 0x4ef   : > { %v2403_v22 = vpop.eup %2402  ;;  %1261 = vmatpush.bf16.msra.mxu3 %v2201_v38 }
 0x4f0   : > { %v1080_v23 = vmul.f32 %v2403_v22, %v2395_v2  ;;  %v950_v24 = vpop.permute.xlu2 %949  ;;  %v2099_v2 = vld [vmem:[#allocation14 + $0x78] sm:$0xf0]  ;;  %v2213_v22 = vld [vmem:[#allocation14 + $0x44] sm:$0xf] }
 0x4f1   : > { %v955_v26 = vpack.c.bf16 %v950_v24, %v950_v24  ;;  %v2102_v3 = vor.u32 %v2219_v1, %v2099_v2  ;;  %v2075_v24 = vld [vmem:[#allocation14 + $0x48] sm:$0xf0] }
 0x4f2   : > { %v1084_v28 = vpack.c.bf16 %v1080_v23, %v1080_v23  ;;  %v2074_v23 = vor.u32 %v2214_v21, %v2073_v5  ;;  %v2078_v25 = vor.u32 %v2213_v22, %v2075_v24 }
 0x4f3   : > { %v1148_v29 = vsel %vm1089_vm8, %v955_v26, 0  ;;  %1450 = vmatpush.bf16.msrb.mxu2 %v2102_v3  ;;  %v2065_v26 = vld [vmem:[#allocation14 + $0x30] sm:$0xf]  ;;  %v2228_v3 = vld [vmem:[#allocation16 + $0x38] sm:$0xff] }
 0x4f4   : > { %2001 = vmatmul.msk.bf16.vlgmr.msrb.gmra.mxu3 %vm1037_vm9, %v1084_v28  ;;  %1157 = vmatpush.bf16.msra.mxu0 %v1148_v29  ;;  %v2212_v28 = vld [vmem:[#allocation14 + $0x34] sm:$0xf0]  ;;  %v2211_v29 = vld [vmem:[#allocation14 + $0x34] sm:$0xf] }
 0x4f5   : > { %1440 = vmatpush.bf16.msrb.mxu1 %v2074_v23  ;;  %1685 = vmatpush.bf16.msrb.mxu3 %v2228_v3  ;;  %v2224_v23 = vld [vmem:[#allocation16 + $0x18] sm:$0xff] }
 0x4f7   : > { %2002 = vmatmul.msk.bf16.vlgmr.msra.gmra.mxu0 %vm1037_vm9, %v1085_v30  ;;  %1451 = vmatpush.bf16.msrb.mxu2 %v2094_v14  ;;  %v2066_v30 = vor.u32 %v2212_v28, %v2065_v26  ;;  %v2235_v14 = vld [vmem:[#allocation16 + $0x70] sm:$0xff]  ;;  %v2233_v28 = vld [vmem:[#allocation16 + $0x60] sm:$0xff] }
 0x4f8   : > { %1288 = vmatpush.bf16.msrb.mxu0 %v2204_v35  ;;  %v2209_v35 = vld [vmem:[#allocation14 + $0x24] sm:$0xf] }
 0x4f9   : > { %1441 = vmatpush.bf16.msrb.mxu1 %v2066_v30 }
 0x4fb   : > { %1452 = vmatpush.bf16.msrb.mxu2 %v2086_v20  ;;  %v2234_v20 = vld [vmem:[#allocation16 + $0x68] sm:$0xff] }
 0x4fc   : > { %1289 = vmatpush.bf16.msrb.mxu0 %v2203_v37  ;;  %v2059_v37 = vld [vmem:[#allocation14 + $0x28] sm:$0xf0] }
 0x4fd   : > { %v2062_v38 = vor.u32 %v2209_v35, %v2059_v37 }
 0x4fe   : > { %v1102_v31 = vpop.f32.mrf.mxu1 }
 0x4ff   : > { %v1163_v32 = vpack.c.bf16 %v1102_v31, %v1102_v31  ;;  %1453 = vmatpush.bf16.msrb.mxu2 %v2078_v25  ;;  %v2067_v31 = vld [vmem:[#allocation14 + $0x38] sm:$0xf0] }
 0x500   : > { %1698 = vmatpush.bf16.msra.mxu0 %v2236_v9 }
 0x501   : > { %2011 = vmatmul.msk.bf16.vlgmr.msra.gmra.mxu1 %vm956_vm7, %v1163_v32  ;;  %v2070_v32 = vor.u32 %v2211_v29, %v2067_v31 }
 0x503   : > { %1454 = vmatpush.bf16.msrb.mxu2 %v2070_v32  ;;  %v2223_v32 = vld [vmem:[#allocation16 + $0x10] sm:$0xff] }
 0x504   : > { %1699 = vmatpush.bf16.msra.mxu0 %v2235_v14 }
 0x506   : > { %v1104_v33 = vpop.f32.mrf.mxu1 }
 0x507   : > { %v2057_v33 = vld [vmem:[#allocation14 + $0x20] sm:$0xf]  ;;  %1455 = vmatpush.bf16.msrb.mxu2 %v2062_v38 }
 0x508   : > { %v2058_v36 = vor.u32 %v2210_v34, %v2057_v33  ;;  %1700 = vmatpush.bf16.msra.mxu0 %v2234_v20 }
 0x50a   : > { %1442 = vmatpush.bf16.msrb.mxu1 %v2058_v36  ;;  %v2232_v36 = vld [vmem:[#allocation16 + $0x58] sm:$0xff] }
 0x50c   : > { %1701 = vmatpush.bf16.msra.mxu0 %v2233_v28 }
 0x510   : > { %1702 = vmatpush.bf16.msra.mxu0 %v2232_v36 }
 0x55f   : > { %v1121_v40 = vpop.f32.mrf.mxu2 }
 0x560   : > { %v1164_v41 = vpack.c.bf16 %v1121_v40, %v1121_v40  ;;  %v2049_v40 = vld [vmem:[#allocation14 + $0x10] sm:$0xf] }
 0x562   : > { %2020 = vmatmul.msk.bf16.vlgmr.msra.gmra.mxu2 %vm956_vm7, %v1164_v41  ;;  %v2208_v41 = vld [vmem:[#allocation14 + $0x14] sm:$0xf0] }
 0x567   : > { %v1123_v42 = vpop.f32.mrf.mxu2 }
 0x568   : > { %v2207_v42 = vld [vmem:[#allocation14 + $0x14] sm:$0xf] }
 0x574   : > { %v1159_v43 = vpop.f32.mrf.mxu0 }
 0x575   : > { %v1166_v44 = vpack.c.bf16 %v1159_v43, %v1159_v43  ;;  %v2050_v43 = vor.u32 %v2208_v41, %v2049_v40 }
 0x577   : > { %v1140_v45 = vpop.f32.mrf.mxu3  ;;  %2038 = vmatmul.msk.bf16.vlgmr.msrb.gmra.mxu0 %vm956_vm7, %v1166_v44  ;;  %v2051_v44 = vld [vmem:[#allocation14 + $0x18] sm:$0xf0]  ;;  %1443 = vmatpush.bf16.msrb.mxu1 %v2050_v43 }
 0x578   : > { %v1165_v46 = vpack.c.bf16 %v1140_v45, %v1140_v45  ;;  %v2041_v45 = vld [vmem:[#allocation14] sm:$0xf] }
 0x57a   : > { %2029 = vmatmul.msk.bf16.vlgmr.msra.gmra.mxu3 %vm956_vm7, %v1165_v46  ;;  %v2206_v46 = vld [vmem:[#allocation14 + $0x4] sm:$0xf0] }
 0x57c   : > { %v1161_v47 = vpop.f32.mrf.mxu0 }
 0x57d   : > { %v2054_v47 = vor.u32 %v2207_v42, %v2051_v44  ;;  %v2222_v42 = vld [vmem:[#allocation16 + $0x8] sm:$0xff] }
 0x57e   : > { %v1207_v48 = vpop.f32.mrf.mxu1 }
 0x57f   : > { %v1142_v49 = vpop.f32.mrf.mxu3  ;;  %1456 = vmatpush.bf16.msrb.mxu2 %v2054_v47 }
 0x580   : > { %v2043_v49 = vld [vmem:[#allocation14 + $0x8] sm:$0xf0] }
 0x586   : > { %v1209_v50 = vpop.f32.mrf.mxu1 }
 0x587   : > { %v2042_v50 = vor.u32 %v2206_v46, %v2041_v45  ;;  %v2231_v46 = vld [vmem:[#allocation16 + $0x50] sm:$0xff] }
 0x588   : > { %1703 = vmatpush.bf16.msra.mxu0 %v2231_v46 }
 0x589   : > { %1444 = vmatpush.bf16.msrb.mxu1 %v2042_v50 }
 0x5e5   : > { %v1235_v51 = vpop.f32.mrf.mxu2 }
 0x5e6   : > { %v1295_v54 = vadd.f32 %v1235_v51, %v1207_v48  ;;  %v2205_v48 = vld [vmem:[#allocation14 + $0x4] sm:$0xf] }
 0x5e7   : > { %v2046_v51 = vor.u32 %v2205_v48, %v2043_v49 }
 0x5e9   : > { %1457 = vmatpush.bf16.msrb.mxu2 %v2046_v51  ;;  %v2221_v51 = vld [vmem:[#allocation16] sm:$0xff] }
 0x5ed   : > { %v1237_v52 = vpop.f32.mrf.mxu2 }
 0x5f4   : > { %v1291_v53 = vpop.f32.mrf.mxu0 }
 0x5fc   : > { %v1293_v55 = vpop.f32.mrf.mxu0 }
 0x5fd   : > { %v1263_v56 = vpop.f32.mrf.mxu3 }
 0x5fe   : > { %v1296_v57 = vadd.f32 %v1295_v54, %v1263_v56 }
 0x600   : > { %v1297_v59 = vadd.f32 %v1296_v57, %v1291_v53 }
 0x602   : > { %v1302_v60 = vadd.f32 %v2378_v58, %v1297_v59 }
 0x604   : > { %v3090_v61 = vadd.f32 %v1302_v60, %v3028_v27 }
 0x605   : > { %v1265_v62 = vpop.f32.mrf.mxu3 }
 0x606   : > { %1306 = vadd.xlane.f32.xlu0 %v3090_v61  ;;  %v2379_v62 = vld [vmem:[%s3187_s9] ss:$0 sm:$0xff] }
 0x679   : > { %v1307_v4 = vpop.xlane.xlu0 %1306 }
 0x67a   : > { %v1308_v6 = vmul.f32 %v1307_v4, %v3024_v8  ;;  %v1351_v4 = vld [vmem:[%s3219_s27] sm:$0x3] }
 0x67b   : > { %v1354_v13 = vperm.slane %v1351_v4, 1 }
 0x67c   : > { %v3095_v7 = vsub.f32 %v3090_v61, %v1308_v6  ;;  %v1353_v6 = vperm.slane %v1351_v4, 0 }
 0x67e   : > { %v1310_v27 = vmul.f32 %v3095_v7, %v3095_v7 }
 0x680   : > { %1311 = vadd.xlane.f32.xlu1 %v1310_v27  ;;  %v2227_v27 = vld [vmem:[#allocation16 + $0x30] sm:$0xff] }
 0x681   : > { %1686 = vmatpush.bf16.msrb.mxu3 %v2227_v27 }
 0x685   : > { %1687 = vmatpush.bf16.msrb.mxu3 %v2226_v11 }
 0x689   : > { %1688 = vmatpush.bf16.msrb.mxu3 %v2225_v16 }
 0x68d   : > { %1689 = vmatpush.bf16.msrb.mxu3 %v2224_v23 }
 0x691   : > { %1690 = vmatpush.bf16.msrb.mxu3 %v2223_v32 }
 0x695   : > { %1691 = vmatpush.bf16.msrb.mxu3 %v2222_v42 }
 0x699   : > { %1692 = vmatpush.bf16.msrb.mxu3 %v2221_v51 }
 0x6f3   : > { %v1312_v52 = vpop.xlane.xlu1 %1311 }
 0x6f4   : > { %v1313_v53 = vmul.f32 %v1312_v52, %v3024_v8  ;;  %v2380_v8 = vld [vmem:[%s3218_s5] ss:$0 sm:$0xff]  ;;  %s1728_s5 = sshll.u32 %s1724_s24, 4  ;;  %s1729_s5 = int_to_ptr.hbm [resolvable:$true] %s1728_s5 }
 0x6f5   : > { %s2694_s23 = sshra.s32 %s1729_s5, 4  ;;  %s2695_s23 = int_to_ptr.hbm [resolvable:$true] %s2694_s23 }
 0x6f6   : > { %v1314_v54 = vadd.f32 1e-05, %v1313_v53  ;;  %s2696_s3 = scalar_lea.hbm %s2695_s23, 8  ;;  %p2701_p12 = scmp.lt.s32.totalorder %s2695_s23, %s3221_s30 }
 0x6f7   : > { %p2697_p1 = scmp.ne.s32.totalorder %s2695_s23, %s2696_s3  ;;  %p2702_p7 = scmp.lt.s32.totalorder %s2700_s2, %s2696_s3 }
 0x6f8   : > { %2404 = vrsqrt.f32 %v1314_v54  ;;  %vm1321_vm11 = vweird.f32 %v1314_v54 }
 0x6f9   : > { %p2698_p3 = pnand %p2697_p1, %p2969_p5  ;;  %p2703_p8 = por %p2702_p7, %p2701_p12 }
 0x6fb   : > { %p2699_p4 = pneg %p2698_p3 }
 0x6fd   : > { %p2704_p9 = pnand %p2703_p8, %p2699_p4 }
 0x6fe   : > { %v2405_v55 = vpop.eup %2404 }
 0x6ff   : > { %v1316_v56 = vmul.f32 %v2405_v55, %v1314_v54  ;;  %vm1322_vm10 = vweird.f32 %v2405_v55 }
 0x700   : > { %vm1323_vm12 = vmor %vm1321_vm11, %vm1322_vm10 }
 0x701   : > { %v1317_v57 = vmul.f32 %v2405_v55, %v1316_v56 }
 0x703   : > { %v1318_v58 = vmul.f32 0.5, %v1317_v57 }
 0x705   : > { %v1319_v59 = vsub.f32 1.5, %v1318_v58 }
 0x707   : > { %v1320_v60 = vmul.f32 %v2405_v55, %v1319_v59 }
 0x709   : > { %v1324_v63 = vsel %vm1323_vm12, %v2405_v55, %v1320_v60  ;;  %v2230_v55 = vld [vmem:[#allocation16 + $0x48] sm:$0xff] }
 0x70a   : > { %v1325_v0 = vmul.f32 %v1324_v63, %v3095_v7  ;;  %1704 = vmatpush.bf16.msra.mxu0 %v2230_v55  ;;  %v2229_v63 = vld [vmem:[#allocation16 + $0x40] sm:$0xff] }
 0x70c   : > { %v1329_v1 = vmul.f32 %v2379_v62, %v1325_v0 }
 0x70e   : > { %v1333_v39 = vadd.f32 %v2380_v8, %v1329_v1  ;;  %1705 = vmatpush.bf16.msra.mxu0 %v2229_v63 }
 0x710   : > { %v1334_v2 = vpack.c.bf16 %v1333_v39, %v1333_v39 }
 0x712   : > { %1445 = vmatmul.bf16.vlgmr.msrb.gmra.mxu1 %v1334_v2  ;;  %1458 = vmatmul.bf16.vlgmr.msrb.gmra.mxu2 %v1334_v2 }
 0x78f   : > { %v1446_v7 = vpop.f32.mrf.mxu1 }
 0x790   : > { %v3110_v10 = vadd.f32 %v1446_v7, %v1353_v6 }
 0x792   : > { %v3113_v12 = vmul.f32 0.70710677, %v3110_v10 }
 0x794   : > { %v1467_v15 = vmul.f32 %v3113_v12, %v3113_v12 }
 0x795   : > { %v1459_v17 = vpop.f32.mrf.mxu2 }
 0x796   : > { %v3117_v18 = vmin.f32 %v1467_v15, 16.0  ;;  %v3119_v19 = vadd.f32 %v1459_v17, %v1354_v13 }
 0x797   : > { %v1448_v5 = vpop.f32.mrf.mxu1 }
 0x798   : > { %v1469_v21 = vmul.f32 2.1237322e-06, %v3117_v18  ;;  %v1480_v22 = vmul.f32 3.8918573e-05, %v3117_v18  ;;  %v3124_v24 = vmul.f32 0.70710677, %v3119_v19 }
 0x799   : > { %v1464_v46 = vmul.f32 0.5, %v3119_v19 }
 0x79a   : > { %v1470_v25 = vadd.f32 0.00028619796, %v1469_v21  ;;  %v1481_v26 = vadd.f32 0.001143296, %v1480_v22  ;;  %v1507_v29 = vmul.f32 %v3124_v24, %v3124_v24 }
 0x79c   : > { %v1471_v30 = vmul.f32 %v1470_v25, %v3117_v18  ;;  %v1482_v31 = vmul.f32 %v1481_v26, %v3117_v18  ;;  %v1508_v33 = vmin.f32 %v1507_v29, 16.0 }
 0x79d   : > { %v1461_v34 = vpop.f32.mrf.mxu2 }
 0x79e   : > { %v1483_v35 = vadd.f32 0.014752088, %v1482_v31  ;;  %v1472_v37 = vadd.f32 0.0036580483, %v1471_v30  ;;  %v1509_v38 = vmul.f32 2.1237322e-06, %v1508_v33 }
 0x79f   : > { %v1520_v40 = vmul.f32 3.8918573e-05, %v1508_v33 }
 0x7a0   : > { %v1484_v41 = vmul.f32 %v1483_v35, %v3117_v18  ;;  %v1510_v43 = vadd.f32 0.00028619796, %v1509_v38  ;;  %v1473_v47 = vmul.f32 %v1472_v37, %v3117_v18  ;;  %v1463_v37 = vmul.f32 0.5, %v3110_v10 }
 0x7a1   : > { %v1521_v44 = vadd.f32 0.001143296, %v1520_v40 }
 0x7a2   : > { %v1485_v45 = vadd.f32 0.112945676, %v1484_v41  ;;  %v1511_v48 = vmul.f32 %v1510_v43, %v1508_v33  ;;  %v1474_v56 = vadd.f32 0.05243302, %v1473_v47 }
 0x7a3   : > { %v1522_v49 = vmul.f32 %v1521_v44, %v1508_v33 }
 0x7a4   : > { %v1486_v50 = vmul.f32 %v1485_v45, %v3117_v18  ;;  %v1512_v54 = vadd.f32 0.0036580483, %v1511_v48  ;;  %v1475_v0 = vmul.f32 %v1474_v56, %v3117_v18 }
 0x7a5   : > { %v1523_v52 = vadd.f32 0.014752088, %v1522_v49 }
 0x7a6   : > { %v1487_v53 = vadd.f32 0.4994258, %v1486_v50  ;;  %v1513_v62 = vmul.f32 %v1512_v54, %v1508_v33  ;;  %v1476_v2 = vadd.f32 0.18741608, %v1475_v0 }
 0x7a7   : > { %v1524_v57 = vmul.f32 %v1523_v52, %v1508_v33 }
 0x7a8   : > { %v1488_v58 = vmul.f32 %v1487_v53, %v3117_v18  ;;  %v1514_v39 = vadd.f32 0.05243302, %v1513_v62  ;;  %v1477_v9 = vmul.f32 %v1476_v2, %v3117_v18 }
 0x7a9   : > { %v1525_v59 = vadd.f32 0.112945676, %v1524_v57 }
 0x7aa   : > { %v1489_v60 = vadd.f32 1.0, %v1488_v58  ;;  %v1515_v27 = vmul.f32 %v1514_v39, %v1508_v33  ;;  %v1478_v15 = vadd.f32 1.1283791, %v1477_v9 }
 0x7ab   : > { %v1526_v8 = vmul.f32 %v1525_v59, %v1508_v33 }
 0x7ac   : > { %2406 = vrcp.f32 %v1489_v60  ;;  %v1501_v13 = vand.u32 2147483648, %v1489_v60  ;;  %v1516_v14 = vadd.f32 0.18741608, %v1515_v27  ;;  %v1499_v17 = vand.u32 2147483647, %v1489_v60 }
 0x7ad   : > { %v1527_v1 = vadd.f32 0.4994258, %v1526_v8  ;;  %vm1495_vm14 = vweird.f32 %v1489_v60  ;;  %v1479_v25 = vmul.f32 %v1478_v15, %v3113_v12 }
 0x7ae   : > { %v1502_v21 = vor.u32 1.1754944e-38, %v1501_v13  ;;  %v1517_v22 = vmul.f32 %v1516_v14, %v1508_v33  ;;  %vm1500_vm0 = vcmp.eq.f32.partialorder %v1499_v17, 8.507059e+37 }
 0x7af   : > { %v1528_v3 = vmul.f32 %v1527_v1, %v1508_v33 }
 0x7b0   : > { %v1518_v31 = vadd.f32 1.1283791, %v1517_v22 }
 0x7b1   : > { %v1529_v4 = vadd.f32 1.0, %v1528_v3 }
 0x7b2   : > { %v2407_v6 = vpop.eup %2406  ;;  %v1519_v12 = vmul.f32 %v1518_v31, %v3124_v24  ;;  %v2381_v24 = vld [vmem:[%s3220_s14] ss:$0 sm:$0xff] }
 0x7b3   : > { %v1491_v7 = vmul.f32 %v2407_v6, %v1489_v60  ;;  %2408 = vrcp.f32 %v1529_v4  ;;  %vm1496_vm13 = vweird.f32 %v2407_v6  ;;  %v1541_v30 = vand.u32 2147483648, %v1529_v4 }
 0x7b4   : > { %vm1497_vm15 = vmor %vm1495_vm14, %vm1496_vm13  ;;  %v1539_v34 = vand.u32 2147483647, %v1529_v4  ;;  %vm1535_vm2 = vweird.f32 %v1529_v4 }
 0x7b5   : > { %v1492_v11 = vsub.f32 1.0, %v1491_v7  ;;  %v1542_v33 = vor.u32 1.1754944e-38, %v1541_v30 }
 0x7b6   : > { %vm1540_vm4 = vcmp.eq.f32.partialorder %v1539_v34, 8.507059e+37 }
 0x7b7   : > { %v1493_v16 = vmul.f32 %v2407_v6, %v1492_v11 }
 0x7b9   : > { %v2409_v20 = vpop.eup %2408  ;;  %v1494_v5 = vadd.f32 %v2407_v6, %v1493_v16 }
 0x7ba   : > { %v1531_v23 = vmul.f32 %v2409_v20, %v1529_v4  ;;  %vm1536_vm1 = vweird.f32 %v2409_v20 }
 0x7bb   : > { %v1498_v26 = vsel %vm1497_vm15, %v2407_v6, %v1494_v5  ;;  %vm1537_vm3 = vmor %vm1535_vm2, %vm1536_vm1 }
 0x7bc   : > { %v1503_v18 = vsel %vm1500_vm0, %v1502_v21, %v1498_v26  ;;  %v1532_v28 = vsub.f32 1.0, %v1531_v23 }
 0x7bd   : > { %v1504_v29 = vmul.f32 %v1503_v18, %v1479_v25 }
 0x7be   : > { %v1533_v32 = vmul.f32 %v2409_v20, %v1532_v28 }
 0x7bf   : > { %v2103_v35 = vclamps-f32 %v1504_v29, 1.0 }
 0x7c0   : > { %v1534_v36 = vadd.f32 %v2409_v20, %v1533_v32 }
 0x7c1   : > { %v1547_v38 = vadd.f32 1.0, %v2103_v35 }
 0x7c2   : > { %v1538_v40 = vsel %vm1537_vm3, %v2409_v20, %v1534_v36 }
 0x7c3   : > { %v1549_v41 = vmul.f32 %v1547_v38, %v1463_v37  ;;  %v1543_v42 = vsel %vm1540_vm4, %v1542_v33, %v1538_v40 }
 0x7c4   : > { %v1544_v43 = vmul.f32 %v1543_v42, %v1519_v12 }
 0x7c5   : > { %v1551_v44 = vpack.c.bf16 %v1549_v41, %v1549_v41 }
 0x7c6   : > { %v2104_v45 = vclamps-f32 %v1544_v43, 1.0 }
 0x7c7   : > { %1693 = vmatmul.bf16.vlgmr.msrb.gmra.mxu3 %v1551_v44 }
 0x7c8   : > { %v1548_v47 = vadd.f32 1.0, %v2104_v45 }
 0x7ca   : > { %v1550_v48 = vmul.f32 %v1548_v47, %v1464_v46 }
 0x7cc   : > { %v1552_v10 = vpack.c.bf16 %v1550_v48, %v1550_v48 }
 0x7ce   : > { %1706 = vmatmul.bf16.vlgmr.msra.gmra.mxu0 %v1552_v10 }
 0x84a   : > { %v1694_v49 = vpop.f32.mrf.mxu3 }
 0x84b   : > { %v1695_v50 = vadd.f32 %v2381_v24, %v1694_v49  ;;  %v1707_v51 = vpop.f32.mrf.mxu0 }
 0x84d   : > { %v1708_v19 = vadd.f32 %v1707_v51, %v1695_v50 }
 0x84f   : > { %v1711_v52 = vadd.f32 %v1708_v19, %v3090_v61 }
 0x851   : > { %1712 = vst [vmem:[%s635_s28] sm:$0xff] %v1711_v52 }
 0x852   : > { %v1696_v53 = vpop.f32.mrf.mxu3 }
 0x853   : > { %2707 = shalt.err (!%p2704_p9)
}
 0x854   : > { %2271 = dma.vmem_to_hbm [thread:$0]  (%p2969_p5), %s1727_s16, 128, %s1729_s5, %s1714_s25   ;;  %v1709_v61 = vpop.f32.mrf.mxu0 }
 0x855 PF: > { %s1740_s12 = sand.u32 1, %s2750_s18   ;;  %p3222_p10 = scmp.ge.s32.totalorder %s2762_s21, 2 }
 0x856   : > { %s1741_s14 = scalar_lea.sflag [#allocation4], %s1740_s12 }
 0x857   : > { %p2303_p13 = pnand %p3222_p10, %p2973_p6 }
 0x859   : > { %p2304_p11 = pneg %p2303_p13 }
 0x85b   : > { %2745 = dma.done.wait (%p2304_p11), %s1741_s14, 128  }
 0x85c   : > { %2747 = vsyncadd (%p2304_p11), %s1741_s14, 4294967168  ;;  %p32_p0 = scmp.ge.s32.totalorder %s2943_s10, 4   ;;  %s3223_s18 = smov %s2754_s19 }
 0x85d   : > { %s3224_s19 = smov %s2758_s20  ;;  %s3225_s20 = smov %s2954_s22 }
 0x85e   : > { %s3226_s21 = smov %s2943_s10  ;;  %34 = sbr.rel (!%p32_p0) target bundleno = 20 (0x14), region = 157 }
 0x863   :  { %1747 = vsyncpa [#allocation3], 1 }
 0x864   :  { %1749 = vsyncpa [#allocation3 + $0x1], 1 }
 0x865   :  { %1750 = vsyncpa [#allocation6], 1 }
 0x866   :  { %1751 = vsyncpa [#allocation9], 1 }
 0x867   :  { %1752 = vsyncpa [#allocation12], 1 }
 0x868   :  { %1753 = vsyncpa [#allocation15], 1 }
 0x869   :  { %1754 = vsyncpa [#allocation4], 1 }
 0x86a   :  { %1756 = vsyncpa [#allocation4 + $0x1], 1 }

</bundles_post_ra>
